<compile_context>
chip_gen: v7x
topology: tpu7x:2x2x1
jax: 0.10.0
libtpu: 0.0.40
codegen_flags: <defaults>
</compile_context>

<pallas_src>
import functools

import jax
import jax.numpy as jnp
from jax import lax
from jax.experimental import pallas as pl
from jax.experimental.pallas import tpu as pltpu


def _silu(t):
    return t * jax.nn.sigmoid(t)


def _dot(a, b):
    # Every matmul in this kernel is tiny; HIGHEST keeps the 1e-3 match with
    # the f32 reference at negligible cost.  (lax.Precision.HIGH is a further
    # option for the conv matmul once validated at larger sizes.)
    return jnp.dot(a, b, preferred_element_type=jnp.float32,
                   precision=lax.Precision.HIGHEST)


# ----------------------------------------------------------------------------
# Fused kernel: conv_offset_mask (channel-major matmul + bias) -> MPCA.
# Works on a block of B batch elements; everything stays (C, spatial).
# BatchNorm is folded (inference mode) into per-channel scale/shift vectors.
# ----------------------------------------------------------------------------
def _fused_kernel(patch_ref, wc_ref, wg_ref, w3_ref, w1_ref, vec_ref,
                  pool_ref, eh_ref, ew_ref, o_ref, *, B, Ho, Wo):
    C = o_ref.shape[1]
    HW = Ho * Wo
    T = Ho + Wo

    bias = vec_ref[:, 0:1]
    gsc, gsh = vec_ref[:, 1:2], vec_ref[:, 2:3]
    hsc, hsh = vec_ref[:, 3:4], vec_ref[:, 4:5]
    psc, psh = vec_ref[:, 5:6], vec_ref[:, 6:7]

    # conv_offset_mask: one channel-major MXU matmul over the whole B-block.
    # y is born (C, B*HW): lane-dense, no transpose needed anywhere below.
    y = _dot(wc_ref[...], patch_ref[...]) + bias          # (C, B*HW)

    P = pool_ref[...]                                     # (HW, T+1)
    Eh = eh_ref[...]                                      # (Ho, HW)
    Ew = ew_ref[...]                                      # (Wo, HW)

    for b in range(B):                                    # static unroll
        y_b = y[:, b * HW:(b + 1) * HW]                   # (C, HW)

        # H / W / global pooling as ONE matmul: avoids any (C,Ho,Wo) relayout
        # and any XLU reduction over the full feature map.
        pooled = _dot(y_b, P)                             # (C, T+1)
        hw = pooled[:, :T]                                # (C, T)
        gap = pooled[:, T:T + 1]                          # (C, 1)

        # gap branch: 1x1 conv (no bias) + folded BN + SiLU
        g = _silu(_dot(wg_ref[...], gap) * gsc + gsh)     # (C, 1)

        # conv_hw: (3,1) conv along T (pad 1) as three tap matmuls
        zcol = jnp.zeros((C, 1), jnp.float32)
        hw_prev = jnp.concatenate([zcol, hw[:, :T - 1]], axis=1)
        hw_next = jnp.concatenate([hw[:, 1:], zcol], axis=1)
        hw2 = (_dot(w3_ref[0], hw_prev) +
               _dot(w3_ref[1], hw) +
               _dot(w3_ref[2], hw_next))
        hw2 = _silu(hw2 * hsc + hsh)                      # (C, T)

        # conv_pool_hw: 1x1 conv + BN + SiLU, sigmoid -> attention weights
        wgt = jax.nn.sigmoid(_silu(_dot(w1_ref[...], hw2) * psc + psh))

        ph = hw2[:, :Ho] * wgt[:, :Ho]                    # (C, Ho)
        pw = hw2[:, Ho:] * wgt[:, Ho:]                    # (C, Wo)
        ch = g * jnp.mean(wgt, axis=1, keepdims=True)     # (C, 1)

        # fold the channel gate into the H gate (saves one full (C,HW) pass)
        sig_hc = jax.nn.sigmoid(ph) * jax.nn.sigmoid(ch)  # (C, Ho)
        sig_w = jax.nn.sigmoid(pw)                        # (C, Wo)

        # broadcast gates back to (C, HW) with two tiny selection matmuls
        gate = _dot(sig_hc, Eh) * _dot(sig_w, Ew)         # (C, HW)

        o_ref[b] = y_b * (gate + 1.0)                     # == y*gh*gw*gc + y


# ----------------------------------------------------------------------------
# Wrapper: XLA-side im2col, weight reordering, BN folding, pooling/broadcast
# matrices, single fused pallas_call over batch blocks.
# ----------------------------------------------------------------------------
def _dcnv2_offset_attention_impl(x_nchw, params, kernel_size, stride):
    N, Cin, H, W = x_nchw.shape
    K = kernel_size
    pad = K // 2
    Cout = params["w_off"].shape[0]
    C = Cout

    Ho = (H + 2 * pad - K) // stride + 1
    Wo = (W + 2 * pad - K) // stride + 1
    HW = Ho * Wo
    T = Ho + Wo
    KKC = K * K * Cin

    x = x_nchw.astype(jnp.float32)
    xp = jnp.pad(x, ((0, 0), (0, 0), (pad, pad), (pad, pad)))

    # im2col in XLA: patches[(kh*K+kw)*Cin + cin, n*HW + h*Wo + w]
    cols = []
    for kh in range(K):
        for kw in range(K):
            win = xp[:, :, kh:kh + (Ho - 1) * stride + 1:stride,
                     kw:kw + (Wo - 1) * stride + 1:stride]     # (N,Cin,Ho,Wo)
            cols.append(win.reshape(N, Cin, HW))
    patches = jnp.concatenate(cols, axis=1)                    # (N, KKC, HW)
    patches = jnp.transpose(patches, (1, 0, 2)).reshape(KKC, N * HW)

    # conv weight, channel-major (Cout, KKC) with matching (kh,kw,cin) order
    wc = jnp.transpose(params["w_off"], (0, 2, 3, 1)).reshape(Cout, KKC)

    # attention weights in OI layout (channel-major friendly)
    wg = params["w_gap"][:, :, 0, 0]                               # (C, C)
    w3 = jnp.transpose(params["w_hw"][:, :, :, 0], (2, 0, 1))      # (3, C, C)
    w1 = params["w_pw"][:, :, 0, 0]                                # (C, C)

    def fold_bn(gamma, beta, mean, var, eps=1e-5):
        scale = gamma / jnp.sqrt(var + eps)
        return scale, beta - mean * scale

    # TODO(synk): BatchNorm is reproduced in inference mode (folded running
    # statistics); training-mode batch-statistic normalization is not modeled.
    gsc, gsh = fold_bn(*params["bn_gap"])
    hsc, hsh = fold_bn(*params["bn_hw"])
    psc, psh = fold_bn(*params["bn_pw"])
    vec = jnp.stack([params["b_off"], gsc, gsh, hsc, hsh, psc, psh,
                     jnp.zeros((C,), jnp.float32)], axis=1)        # (C, 8)

    # pooling matrix (H-mean | W-mean | global mean) and gate-broadcast masks
    hh = jnp.arange(Ho)
    ww = jnp.arange(Wo)
    row_h = jnp.repeat(hh, Wo)                                     # (HW,)
    row_w = jnp.tile(ww, Ho)                                       # (HW,)
    P_h = (row_h[:, None] == hh[None, :]).astype(jnp.float32) / Wo
    P_w = (row_w[:, None] == ww[None, :]).astype(jnp.float32) / Ho
    P_g = jnp.full((HW, 1), 1.0 / HW, jnp.float32)
    pool_mat = jnp.concatenate([P_h, P_w, P_g], axis=1)            # (HW, T+1)
    eh = (hh[:, None] == row_h[None, :]).astype(jnp.float32)       # (Ho, HW)
    ew = (ww[:, None] == row_w[None, :]).astype(jnp.float32)       # (Wo, HW)

    # batch block: amortize per-step overhead but keep grid >= 2 (both v7x
    # TensorCores busy).  Fall back to one block if HW is not lane-aligned.
    B = 1
    if N >= 2:
        for cand in range(N // 2, 0, -1):
            if N % cand == 0:
                B = cand
                break
    if (HW % 128 != 0) and (B != N):
        B = N
    grid = N // B

    conv_flops = 2 * N * HW * KKC * Cout
    attn_flops = 2 * N * (HW * (T + 1) * C          # pooling matmul
                          + C * C * (4 * T + 1)     # wg / w3 taps / w1
                          + C * T * HW)             # gate broadcast matmuls
    cost = pl.CostEstimate(
        flops=int(conv_flops + attn_flops),
        transcendentals=int(N * C * (4 * T + 2)),
        bytes_accessed=int(4 * (KKC * N * HW + N * C * HW + Cout * KKC
                                + 3 * C * C + HW * (T + 1) + T * HW + 8 * C)))

    kern = functools.partial(_fused_kernel, B=B, Ho=Ho, Wo=Wo)

    out = pl.pallas_call(
        kern,
        grid=(grid,),
        in_specs=[
            pl.BlockSpec((KKC, B * HW), lambda i: (0, i)),
            pl.BlockSpec((Cout, KKC), lambda i: (0, 0)),
            pl.BlockSpec((C, C), lambda i: (0, 0)),
            pl.BlockSpec((3, C, C), lambda i: (0, 0, 0)),
            pl.BlockSpec((C, C), lambda i: (0, 0)),
            pl.BlockSpec((C, 8), lambda i: (0, 0)),
            pl.BlockSpec((HW, T + 1), lambda i: (0, 0)),
            pl.BlockSpec((Ho, HW), lambda i: (0, 0)),
            pl.BlockSpec((Wo, HW), lambda i: (0, 0)),
        ],
        out_specs=pl.BlockSpec((B, Cout, HW), lambda i: (i, 0, 0)),
        out_shape=jax.ShapeDtypeStruct((N, Cout, HW), jnp.float32),
        compiler_params=pltpu.CompilerParams(
            dimension_semantics=("parallel",)),     # batch blocks across TCs
        cost_estimate=cost,
    )(patches, wc, wg, w3, w1, vec, pool_mat, eh, ew)

    # output is already channel-major per batch element: free reshape to NCHW
    return out.reshape(N, Cout, Ho, Wo)


dcnv2_offset_attention = jax.jit(_dcnv2_offset_attention_impl,
                                 static_argnums=(2, 3))


# ----------------------------------------------------------------------------
# Deterministic parameter initialization (shapes follow the PyTorch __init__)
# ----------------------------------------------------------------------------
def init_params(key, in_channels, kernel_size, deformable_groups=1):
    C = deformable_groups * 3 * kernel_size * kernel_size
    ks = jax.random.split(key, 8)
    p = {}
    p["w_off"] = 0.1 * jax.random.normal(
        ks[0], (C, in_channels, kernel_size, kernel_size), jnp.float32)
    p["b_off"] = 0.1 * jax.random.normal(ks[1], (C,), jnp.float32)
    p["w_gap"] = 0.1 * jax.random.normal(ks[2], (C, C, 1, 1), jnp.float32)
    p["w_hw"] = 0.1 * jax.random.normal(ks[3], (C, C, 3, 1), jnp.float32)
    p["w_pw"] = 0.1 * jax.random.normal(ks[4], (C, C, 1, 1), jnp.float32)

    def bn(k):
        k1, k2, k3, k4 = jax.random.split(k, 4)
        gamma = 1.0 + 0.1 * jax.random.normal(k1, (C,), jnp.float32)
        beta = 0.1 * jax.random.normal(k2, (C,), jnp.float32)
        mean = 0.05 * jax.random.normal(k3, (C,), jnp.float32)
        var = 1.0 + 0.1 * jax.random.uniform(k4, (C,), jnp.float32)
        return (gamma, beta, mean, var)

    p["bn_gap"] = bn(ks[5])
    p["bn_hw"] = bn(ks[6])
    p["bn_pw"] = bn(ks[7])
    return p


# ----------------------------------------------------------------------------
# Pure-JAX reference (mirrors the PyTorch forward) used for verification.
# ----------------------------------------------------------------------------
def reference_forward(x_nchw, params, kernel_size, stride):
    pad = kernel_size // 2
    dn = ("NCHW", "OIHW", "NCHW")
    eps = 1e-5

    y = lax.conv_general_dilated(
        x_nchw, params["w_off"], (stride, stride), [(pad, pad), (pad, pad)],
        dimension_numbers=dn, precision=lax.Precision.HIGHEST)
    y = y + params["b_off"][None, :, None, None]

    N, C, H, W = y.shape

    def bn(t, prm):
        gamma, beta, mean, var = prm
        scale = gamma / jnp.sqrt(var + eps)
        shift = beta - mean * scale
        return t * scale[None, :, None, None] + shift[None, :, None, None]

    def silu(t):
        return t * jax.nn.sigmoid(t)

    pool_h = jnp.mean(y, axis=3, keepdims=True)                     # (N,C,H,1)
    pool_w = jnp.transpose(jnp.mean(y, axis=2, keepdims=True),
                           (0, 1, 3, 2))                            # (N,C,W,1)
    gap = jnp.mean(y, axis=(2, 3), keepdims=True)                   # (N,C,1,1)

    g = lax.conv_general_dilated(gap, params["w_gap"], (1, 1), [(0, 0), (0, 0)],
                                 dimension_numbers=dn,
                                 precision=lax.Precision.HIGHEST)
    g = silu(bn(g, params["bn_gap"]))

    hw = jnp.concatenate([pool_h, pool_w], axis=2)                  # (N,C,T,1)
    hw2 = lax.conv_general_dilated(hw, params["w_hw"], (1, 1),
                                   [(1, 1), (0, 0)], dimension_numbers=dn,
                                   precision=lax.Precision.HIGHEST)
    hw2 = silu(bn(hw2, params["bn_hw"]))

    wgt = lax.conv_general_dilated(hw2, params["w_pw"], (1, 1),
                                   [(0, 0), (0, 0)], dimension_numbers=dn,
                                   precision=lax.Precision.HIGHEST)
    wgt = jax.nn.sigmoid(silu(bn(wgt, params["bn_pw"])))

    ph = hw2[:, :, :H] * wgt[:, :, :H]
    pw = hw2[:, :, H:] * wgt[:, :, H:]
    ch = g * jnp.mean(wgt, axis=2, keepdims=True)

    out = (y * jax.nn.sigmoid(ph)
           * jnp.transpose(jax.nn.sigmoid(pw), (0, 1, 3, 2))
           * jax.nn.sigmoid(ch) + y)
    return out


if __name__ == "__main__":
    in_channels, kernel_size, stride = 4, 3, 1      # out_channel = 1*3*3*3 = 27
    key = jax.random.PRNGKey(0)
    kx, kp = jax.random.split(key)

    x = jax.random.normal(kx, (2, in_channels, 16, 16), jnp.float32)   # NCHW
    params = init_params(kp, in_channels, kernel_size)

    out = dcnv2_offset_attention(x, params, kernel_size, stride)
    out = jax.block_until_ready(out)

    ref = reference_forward(x, params, kernel_size, stride)
    assert out.shape == ref.shape, (out.shape, ref.shape)
    err = float(jnp.max(jnp.abs(out - ref)))
    assert err < 1e-3, f"max abs error too large: {err}"
    print("KERNEL_OK")
</pallas_src>

<mosaic_0001>
module attributes {stable_mosaic.version = 11 : i64} {
  func.func @_fused_kernel(%arg0: i32, %arg1: memref<36x256xf32, #tpu.memory_space<vmem>>, %arg2: memref<27x36xf32, #tpu.memory_space<vmem>>, %arg3: memref<27x27xf32, #tpu.memory_space<vmem>>, %arg4: memref<3x27x27xf32, #tpu.memory_space<vmem>>, %arg5: memref<27x27xf32, #tpu.memory_space<vmem>>, %arg6: memref<27x8xf32, #tpu.memory_space<vmem>>, %arg7: memref<256x33xf32, #tpu.memory_space<vmem>>, %arg8: memref<16x256xf32, #tpu.memory_space<vmem>>, %arg9: memref<16x256xf32, #tpu.memory_space<vmem>>, %arg10: memref<1x27x256xf32, #tpu.memory_space<vmem>>) attributes {dimension_semantics = [#tpu.dimension_semantics<parallel>], iteration_bounds = array<i64: 2>, scalar_prefetch = 0 : i64, scratch_operands = 0 : i64, tpu.core_type = #tpu.core_type<tc>, window_params = [{transform_indices = @transform_0, window_bounds = array<i64: 36, 256>}, {pipeline_mode = #tpu.pipeline_mode<synchronous>, transform_indices = @transform_1, window_bounds = array<i64: 27, 36>}, {pipeline_mode = #tpu.pipeline_mode<synchronous>, transform_indices = @transform_2, window_bounds = array<i64: 27, 27>}, {pipeline_mode = #tpu.pipeline_mode<synchronous>, transform_indices = @transform_3, window_bounds = array<i64: 3, 27, 27>}, {pipeline_mode = #tpu.pipeline_mode<synchronous>, transform_indices = @transform_4, window_bounds = array<i64: 27, 27>}, {pipeline_mode = #tpu.pipeline_mode<synchronous>, transform_indices = @transform_5, window_bounds = array<i64: 27, 8>}, {pipeline_mode = #tpu.pipeline_mode<synchronous>, transform_indices = @transform_6, window_bounds = array<i64: 256, 33>}, {pipeline_mode = #tpu.pipeline_mode<synchronous>, transform_indices = @transform_7, window_bounds = array<i64: 16, 256>}, {pipeline_mode = #tpu.pipeline_mode<synchronous>, transform_indices = @transform_8, window_bounds = array<i64: 16, 256>}, {transform_indices = @transform_9, window_bounds = array<i64: 1, 27, 256>}]} {
    %c0 = arith.constant 0 : index
    %c0_0 = arith.constant 0 : index
    %0 = vector.load %arg6[%c0, %c0_0] : memref<27x8xf32, #tpu.memory_space<vmem>>, vector<27x1xf32>
    %c0_1 = arith.constant 0 : index
    %c1 = arith.constant 1 : index
    %1 = vector.load %arg6[%c0_1, %c1] : memref<27x8xf32, #tpu.memory_space<vmem>>, vector<27x1xf32>
    %c0_2 = arith.constant 0 : index
    %c2 = arith.constant 2 : index
    %2 = vector.load %arg6[%c0_2, %c2] : memref<27x8xf32, #tpu.memory_space<vmem>>, vector<27x1xf32>
    %c0_3 = arith.constant 0 : index
    %c3 = arith.constant 3 : index
    %3 = vector.load %arg6[%c0_3, %c3] : memref<27x8xf32, #tpu.memory_space<vmem>>, vector<27x1xf32>
    %c0_4 = arith.constant 0 : index
    %c4 = arith.constant 4 : index
    %4 = vector.load %arg6[%c0_4, %c4] : memref<27x8xf32, #tpu.memory_space<vmem>>, vector<27x1xf32>
    %c0_5 = arith.constant 0 : index
    %c5 = arith.constant 5 : index
    %5 = vector.load %arg6[%c0_5, %c5] : memref<27x8xf32, #tpu.memory_space<vmem>>, vector<27x1xf32>
    %c0_6 = arith.constant 0 : index
    %c6 = arith.constant 6 : index
    %6 = vector.load %arg6[%c0_6, %c6] : memref<27x8xf32, #tpu.memory_space<vmem>>, vector<27x1xf32>
    %c0_7 = arith.constant 0 : index
    %c0_8 = arith.constant 0 : index
    %7 = vector.load %arg2[%c0_7, %c0_8] : memref<27x36xf32, #tpu.memory_space<vmem>>, vector<27x36xf32>
    %c0_9 = arith.constant 0 : index
    %c0_10 = arith.constant 0 : index
    %8 = vector.load %arg1[%c0_9, %c0_10] : memref<36x256xf32, #tpu.memory_space<vmem>>, vector<36x256xf32>
    %cst = arith.constant dense<0.000000e+00> : vector<27x256xf32>
    %9 = tpu.matmul %7, %8, %cst {dimension_numbers = #tpu.dot_dimension_numbers<[1], [0], [0], [1], [0, 0, 1, 1], [], []>, precision = #tpu.contract_precision<fp32>} : vector<27x36xf32>, vector<36x256xf32>, vector<27x256xf32> -> vector<27x256xf32>
    %10 = vector.broadcast %0 : vector<27x1xf32> to vector<27x256xf32>
    %11 = arith.addf %9, %10 : vector<27x256xf32>
    %c0_11 = arith.constant 0 : index
    %c0_12 = arith.constant 0 : index
    %12 = vector.load %arg7[%c0_11, %c0_12] : memref<256x33xf32, #tpu.memory_space<vmem>>, vector<256x33xf32>
    %c0_13 = arith.constant 0 : index
    %c0_14 = arith.constant 0 : index
    %13 = vector.load %arg8[%c0_13, %c0_14] : memref<16x256xf32, #tpu.memory_space<vmem>>, vector<16x256xf32>
    %c0_15 = arith.constant 0 : index
    %c0_16 = arith.constant 0 : index
    %14 = vector.load %arg9[%c0_15, %c0_16] : memref<16x256xf32, #tpu.memory_space<vmem>>, vector<16x256xf32>
    %cst_17 = arith.constant dense<0.000000e+00> : vector<27x33xf32>
    %15 = tpu.matmul %11, %12, %cst_17 {dimension_numbers = #tpu.dot_dimension_numbers<[1], [0], [0], [1], [0, 0, 1, 1], [], []>, precision = #tpu.contract_precision<fp32>} : vector<27x256xf32>, vector<256x33xf32>, vector<27x33xf32> -> vector<27x33xf32>
    %16 = vector.extract_strided_slice %15 {offsets = [0, 0], sizes = [27, 32], strides = [1, 1]} : vector<27x33xf32> to vector<27x32xf32>
    %17 = vector.extract_strided_slice %15 {offsets = [0, 32], sizes = [27, 1], strides = [1, 1]} : vector<27x33xf32> to vector<27x1xf32>
    %c0_18 = arith.constant 0 : index
    %c0_19 = arith.constant 0 : index
    %18 = vector.load %arg3[%c0_18, %c0_19] : memref<27x27xf32, #tpu.memory_space<vmem>>, vector<27x27xf32>
    %cst_20 = arith.constant dense<0.000000e+00> : vector<27x1xf32>
    %19 = tpu.matmul %18, %17, %cst_20 {dimension_numbers = #tpu.dot_dimension_numbers<[1], [0], [0], [1], [0, 0, 1, 1], [], []>, precision = #tpu.contract_precision<fp32>} : vector<27x27xf32>, vector<27x1xf32>, vector<27x1xf32> -> vector<27x1xf32>
    %20 = arith.mulf %19, %1 : vector<27x1xf32>
    %21 = arith.addf %20, %2 : vector<27x1xf32>
    %22 = arith.negf %21 : vector<27x1xf32>
    %23 = math.exp %22 : vector<27x1xf32>
    %cst_21 = arith.constant 1.000000e+00 : f32
    %24 = vector.broadcast %cst_21 : f32 to vector<27x1xf32>
    %25 = arith.addf %24, %23 : vector<27x1xf32>
    %26 = arith.divf %24, %25 : vector<27x1xf32>
    %27 = arith.mulf %21, %26 : vector<27x1xf32>
    %cst_22 = arith.constant 0.000000e+00 : f32
    %28 = vector.broadcast %cst_22 : f32 to vector<27x1xf32>
    %29 = vector.extract_strided_slice %16 {offsets = [0, 0], sizes = [27, 31], strides = [1, 1]} : vector<27x32xf32> to vector<27x31xf32>
    %30 = tpu.concatenate %28, %29 in 1 : vector<27x1xf32>, vector<27x31xf32> -> vector<27x32xf32>
    %31 = vector.extract_strided_slice %16 {offsets = [0, 1], sizes = [27, 31], strides = [1, 1]} : vector<27x32xf32> to vector<27x31xf32>
    %32 = tpu.concatenate %31, %28 in 1 : vector<27x31xf32>, vector<27x1xf32> -> vector<27x32xf32>
    %c0_23 = arith.constant 0 : index
    %c0_24 = arith.constant 0 : index
    %c0_25 = arith.constant 0 : index
    %33 = vector.load %arg4[%c0_23, %c0_24, %c0_25] : memref<3x27x27xf32, #tpu.memory_space<vmem>>, vector<1x27x27xf32>
    %34 = vector.shape_cast %33 : vector<1x27x27xf32> to vector<27x27xf32>
    %cst_26 = arith.constant dense<0.000000e+00> : vector<27x32xf32>
    %35 = tpu.matmul %34, %30, %cst_26 {dimension_numbers = #tpu.dot_dimension_numbers<[1], [0], [0], [1], [0, 0, 1, 1], [], []>, precision = #tpu.contract_precision<fp32>} : vector<27x27xf32>, vector<27x32xf32>, vector<27x32xf32> -> vector<27x32xf32>
    %c1_27 = arith.constant 1 : index
    %c0_28 = arith.constant 0 : index
    %c0_29 = arith.constant 0 : index
    %36 = vector.load %arg4[%c1_27, %c0_28, %c0_29] : memref<3x27x27xf32, #tpu.memory_space<vmem>>, vector<1x27x27xf32>
    %37 = vector.shape_cast %36 : vector<1x27x27xf32> to vector<27x27xf32>
    %cst_30 = arith.constant dense<0.000000e+00> : vector<27x32xf32>
    %38 = tpu.matmul %37, %16, %cst_30 {dimension_numbers = #tpu.dot_dimension_numbers<[1], [0], [0], [1], [0, 0, 1, 1], [], []>, precision = #tpu.contract_precision<fp32>} : vector<27x27xf32>, vector<27x32xf32>, vector<27x32xf32> -> vector<27x32xf32>
    %39 = arith.addf %35, %38 : vector<27x32xf32>
    %c2_31 = arith.constant 2 : index
    %c0_32 = arith.constant 0 : index
    %c0_33 = arith.constant 0 : index
    %40 = vector.load %arg4[%c2_31, %c0_32, %c0_33] : memref<3x27x27xf32, #tpu.memory_space<vmem>>, vector<1x27x27xf32>
    %41 = vector.shape_cast %40 : vector<1x27x27xf32> to vector<27x27xf32>
    %cst_34 = arith.constant dense<0.000000e+00> : vector<27x32xf32>
    %42 = tpu.matmul %41, %32, %cst_34 {dimension_numbers = #tpu.dot_dimension_numbers<[1], [0], [0], [1], [0, 0, 1, 1], [], []>, precision = #tpu.contract_precision<fp32>} : vector<27x27xf32>, vector<27x32xf32>, vector<27x32xf32> -> vector<27x32xf32>
    %43 = arith.addf %39, %42 : vector<27x32xf32>
    %44 = vector.broadcast %3 : vector<27x1xf32> to vector<27x32xf32>
    %45 = arith.mulf %43, %44 : vector<27x32xf32>
    %46 = vector.broadcast %4 : vector<27x1xf32> to vector<27x32xf32>
    %47 = arith.addf %45, %46 : vector<27x32xf32>
    %48 = arith.negf %47 : vector<27x32xf32>
    %49 = math.exp %48 : vector<27x32xf32>
    %cst_35 = arith.constant 1.000000e+00 : f32
    %50 = vector.broadcast %cst_35 : f32 to vector<27x32xf32>
    %51 = arith.addf %50, %49 : vector<27x32xf32>
    %52 = arith.divf %50, %51 : vector<27x32xf32>
    %53 = arith.mulf %47, %52 : vector<27x32xf32>
    %c0_36 = arith.constant 0 : index
    %c0_37 = arith.constant 0 : index
    %54 = vector.load %arg5[%c0_36, %c0_37] : memref<27x27xf32, #tpu.memory_space<vmem>>, vector<27x27xf32>
    %cst_38 = arith.constant dense<0.000000e+00> : vector<27x32xf32>
    %55 = tpu.matmul %54, %53, %cst_38 {dimension_numbers = #tpu.dot_dimension_numbers<[1], [0], [0], [1], [0, 0, 1, 1], [], []>, precision = #tpu.contract_precision<fp32>} : vector<27x27xf32>, vector<27x32xf32>, vector<27x32xf32> -> vector<27x32xf32>
    %56 = vector.broadcast %5 : vector<27x1xf32> to vector<27x32xf32>
    %57 = arith.mulf %55, %56 : vector<27x32xf32>
    %58 = vector.broadcast %6 : vector<27x1xf32> to vector<27x32xf32>
    %59 = arith.addf %57, %58 : vector<27x32xf32>
    %60 = arith.negf %59 : vector<27x32xf32>
    %61 = math.exp %60 : vector<27x32xf32>
    %cst_39 = arith.constant 1.000000e+00 : f32
    %62 = vector.broadcast %cst_39 : f32 to vector<27x32xf32>
    %63 = arith.addf %62, %61 : vector<27x32xf32>
    %64 = arith.divf %62, %63 : vector<27x32xf32>
    %65 = arith.mulf %59, %64 : vector<27x32xf32>
    %66 = arith.negf %65 : vector<27x32xf32>
    %67 = math.exp %66 : vector<27x32xf32>
    %cst_40 = arith.constant 1.000000e+00 : f32
    %68 = vector.broadcast %cst_40 : f32 to vector<27x32xf32>
    %69 = arith.addf %68, %67 : vector<27x32xf32>
    %70 = arith.divf %68, %69 : vector<27x32xf32>
    %71 = vector.extract_strided_slice %53 {offsets = [0, 0], sizes = [27, 16], strides = [1, 1]} : vector<27x32xf32> to vector<27x16xf32>
    %72 = vector.extract_strided_slice %70 {offsets = [0, 0], sizes = [27, 16], strides = [1, 1]} : vector<27x32xf32> to vector<27x16xf32>
    %73 = arith.mulf %71, %72 : vector<27x16xf32>
    %74 = vector.extract_strided_slice %53 {offsets = [0, 16], sizes = [27, 16], strides = [1, 1]} : vector<27x32xf32> to vector<27x16xf32>
    %75 = vector.extract_strided_slice %70 {offsets = [0, 16], sizes = [27, 16], strides = [1, 1]} : vector<27x32xf32> to vector<27x16xf32>
    %76 = arith.mulf %74, %75 : vector<27x16xf32>
    %cst_41 = arith.constant dense<0.000000e+00> : vector<27xf32>
    %77 = vector.multi_reduction <add>, %70, %cst_41 [1] : vector<27x32xf32> to vector<27xf32>
    %78 = vector.shape_cast %77 : vector<27xf32> to vector<27x1xf32>
    %cst_42 = arith.constant 3.200000e+01 : f32
    %79 = vector.broadcast %cst_42 : f32 to vector<27x1xf32>
    %80 = arith.divf %78, %79 : vector<27x1xf32>
    %81 = arith.mulf %27, %80 : vector<27x1xf32>
    %82 = arith.negf %73 : vector<27x16xf32>
    %83 = math.exp %82 : vector<27x16xf32>
    %cst_43 = arith.constant 1.000000e+00 : f32
    %84 = vector.broadcast %cst_43 : f32 to vector<27x16xf32>
    %85 = arith.addf %84, %83 : vector<27x16xf32>
    %86 = arith.divf %84, %85 : vector<27x16xf32>
    %87 = arith.negf %81 : vector<27x1xf32>
    %88 = math.exp %87 : vector<27x1xf32>
    %cst_44 = arith.constant 1.000000e+00 : f32
    %89 = vector.broadcast %cst_44 : f32 to vector<27x1xf32>
    %90 = arith.addf %89, %88 : vector<27x1xf32>
    %91 = arith.divf %89, %90 : vector<27x1xf32>
    %92 = vector.broadcast %91 : vector<27x1xf32> to vector<27x16xf32>
    %93 = arith.mulf %86, %92 : vector<27x16xf32>
    %94 = arith.negf %76 : vector<27x16xf32>
    %95 = math.exp %94 : vector<27x16xf32>
    %cst_45 = arith.constant 1.000000e+00 : f32
    %96 = vector.broadcast %cst_45 : f32 to vector<27x16xf32>
    %97 = arith.addf %96, %95 : vector<27x16xf32>
    %98 = arith.divf %96, %97 : vector<27x16xf32>
    %cst_46 = arith.constant dense<0.000000e+00> : vector<27x256xf32>
    %99 = tpu.matmul %93, %13, %cst_46 {dimension_numbers = #tpu.dot_dimension_numbers<[1], [0], [0], [1], [0, 0, 1, 1], [], []>, precision = #tpu.contract_precision<fp32>} : vector<27x16xf32>, vector<16x256xf32>, vector<27x256xf32> -> vector<27x256xf32>
    %cst_47 = arith.constant dense<0.000000e+00> : vector<27x256xf32>
    %100 = tpu.matmul %98, %14, %cst_47 {dimension_numbers = #tpu.dot_dimension_numbers<[1], [0], [0], [1], [0, 0, 1, 1], [], []>, precision = #tpu.contract_precision<fp32>} : vector<27x16xf32>, vector<16x256xf32>, vector<27x256xf32> -> vector<27x256xf32>
    %101 = arith.mulf %99, %100 : vector<27x256xf32>
    %cst_48 = arith.constant 1.000000e+00 : f32
    %102 = vector.broadcast %cst_48 : f32 to vector<27x256xf32>
    %103 = arith.addf %101, %102 : vector<27x256xf32>
    %104 = arith.mulf %11, %103 : vector<27x256xf32>
    %c0_49 = arith.constant 0 : index
    %c0_50 = arith.constant 0 : index
    %c0_51 = arith.constant 0 : index
    %105 = vector.load %arg10[%c0_49, %c0_50, %c0_51] : memref<1x27x256xf32, #tpu.memory_space<vmem>>, vector<1x27x256xf32>
    %106 = vector.shape_cast %105 : vector<1x27x256xf32> to vector<27x256xf32>
    %107 = vector.shape_cast %104 : vector<27x256xf32> to vector<1x27x256xf32>
    tpu.vector_store %arg10[%c0_49, %c0_50, %c0_51], %107 {strides = array<i32>} : memref<1x27x256xf32, #tpu.memory_space<vmem>>, vector<1x27x256xf32>,
    return
  }
  func.func @transform_0(%arg0: i32) -> (i32, i32) {
    %c0_i32 = arith.constant 0 : i32
    %c0_i32_0 = arith.constant 0 : i32
    return %c0_i32, %arg0 : i32, i32
  }
  func.func @transform_1(%arg0: i32) -> (i32, i32) {
    %c0_i32 = arith.constant 0 : i32
    %c0_i32_0 = arith.constant 0 : i32
    %c0_i32_1 = arith.constant 0 : i32
    return %c0_i32, %c0_i32_0 : i32, i32
  }
  func.func @transform_2(%arg0: i32) -> (i32, i32) {
    %c0_i32 = arith.constant 0 : i32
    %c0_i32_0 = arith.constant 0 : i32
    %c0_i32_1 = arith.constant 0 : i32
    return %c0_i32, %c0_i32_0 : i32, i32
  }
  func.func @transform_3(%arg0: i32) -> (i32, i32, i32) {
    %c0_i32 = arith.constant 0 : i32
    %c0_i32_0 = arith.constant 0 : i32
    %c0_i32_1 = arith.constant 0 : i32
    %c0_i32_2 = arith.constant 0 : i32
    return %c0_i32, %c0_i32_0, %c0_i32_1 : i32, i32, i32
  }
  func.func @transform_4(%arg0: i32) -> (i32, i32) {
    %c0_i32 = arith.constant 0 : i32
    %c0_i32_0 = arith.constant 0 : i32
    %c0_i32_1 = arith.constant 0 : i32
    return %c0_i32, %c0_i32_0 : i32, i32
  }
  func.func @transform_5(%arg0: i32) -> (i32, i32) {
    %c0_i32 = arith.constant 0 : i32
    %c0_i32_0 = arith.constant 0 : i32
    %c0_i32_1 = arith.constant 0 : i32
    return %c0_i32, %c0_i32_0 : i32, i32
  }
  func.func @transform_6(%arg0: i32) -> (i32, i32) {
    %c0_i32 = arith.constant 0 : i32
    %c0_i32_0 = arith.constant 0 : i32
    %c0_i32_1 = arith.constant 0 : i32
    return %c0_i32, %c0_i32_0 : i32, i32
  }
  func.func @transform_7(%arg0: i32) -> (i32, i32) {
    %c0_i32 = arith.constant 0 : i32
    %c0_i32_0 = arith.constant 0 : i32
    %c0_i32_1 = arith.constant 0 : i32
    return %c0_i32, %c0_i32_0 : i32, i32
  }
  func.func @transform_8(%arg0: i32) -> (i32, i32) {
    %c0_i32 = arith.constant 0 : i32
    %c0_i32_0 = arith.constant 0 : i32
    %c0_i32_1 = arith.constant 0 : i32
    return %c0_i32, %c0_i32_0 : i32, i32
  }
  func.func @transform_9(%arg0: i32) -> (i32, i32, i32) {
    %c0_i32 = arith.constant 0 : i32
    %c0_i32_0 = arith.constant 0 : i32
    %c0_i32_1 = arith.constant 0 : i32
    return %arg0, %c0_i32, %c0_i32_0 : i32, i32, i32
  }
}

</mosaic_0001>

<bundles_post_ra>
// kernel: eq.29
= control target key start
LH: loop header
LB: loop body
LE: loop exit
PB: predicated region body
PF: predicated region fallthrough
CT: control target
= control target key end

     0   :  { %s7_s6 = smov 3  ;;  %s21_s9 = smov 3  ;;  %vm4_vm0 = vcmask 130048   ;;  %vm11_vm1 = vcmask 1048448   ;;  %vm18_vm2 = vcmask 917248   ;;  %vm25_vm3 = vcmask 786048   ;;  %s119_s0 = inlined_call_operand.vmem [shape: s32[16,16], index: 0, kind: input, shape index: {}]   ;;  %s120_s1 = inlined_call_operand.vmem [shape: s32[256], index: 1, kind: output, shape index: {}]  }
   0x1   :  { %v61_v0 = vld [vmem:[%s119_s0 + $0x7] ss:$8 sm:%s7_s6]   ;;  %s75_s10 = smov 112   ;;  %v63_v1 = vld [vmem:[%s119_s0 + $0x5] ss:$8 sm:%s21_s9]   ;;  %s14_s13 = smov 3 }
   0x2   :  { %9 = vrot.lane.b32.xlu0 %v61_v0, %s75_s10  ;;  %s76_s14 = smov 80   ;;  %v62_v2 = vld [vmem:[%s119_s0 + $0x6] ss:$8 sm:%s14_s13]   ;;  %s28_s17 = smov 3  ;;  %vm32_vm4 = vcmask 654848   ;;  %vm39_vm5 = vcmask 523648  }
   0x3   :  { %23 = vrot.lane.b32.xlu1 %v63_v1, %s76_s14  ;;  %v64_v3 = vld [vmem:[%s119_s0 + $0x4] ss:$8 sm:%s28_s17]   ;;  %s35_s20 = smov 3  ;;  %s42_s21 = smov 3  ;;  %vm46_vm6 = vcmask 392448   ;;  %vm53_vm7 = vcmask 261248  }
   0x4   :  { %s77_s22 = smov 96   ;;  %s78_s23 = smov 64   ;;  %v65_v4 = vld [vmem:[%s119_s0 + $0x3] ss:$8 sm:%s35_s20]   ;;  %v66_v5 = vld [vmem:[%s119_s0 + $0x2] ss:$8 sm:%s42_s21]  }
   0x5   :  { %s2_s26 = smov 3  ;;  %s49_s29 = smov 3 }
   0x6   :  { %16 = vrot.lane.b32.xlu0 %v62_v2, %s77_s22  ;;  %v3_v6 = vld [vmem:[%s119_s0] ss:$8 sm:%s2_s26]   ;;  %s79_s3 = smov 48   ;;  %s80_s4 = smov 32  }
   0x7   :  { %30 = vrot.lane.b32.xlu1 %v64_v3, %s78_s23  ;;  %5 = vst.msk [vmem:[#allocation0] sm:$0x3] %vm4_vm0, %v3_v6   ;;  %v67_v7 = vld [vmem:[%s119_s0 + $0x1] ss:$8 sm:%s49_s29]   ;;  %s81_s0 = smov 16  }
   0xa   :  { %37 = vrot.lane.b32.xlu0 %v65_v4, %s79_s3 }
   0xb   :  { %44 = vrot.lane.b32.xlu1 %v66_v5, %s80_s4 }
   0xe   :  { %51 = vrot.lane.b32.xlu0 %v67_v7, %s81_s0 }
  0x74   :  { %v10_v8 = vpop.permute.xlu0 %9  }
  0x75   :  { %12 = vst.msk [vmem:[#allocation0] sm:$0x3] %vm11_vm1, %v10_v8   ;;  %v24_v9 = vpop.permute.xlu1 %23  }
  0x78   :  { %v17_v10 = vpop.permute.xlu0 %16  }
  0x79   :  { %19 = vst.msk [vmem:[#allocation0] sm:$0x3] %vm18_vm2, %v17_v10   ;;  %v31_v11 = vpop.permute.xlu1 %30  }
  0x7a   :  { %26 = vst.msk [vmem:[#allocation0] sm:$0x3] %vm25_vm3, %v24_v9  }
  0x7b   :  { %33 = vst.msk [vmem:[#allocation0] sm:$0x3] %vm32_vm4, %v31_v11  }
  0x7c   :  { %v38_v12 = vpop.permute.xlu0 %37  }
  0x7d   :  { %40 = vst.msk [vmem:[#allocation0] sm:$0x3] %vm39_vm5, %v38_v12   ;;  %v45_v13 = vpop.permute.xlu1 %44  }
  0x7e   :  { %47 = vst.msk [vmem:[#allocation0] sm:$0x3] %vm46_vm6, %v45_v13  }
  0x80   :  { %v52_v14 = vpop.permute.xlu0 %51  }
  0x81   :  { %54 = vst.msk [vmem:[#allocation0] sm:$0x3] %vm53_vm7, %v52_v14  }
  0x88   :  { %v58_v15 = vld [vmem:[#allocation0] sm:$0x3] }
  0x89   :  { %60 = vst [vmem:[%s120_s1] sm:$0x3] %v58_v15 }

// kernel: _dcnv2_offset_attention_impl.1
= control target key start
LH: loop header
LB: loop body
LE: loop exit
PB: predicated region body
PF: predicated region fallthrough
CT: control target
= control target key end

     0   :  { %s9130_s30 = smov 0   ;;  %s9132_s10 = smov 0   ;;  %s11200_s0 = inlined_call_operand.vmem [shape: f32[36,512], index: 0, kind: input, shape index: {}]   ;;  %s11201_s1 = inlined_call_operand.vmem [shape: f32[27,36], index: 1, kind: input, shape index: {}]   ;;  %s11202_s2 = inlined_call_operand.vmem [shape: f32[27,27], index: 2, kind: input, shape index: {}]   ;;  %s11203_s3 = inlined_call_operand.vmem [shape: f32[3,27,27], index: 3, kind: input, shape index: {}]   ;;  %s11204_s4 = inlined_call_operand.vmem [shape: f32[27,27], index: 4, kind: input, shape index: {}]   ;;  %s11205_s5 = inlined_call_operand.vmem [shape: f32[27,8], index: 5, kind: input, shape index: {}]   ;;  %s11206_s6 = inlined_call_operand.vmem [shape: f32[256,33], index: 6, kind: input, shape index: {}]   ;;  %s11207_s7 = inlined_call_operand.vmem [shape: f32[16,256], index: 7, kind: input, shape index: {}]   ;;  %s11208_s8 = inlined_call_operand.vmem [shape: f32[16,256], index: 8, kind: input, shape index: {}]   ;;  %s11209_s9 = inlined_call_operand.vmem [shape: f32[2,27,256], index: 9, kind: output, shape index: {}]  }
   0x1   :  { %s9134_s11 = smov 0  }
   0x2 LB: > { %s7157_s12 = sadd.s32 4294967295, %s9067_s11   ;;  %s9147_s13 = sadd.s32 1, %s9067_s11   ;;  %s9067_s11 = sphi %s9134_s11, %s11489_s11   ;;  %s9063_s10 = sphi %s9132_s10, %s11488_s10   ;;  %s9059_s30 = sphi %s9130_s30, %s11487_s30  }
   0x3   : > { %s23_s14 = ssub.s32 %s9067_s11, %s9147_s13  ;;  %s26_s15 = sadd.s32 1, %s9063_s10 }
   0x4   : > { %p24_p0 = scmp.eq.s32.totalorder %s23_s14, 0  ;;  %p33_p1 = scmp.ne.s32.totalorder %s9063_s10, %s9059_s30 }
   0x5   : > { %p34_p2 = scmp.eq.s32.totalorder %s9067_s11, 0  ;;  %p7160_p4 = scmp.ge.s32.totalorder %s9067_s11, 2 }
   0x6   : > { %s9156_s16 = scalar_select %p24_p0, %s9063_s10, %s26_s15  }
   0x7   : > { %p35_p3 = por %p34_p2, %p33_p1  ;;  %277 = sbr.rel (%p7160_p4) target bundleno = 23 (0x17), region = 48 }
   0xe   : > { %280 = sbr.rel (!%p35_p3) target bundleno = 23 (0x17), region = 52  ;;  %s282_s17 = sand.u32 (%p35_p3), 1, %s9063_s10  }
   0xf   : > { %s7200_s18 = sshll.u32 (%p35_p3), %s9067_s11, 4  ;;  %s8892_s19 = smul.u32 (%p35_p3), 80, %s282_s17 }
  0x10   : > { %s287_s22 = scalar_lea.vmem (%p35_p3), %s11200_s0, %s7200_s18 }
  0x11   : > { %v300_v0 = vld [vmem:[%s287_s22] sm:$0xff] (%p35_p3)  ;;  %v302_v1 = vld [vmem:[%s287_s22 + $0x8] sm:$0xff] (%p35_p3)  ;;  %s284_s23 = scalar_lea.vmem (%p35_p3), [#allocation2], %s8892_s19 }
  0x12   : > { %v304_v2 = vld [vmem:[%s287_s22 + $0x20] sm:$0xff] (%p35_p3)  ;;  %v306_v3 = vld [vmem:[%s287_s22 + $0x28] sm:$0xff] (%p35_p3)  ;;  %301 = vst [vmem:[%s284_s23] sm:$0xff] (%p35_p3), %v300_v0  ;;  %303 = vst [vmem:[%s284_s23 + $0x8] sm:$0xff] (%p35_p3), %v302_v1 }
  0x13   : > { %v308_v4 = vld [vmem:[%s287_s22 + $0x40] sm:$0xff] (%p35_p3)  ;;  %v310_v5 = vld [vmem:[%s287_s22 + $0x48] sm:$0xff] (%p35_p3)  ;;  %305 = vst [vmem:[%s284_s23 + $0x10] sm:$0xff] (%p35_p3), %v304_v2  ;;  %307 = vst [vmem:[%s284_s23 + $0x18] sm:$0xff] (%p35_p3), %v306_v3 }
  0x14   : > { %309 = vst [vmem:[%s284_s23 + $0x20] sm:$0xff] (%p35_p3), %v308_v4  ;;  %311 = vst [vmem:[%s284_s23 + $0x28] sm:$0xff] (%p35_p3), %v310_v5  ;;  %v312_v6 = vld [vmem:[%s287_s22 + $0x60] sm:$0xff] (%p35_p3)  ;;  %v314_v7 = vld [vmem:[%s287_s22 + $0x68] sm:$0xff] (%p35_p3) }
  0x15   : > { %v316_v8 = vld [vmem:[%s287_s22 + $0x80] sm:$0xff]  ;;  %313 = vst [vmem:[%s284_s23 + $0x30] sm:$0xff] %v312_v6  ;;  %315 = vst [vmem:[%s284_s23 + $0x38] sm:$0xff] %v314_v7  ;;  %v318_v9 = vld [vmem:[%s287_s22 + $0x88] sm:$0xff] }
  0x16   : > { %317 = vst [vmem:[%s284_s23 + $0x40] sm:$0xff] %v316_v8  ;;  %319 = vst [vmem:[%s284_s23 + $0x48] sm:$0xff] %v318_v9 }
  0x17 PF: > { %p7163_p5 = scmp.ge.s32.totalorder %s9067_s11, 1  ;;  %p324_p6 = scmp.lt.s32.totalorder %s9067_s11, 3 }
  0x19   : > { %p325_p7 = pnand %p7163_p5, %p324_p6 }
  0x1b   : > { %328 = sbr.rel (%p325_p7) target bundleno = 2134 (0x856), region = 75 }
  0x22   : > { %s331_s24 = sand.u32 1, %s9059_s30   ;;  %v376_v10 = vld [vmem:[%s11201_s1] sm:$0xff]  ;;  %vm410_vm0 = vcmask 293888   ;;  %v377_v11 = vld [vmem:[%s11201_s1 + $0x8] sm:$0xff]  ;;  %v11226_v12 = vmov 0.0   ;;  %v378_v15 = vld [vmem:[%s11201_s1 + $0x10] sm:$0xff] }
  0x23   : > { %s8893_s29 = smul.u32 80, %s331_s24  ;;  %504 = vmatprep.mubr.f32.mxu0 %v11226_v12  ;;  %v412_v13 = vsel %vm410_vm0, %v376_v10, 0  ;;  %v415_v14 = vsel %vm410_vm0, %v377_v11, 0  ;;  %v379_v16 = vld [vmem:[%s11201_s1 + $0x18] sm:$0x7]  ;;  %v418_v19 = vsel %vm410_vm0, %v378_v15, 0 }
  0x24   : > { %v9180_v17 = vand.u32 4294901760, %v412_v13  ;;  %v9182_v18 = vand.u32 4294901760, %v415_v14  ;;  %v9184_v20 = vsel %vm410_vm0, %v379_v16, 0  ;;  %v372_v21 = vld [vmem:[%s11205_s5] sm:$0xff]  ;;  %v9189_v22 = vand.u32 4294901760, %v418_v19  ;;  %v374_v23 = vld [vmem:[%s11205_s5 + $0x10] sm:$0xff] }
  0x25   : > { %s9194_s22 = scalar_lea.vmem [#allocation2], %s8893_s29  ;;  %vm423_vm1 = vcmask 1043456   ;;  %v9206_v29 = vand.u32 4294901760, %v9184_v20  ;;  %v11210_v30 = vmov 0   ;;  %v373_v31 = vld [vmem:[%s11205_s5 + $0x8] sm:$0xff]  ;;  %vm2235_vm2 = vcmask 220160  }
  0x26   : > { %v381_v24 = vld [vmem:[%s9194_s22 + $0x8] sm:$0xff]  ;;  %v383_v25 = vld [vmem:[%s9194_s22 + $0x18] sm:$0xff]  ;;  %v380_v26 = vld [vmem:[%s9194_s22] sm:$0xff]  ;;  %v9200_v27 = vsub.f32 %v412_v13, %v9180_v17  ;;  %v9203_v28 = vsub.f32 %v415_v14, %v9182_v18  ;;  %8929 = vset.pattern.permute.xlu0 %v11210_v30  ;;  %8930 = vset.pattern.permute.xlu1 %v11210_v30  ;;  %v9217_v38 = vsub.f32 %v418_v19, %v9189_v22  ;;  %s9071_s19 = smov 1   ;;  %vm2248_vm3 = vcmask 1042432   ;;  %s9072_s20 = smov 127  }
  0x27   : > { %v430_v32 = vand.u32 4294901760, %v381_v24  ;;  %v434_v33 = vand.u32 4294901760, %v383_v25  ;;  %v382_v34 = vld [vmem:[%s9194_s22 + $0x10] sm:$0xff]  ;;  %v432_v35 = vand.u32 4294901760, %v380_v26  ;;  %v385_v36 = vld [vmem:[%s9194_s22 + $0x28] sm:$0xff]  ;;  %v387_v37 = vld [vmem:[%s9194_s22 + $0x38] sm:$0xff]  ;;  %392 = vperm.xlu0 %8929, %v372_v21   ;;  %402 = vperm.xlu1 %8930, %v374_v23  }
  0x28   : > { %v436_v39 = vand.u32 4294901760, %v382_v34  ;;  %v438_v40 = vand.u32 4294901760, %v385_v36  ;;  %v442_v41 = vand.u32 4294901760, %v387_v37  ;;  %v384_v42 = vld [vmem:[%s9194_s22 + $0x20] sm:$0xff]  ;;  %v386_v43 = vld [vmem:[%s9194_s22 + $0x30] sm:$0xff]  ;;  %v11219_v44 = vand.u32 4294901760, %v9200_v27 }
  0x29   : > { %v9222_v45 = vpack.c.bf16 %v434_v33, %v430_v32  ;;  %v9224_v46 = vsub.f32 %v381_v24, %v430_v32  ;;  %v9226_v47 = vsub.f32 %v383_v25, %v434_v33  ;;  %v9228_v48 = vsub.f32 %v380_v26, %v432_v35  ;;  %v389_v49 = vld [vmem:[%s9194_s22 + $0x48] sm:$0xf]  ;;  %v388_v50 = vld [vmem:[%s9194_s22 + $0x40] sm:$0xf]  ;;  %s9073_s23 = smov 96   ;;  %s9078_s26 = smov 126  }
  0x2a   : > { %v375_v51 = vld [vmem:[%s11205_s5 + $0x18] sm:$0x7]  ;;  %v9235_v52 = vpack.c.bf16 %v436_v39, %v432_v35  ;;  %v9237_v53 = vsub.f32 %v382_v34, %v436_v39  ;;  %v9239_v54 = vpack.c.bf16 %v442_v41, %v438_v40  ;;  %v9241_v55 = vsub.f32 %v385_v36, %v438_v40  ;;  %v9371_v30 = vld [vmem:[%s11206_s6 + $0x20] sm:$0xff]  ;;  %s9079_s25 = smov 112   ;;  %p367_p8 = scmp.lt.s32.totalorder %s7157_s12, 1 }
  0x2b   : > { %8127 = vmatprep.subr.bf16.mxu0 %v9222_v45  ;;  %v9244_v56 = vsub.f32 %v387_v37, %v442_v41  ;;  %v440_v57 = vand.u32 4294901760, %v384_v42  ;;  %v444_v58 = vand.u32 4294901760, %v386_v43  ;;  %v428_v59 = vsel %vm423_vm1, %v389_v49, 0  ;;  %397 = vperm.xlu0 %8929, %v373_v31  }
  0x2c   : > { %8129 = vmatpush1.bf16.msra.mxu0 %v9235_v52  ;;  %v9248_v60 = vand.u32 4294901760, %v428_v59  ;;  %v425_v61 = vsel %vm423_vm1, %v388_v50, 0  ;;  %v508_v62 = vsub.f32 %v9200_v27, %v11219_v44  ;;  %v11225_v63 = vand.u32 4294901760, %v9224_v46  ;;  %407 = vperm.xlu1 %8930, %v375_v51   ;;  %s11491_s12 = smov (!%p367_p8, %s7157_s12), 1 }
  0x2d   : > { %8131 = vmatprep.subr.bf16.mxu0 %v9239_v54  ;;  %v9256_v0 = vpack.c.bf16 %v444_v58, %v440_v57  ;;  %v9258_v1 = vsub.f32 %v384_v42, %v440_v57  ;;  %v9260_v2 = vsub.f32 %v386_v43, %v444_v58  ;;  %v9262_v3 = vand.u32 4294901760, %v425_v61  ;;  %s7201_s17 = sshll.u32 %s11491_s12, 6 }
  0x2e   : > { %v509_v4 = vand.u32 4294901760, %v508_v62  ;;  %v552_v5 = vsub.f32 %v9224_v46, %v11225_v63  ;;  %v11224_v6 = vand.u32 4294901760, %v9226_v47  ;;  %v11223_v7 = vand.u32 4294901760, %v9228_v48  ;;  %s11172_s21 = scalar_lea.vmem %s11209_s9, %s7201_s17 }
  0x2f   : > { %v9270_v8 = vsub.f32 %v425_v61, %v9262_v3  ;;  %v11222_v9 = vand.u32 4294901760, %v9237_v53  ;;  %v11216_v10 = vand.u32 4294901760, %v9203_v28  ;;  %v11221_v11 = vand.u32 4294901760, %v9241_v55 }
  0x30   : > { %8133 = vmatpush1.bf16.msra.mxu0 %v9256_v0  ;;  %v553_v13 = vand.u32 4294901760, %v552_v5  ;;  %v564_v14 = vsub.f32 %v9226_v47, %v11224_v6  ;;  %v558_v15 = vsub.f32 %v9228_v48, %v11223_v7  ;;  %v11220_v16 = vand.u32 4294901760, %v9244_v56  ;;  %v1155_v7 = vld [vmem:[%s11206_s6 + $0x48] sm:$0xff]  ;;  %v1172_v6 = vld [vmem:[%s11206_s6 + $0xd0] sm:$0xff] }
  0x31   : > { %447 = vmatprep.subr.mxu0 %v9248_v60  ;;  %v570_v19 = vsub.f32 %v9237_v53, %v11222_v9  ;;  %v519_v21 = vsub.f32 %v9203_v28, %v11216_v10  ;;  %v576_v23 = vsub.f32 %v9241_v55, %v11221_v11  ;;  %v11218_v24 = vand.u32 4294901760, %v9258_v1  ;;  %v9404_v10 = vld [vmem:[%s11206_s6 + $0x30] sm:$0xff]  ;;  %v1154_v11 = vld [vmem:[%s11206_s6 + $0x40] sm:$0xff] }
  0x32   : > { %v565_v25 = vand.u32 4294901760, %v564_v14  ;;  %v559_v26 = vand.u32 4294901760, %v558_v15  ;;  %v588_v31 = vsub.f32 %v9244_v56, %v11220_v16  ;;  %v11217_v32 = vand.u32 4294901760, %v9260_v2  ;;  %v1171_v16 = vld [vmem:[%s11206_s6 + $0xc8] sm:$0xff] }
  0x33   : > { %v571_v33 = vand.u32 4294901760, %v570_v19  ;;  %v520_v34 = vand.u32 4294901760, %v519_v21  ;;  %v577_v35 = vand.u32 4294901760, %v576_v23  ;;  %v582_v36 = vsub.f32 %v9258_v1, %v11218_v24  ;;  %v1146_v23 = vld [vmem:[%s11206_s6] sm:$0xff] }
  0x34   : > { %449 = vmatpush1.msra.mxu0 %v9262_v3  ;;  %v8134_v37 = vpack.c.bf16 %v565_v25, %v553_v13  ;;  %v589_v39 = vand.u32 4294901760, %v588_v31  ;;  %v594_v40 = vsub.f32 %v9260_v2, %v11217_v32  ;;  %v11214_v41 = vand.u32 4294901760, %v9217_v38  ;;  %v1163_v13 = vld [vmem:[%s11206_s6 + $0x88] sm:$0xff]  ;;  %v1164_v31 = vld [vmem:[%s11206_s6 + $0x90] sm:$0xff] }
  0x35   : > { %510 = vmatmul.mubr.f32.vlgmr.msra.gmra.mrb[0].mxu0 %v509_v4  ;;  %v8136_v42 = vpack.c.bf16 %v571_v33, %v559_v26  ;;  %v583_v43 = vand.u32 4294901760, %v582_v36  ;;  %v9307_v49 = vsub.f32 %v428_v59, %v9248_v60  ;;  %v9311_v50 = vsub.f32 %v9184_v20, %v9206_v29  ;;  %v1162_v59 = vld [vmem:[%s11206_s6 + $0x80] sm:$0xff]  ;;  %v1147_v25 = vld [vmem:[%s11206_s6 + $0x8] sm:$0xff]  ;;  %v1165_v33 = vld [vmem:[%s11206_s6 + $0x98] sm:$0xff] }
  0x36   : > { %8135 = vmatprep.subr.bf16.mxu0 %v8134_v37  ;;  %515 = vmatprep.mubr.f32.mxu0 %v11226_v12  ;;  %v8138_v51 = vpack.c.bf16 %v589_v39, %v577_v35  ;;  %v595_v57 = vand.u32 4294901760, %v594_v40  ;;  %v530_v58 = vsub.f32 %v9217_v38, %v11214_v41  ;;  %v11213_v61 = vand.u32 4294901760, %v9270_v8  ;;  %v1149_v40 = vld [vmem:[%s11206_s6 + $0x18] sm:$0xff]  ;;  %v9386_v41 = vld [vmem:[%s11206_s6 + $0xb0] sm:$0xff] }
  0x37   : > { %8137 = vmatpush1.bf16.msra.mxu0 %v8136_v42  ;;  %v11215_v62 = vand.u32 4294901760, %v9307_v49  ;;  %v11212_v20 = vand.u32 4294901760, %v9311_v50  ;;  %v1235_v21 = vand.u32 4294901760, %v1162_v59  ;;  %v8142_v26 = vpack.c.bf16 %v9226_v47, %v9224_v46 }
  0x38   : > { %8139 = vmatprep.subr.bf16.mxu0 %v8138_v51  ;;  %v8140_v4 = vpack.c.bf16 %v595_v57, %v583_v43  ;;  %v606_v5 = vsub.f32 %v9270_v8, %v11213_v61  ;;  %v531_v14 = vand.u32 4294901760, %v530_v58  ;;  %v1238_v37 = vand.u32 4294901760, %v1163_v13  ;;  %v1151_v61 = vld [vmem:[%s11206_s6 + $0x28] sm:$0xff] }
  0x39   : > { %521 = vmatmul.mubr.f32.gmra.mrb[2].mxu0 %v520_v34  ;;  %v600_v15 = vsub.f32 %v9307_v49, %v11215_v62  ;;  %v541_v19 = vsub.f32 %v9311_v50, %v11212_v20  ;;  %v1148_v34 = vld [vmem:[%s11206_s6 + $0x10] sm:$0xff]  ;;  %v9353_v39 = vsub.f32 %v1162_v59, %v1235_v21  ;;  %v1187_v51 = vand.u32 4294901760, %v1146_v23  ;;  %v1166_v59 = vld [vmem:[%s11206_s6 + $0xa0] sm:$0xff]  ;;  %v9391_v62 = vld [vmem:[%s11206_s6 + $0xb8] sm:$0xff] }
  0x3a   : > { %526 = vmatprep.mubr.f32.mxu0 %v11226_v12  ;;  %v607_v36 = vand.u32 4294901760, %v606_v5  ;;  %v1190_v57 = vand.u32 4294901760, %v1147_v25  ;;  %v9360_v58 = vsub.f32 %v1163_v13, %v1238_v37  ;;  %v1193_v5 = vand.u32 4294901760, %v1148_v34 }
  0x3b   : > { %8141 = vmatpush1.bf16.msra.mxu0 %v8140_v4  ;;  %v601_v35 = vand.u32 4294901760, %v600_v15  ;;  %v542_v42 = vand.u32 4294901760, %v541_v19  ;;  %v1241_v4 = vand.u32 4294901760, %v1164_v31  ;;  %v1244_v15 = vand.u32 4294901760, %v1165_v33  ;;  %v1167_v19 = vld [vmem:[%s11206_s6 + $0xa8] sm:$0xff] }
  0x3c   : > { %v9374_v13 = vpack.c.bf16 %v1238_v37, %v1235_v21  ;;  %v1196_v20 = vand.u32 4294901760, %v1149_v40  ;;  %v9393_v21 = vpack.c.bf16 %v1190_v57, %v1187_v51  ;;  %v9399_v37 = vsub.f32 %v1148_v34, %v1193_v5 }
  0x3d   : > { %532 = vmatmul.mubr.f32.gmra.mrb[4].mxu0 %v531_v14  ;;  %602 = vmatprep.subr.mxu0 %v601_v35  ;;  %v9376_v14 = vsub.f32 %v1146_v23, %v1187_v51  ;;  %v9378_v35 = vsub.f32 %v1147_v25, %v1190_v57  ;;  %v9395_v23 = vsub.f32 %v1164_v31, %v1241_v4  ;;  %v1247_v24 = vand.u32 4294901760, %v1166_v59 }
  0x3e   : > { %537 = vmatprep.mubr.f32.mxu0 %v11226_v12  ;;  %11323 = vst [vmem:[#allocation3_spill] sm:$0xff] %v9374_v13  ;;  %11324 = vst [vmem:[#allocation4_spill] sm:$0xff] %v9393_v21  ;;  %v9397_v25 = vsub.f32 %v1165_v33, %v1244_v15  ;;  %v9406_v32 = vsub.f32 %v1149_v40, %v1196_v20  ;;  %8175 = vmatprep.subr.bf16.mxu1 %v9374_v13  ;;  %v1199_v51 = vand.u32 4294901760, %v9371_v30  ;;  %v9421_v40 = vld [vmem:[%s11206_s6 + $0xc0] sm:$0xff]  ;;  %vm2937_vm4 = vcmask 7168  }
  0x3f   : > { %608 = vmatpush1.msra.mxu0 %v607_v36  ;;  %11325 = vst [vmem:[#allocation5_spill] sm:$0xff] %v9395_v23  ;;  %11327 = vst [vmem:[#allocation7_spill] sm:$0xff] %v9399_v37  ;;  %v1250_v36 = vand.u32 4294901760, %v1167_v19  ;;  %v9410_v31 = vpack.c.bf16 %v1244_v15, %v1241_v4  ;;  %8177 = vmatpush3.bf16.msra.mxu1 %v9393_v21  ;;  %v1202_v33 = vand.u32 4294901760, %v1151_v61  ;;  %v1253_v34 = vand.u32 4294901760, %v9386_v41 }
  0x40   : > { %11326 = vst [vmem:[#allocation6_spill] sm:$0xff] %v9397_v25  ;;  %8143 = vmatprep.subr.bf16.mxu0 %v8142_v26  ;;  %11328 = vst [vmem:[#allocation8_spill] sm:$0xff] %v9406_v32  ;;  %v1256_v57 = vand.u32 4294901760, %v9391_v62  ;;  %v1153_v26 = vld [vmem:[%s11206_s6 + $0x38] sm:$0xff]  ;;  %v9429_v15 = vsub.f32 %v9371_v30, %v1199_v51  ;;  %v1205_v44 = vand.u32 4294901760, %v9404_v10  ;;  %v8146_v9 = vpack.c.bf16 %v9244_v56, %v9241_v55 }
  0x41   : > { %543 = vmatmul.mubr.f32.gmra.mrb[6].mxu0 %v542_v42  ;;  %11329 = vst [vmem:[#allocation9_spill] sm:$0xff] %v9410_v31  ;;  %v9424_v42 = vsub.f32 %v1166_v59, %v1247_v24  ;;  %v9426_v4 = vsub.f32 %v1167_v19, %v1250_v36  ;;  %v9440_v59 = vpack.c.bf16 %v1196_v20, %v1193_v5  ;;  %v1208_v20 = vand.u32 4294901760, %v1153_v26 }
  0x42   : > { %663 = vmatprep.mubr.f32.mxu0 %v11226_v12  ;;  %11332 = vst [vmem:[#allocation12_spill] sm:$0xff] %v9429_v15  ;;  %v9442_v19 = vsub.f32 %v1151_v61, %v1202_v33  ;;  %8179 = vmatprep.subr.bf16.mxu1 %v9410_v31  ;;  %v9446_v30 = vsub.f32 %v9386_v41, %v1253_v34  ;;  %v1259_v5 = vand.u32 4294901760, %v9421_v40  ;;  %v1173_v41 = vld [vmem:[%s11206_s6 + $0xd8] sm:$0xff]  ;;  %v1156_v12 = vld [vmem:[%s11206_s6 + $0x50] sm:$0xff]  ;;  %vm2954_vm5 = vcmask 252928  }
  0x43   : > { %11330 = vst [vmem:[#allocation10_spill] sm:$0xff] %v9424_v42  ;;  %11331 = vst [vmem:[#allocation11_spill] sm:$0xff] %v9426_v4  ;;  %v9455_v63 = vsub.f32 %v9391_v62, %v1256_v57  ;;  %v9458_v61 = vsub.f32 %v9404_v10, %v1205_v44  ;;  %v8148_v62 = vpack.c.bf16 %v9260_v2, %v9258_v1  ;;  %8181 = vmatpush3.bf16.msra.mxu1 %v9440_v59  ;;  %vm5660_vm6 = vcmask 261120  }
  0x44   : > { %11333 = vst [vmem:[#allocation13_spill] sm:$0xff] %v9440_v59  ;;  %11334 = vst [vmem:[#allocation14_spill] sm:$0xff] %v9442_v19  ;;  %v9470_v43 = vpack.c.bf16 %v1250_v36, %v1247_v24  ;;  %v1262_v10 = vand.u32 4294901760, %v1171_v16  ;;  %v9477_v19 = vsub.f32 %v1153_v26, %v1208_v20  ;;  %v9480_v15 = vsub.f32 %v9421_v40, %v1259_v5  ;;  %v1157_v24 = vld [vmem:[%s11206_s6 + $0x58] sm:$0xff]  ;;  %v1174_v36 = vld [vmem:[%s11206_s6 + $0xe0] sm:$0xff] }
  0x45   : > { %11335 = vst [vmem:[#allocation15_spill] sm:$0xff] %v9446_v30  ;;  %11336 = vst [vmem:[#allocation16_spill] sm:$0xff] %v9455_v63  ;;  %665 = vmatmul.mubr.f32.vlgmr.msra.gmra.mrb[0].mxu0 %v9180_v17  ;;  %v11339_v63 = vpack.c.bf16 %v9237_v53, %v9228_v48  ;;  %v11340_v30 = vmov 0.0   ;;  %v1214_v4 = vand.u32 4294901760, %v1155_v7  ;;  %v1265_v42 = vand.u32 4294901760, %v1172_v6 }
  0x46   : > { %11337 = vst [vmem:[#allocation17_spill] sm:$0xff] %v9458_v61  ;;  %11338 = vst [vmem:[#allocation18_spill] sm:$0xff] %v9470_v43  ;;  %v1211_v61 = vand.u32 4294901760, %v1154_v11  ;;  %670 = vmatprep.mubr.f32.mxu0 %v11340_v30  ;;  %v9488_v32 = vpack.c.bf16 %v1202_v33, %v1199_v51  ;;  %8183 = vmatprep.subr.bf16.mxu1 %v9470_v43  ;;  %v1268_v26 = vand.u32 4294901760, %v1173_v41  ;;  %v1217_v40 = vand.u32 4294901760, %v1156_v12 }
  0x47   : > { %8145 = vmatpush1.bf16.msra.mxu0 %v11339_v63  ;;  %11341 = vst [vmem:[#allocation19_spill] sm:$0xff] %v9477_v19  ;;  %11342 = vst [vmem:[#allocation20_spill] sm:$0xff] %v9480_v15  ;;  %v9491_v63 = vsub.f32 %v1171_v16, %v1262_v10  ;;  %v1175_v15 = vld [vmem:[%s11206_s6 + $0xe8] sm:$0xff]  ;;  %v9496_v19 = vpack.c.bf16 %v1256_v57, %v1253_v34  ;;  %v9500_v25 = vsub.f32 %v1155_v7, %v1214_v4  ;;  %vm5670_vm7 = vcmask 256000  }
  0x48   : > { %8147 = vmatprep.subr.bf16.mxu0 %v8146_v9  ;;  %11343 = vst [vmem:[#allocation21_spill] sm:$0xff] %v9488_v32  ;;  %v9498_v37 = vsub.f32 %v1154_v11, %v1211_v61  ;;  %v9502_v23 = vsub.f32 %v1172_v6, %v1265_v42  ;;  %8185 = vmatpush3.bf16.msra.mxu1 %v9488_v32  ;;  %v1220_v16 = vand.u32 4294901760, %v1157_v24  ;;  %v1271_v33 = vand.u32 4294901760, %v1174_v36 }
  0x49   : > { %11344 = vst [vmem:[#allocation22_spill] sm:$0xff] %v9496_v19  ;;  %672 = vmatmul.mubr.f32.gmra.mrb[2].mxu0 %v9182_v18  ;;  %v9506_v9 = vsub.f32 %v1173_v41, %v1268_v26  ;;  %v9508_v51 = vsub.f32 %v1156_v12, %v1217_v40  ;;  %v1274_v34 = vand.u32 4294901760, %v1175_v15  ;;  %v9512_v7 = vpack.c.bf16 %v1208_v20, %v1205_v44 }
  0x4a   : > { %677 = vmatprep.mubr.f32.mxu0 %v11340_v30  ;;  %8187 = vmatprep.subr.bf16.mxu1 %v9496_v19  ;;  %v9515_v6 = vsub.f32 %v1157_v24, %v1220_v16  ;;  %v9517_v11 = vsub.f32 %v1174_v36, %v1271_v33  ;;  %v9522_v12 = vpack.c.bf16 %v1262_v10, %v1259_v5  ;;  %v11355_v41 = vand.u32 4294901760, %v9228_v48 }
  0x4b   : > { %8149 = vmatpush1.bf16.msra.mxu0 %v8148_v62  ;;  %11345 = vst [vmem:[#allocation23_spill] sm:$0xff] %v9512_v7  ;;  %v9519_v57 = vsub.f32 %v1175_v15, %v1274_v34  ;;  %v9528_v44 = vpack.c.bf16 %v1214_v4, %v1211_v61  ;;  %v9531_v20 = vpack.c.bf16 %v1268_v26, %v1265_v42  ;;  %v11353_v42 = vand.u32 4294901760, %v9224_v46 }
  0x4c   : > { %718 = vmatprep.subr.mxu0 %v9307_v49  ;;  %11346 = vst [vmem:[#allocation24_spill] sm:$0xff] %v9517_v11  ;;  %11348 = vst [vmem:[#allocation26_spill] sm:$0xff] %v9522_v12  ;;  %8189 = vmatpush3.bf16.msra.mxu1 %v9512_v7  ;;  %v9537_v15 = vpack.c.bf16 %v1220_v16, %v1217_v40  ;;  %v9540_v5 = vpack.c.bf16 %v1274_v34, %v1271_v33  ;;  %v11354_v4 = vand.u32 4294901760, %v9226_v47  ;;  %vm5755_vm8 = vcmask 130048  }
  0x4d   : > { %11347 = vst [vmem:[#allocation25_spill] sm:$0xff] %v9519_v57  ;;  %679 = vmatmul.mubr.f32.gmra.mrb[4].mxu0 %v9189_v22  ;;  %11349 = vst [vmem:[#allocation27_spill] sm:$0xff] %v9528_v44  ;;  %8191 = vmatprep.subr.bf16.mxu1 %v9522_v12  ;;  %v11356_v62 = vand.u32 4294901760, %v9237_v53  ;;  %v11357_v46 = vand.u32 4294901760, %v9241_v55  ;;  %v11358_v47 = vand.u32 4294901760, %v9244_v56  ;;  %v11359_v36 = vand.u32 4294901760, %v9200_v27 }
  0x4e   : > { %684 = vmatprep.mubr.f32.mxu0 %v11340_v30  ;;  %11350 = vst [vmem:[#allocation28_spill] sm:$0xff] %v9531_v20  ;;  %11351 = vst [vmem:[#allocation29_spill] sm:$0xff] %v9537_v15  ;;  %v8158_v61 = vpack.c.bf16 %v11354_v4, %v11353_v42  ;;  %v11360_v26 = vand.u32 4294901760, %v9258_v1  ;;  %v11361_v40 = vand.u32 4294901760, %v9260_v2  ;;  %v11362_v48 = vand.u32 4294901760, %v9203_v28 }
  0x4f   : > { %721 = vmatpush1.msra.mxu0 %v9270_v8  ;;  %11352 = vst [vmem:[#allocation30_spill] sm:$0xff] %v9540_v5  ;;  %v8160_v10 = vpack.c.bf16 %v11356_v62, %v11355_v41  ;;  %v8162_v24 = vpack.c.bf16 %v11358_v47, %v11357_v46  ;;  %v11363_v53 = vand.u32 4294901760, %v9307_v49  ;;  %v11365_v55 = vand.u32 4294901760, %v9270_v8 }
  0x50   : > { %8151 = vmatprep.subr.bf16.mxu0 %v9222_v45  ;;  %8193 = vmatpush3.bf16.msra.mxu1 %v9528_v44  ;;  %v8164_v16 = vpack.c.bf16 %v11361_v40, %v11360_v26  ;;  %v11366_v56 = vand.u32 4294901760, %v9311_v50  ;;  %v11249_v42 = vand.u32 4294901760, %v9353_v39  ;;  %v11248_v4 = vand.u32 4294901760, %v9360_v58 }
  0x51   : > { %686 = vmatmul.mubr.f32.gmra.mrb[6].mxu0 %v9206_v29  ;;  %8195 = vmatprep.subr.bf16.mxu1 %v9531_v20  ;;  %v11245_v41 = vand.u32 4294901760, %v9378_v35 }
  0x52   : > { %776 = vmatprep.mubr.f32.mxu0 %v11340_v30  ;;  %v1459_v62 = vsub.f32 %v9353_v39, %v11249_v42 }
  0x54   : > { %8197 = vmatpush3.bf16.msra.mxu1 %v9537_v15  ;;  %v1460_v26 = vand.u32 4294901760, %v1459_v62  ;;  %v11380_v62 = vld [vmem:[#allocation10_spill] sm:$0xff] }
  0x55   : > { %779 = vmatmul.mubr.f32.vlgmr.msra.gmra.mrb[0].mxu0 %v9200_v27  ;;  %8199 = vmatprep.subr.bf16.mxu1 %v9540_v5  ;;  %v11364_v27 = vand.u32 4294901760, %v9217_v38 }
  0x56   : > { %8153 = vmatpush1.bf16.msra.mxu0 %v9235_v52  ;;  %784 = vmatprep.mubr.f32.mxu0 %v11340_v30 }
  0x57   : > { %8155 = vmatprep.subr.bf16.mxu0 %v9239_v54 }
  0x59   : > { %787 = vmatmul.mubr.f32.gmra.mrb[2].mxu0 %v9203_v28 }
  0x5a   : > { %792 = vmatprep.mubr.f32.mxu0 %v11340_v30  ;;  %8157 = vmatpush1.bf16.msra.mxu0 %v9256_v0 }
  0x5b   : > { %826 = vmatprep.subr.mxu0 %v9248_v60 }
  0x5d   : > { %795 = vmatmul.mubr.f32.gmra.mrb[4].mxu0 %v9217_v38  ;;  %v1176_v38 = vld [vmem:[%s11206_s6 + $0xf0] sm:$0xff] }
  0x5e   : > { %800 = vmatprep.mubr.f32.mxu0 %v11340_v30  ;;  %828 = vmatpush1.msra.mxu0 %v9262_v3 }
  0x5f   : > { %8159 = vmatprep.subr.bf16.mxu0 %v8158_v61  ;;  %v11246_v61 = vand.u32 4294901760, %v9376_v14 }
  0x61   : > { %803 = vmatmul.mubr.f32.gmra.mrb[6].mxu0 %v9311_v50 }
  0x62   : > { %883 = vmatprep.mubr.f32.mxu0 %v11340_v30 }
  0x65   : > { %887 = vmatmul.mubr.f32.vlgmr.msra.gmra.mrb[0].mxu0 %v11359_v36  ;;  %v1354_v36 = vsub.f32 %v9378_v35, %v11245_v41 }
  0x66   : > { %8161 = vmatpush1.bf16.msra.mxu0 %v8160_v10  ;;  %892 = vmatprep.mubr.f32.mxu0 %v11340_v30  ;;  %v1466_v10 = vsub.f32 %v9360_v58, %v11248_v4 }
  0x67   : > { %8163 = vmatprep.subr.bf16.mxu0 %v8162_v24  ;;  %v1347_v24 = vsub.f32 %v9376_v14, %v11246_v61  ;;  %v11385_v61 = vld [vmem:[#allocation16_spill] sm:$0xff] }
  0x68   : > { %v1467_v40 = vand.u32 4294901760, %v1466_v10  ;;  %v11247_v10 = vand.u32 4294901760, %v11380_v62 }
  0x69   : > { %896 = vmatmul.mubr.f32.gmra.mrb[2].mxu0 %v11362_v48  ;;  %v1355_v48 = vand.u32 4294901760, %v1354_v36 }
  0x6a   : > { %901 = vmatprep.mubr.f32.mxu0 %v11340_v30  ;;  %8165 = vmatpush1.bf16.msra.mxu0 %v8164_v16  ;;  %v1348_v16 = vand.u32 4294901760, %v1347_v24  ;;  %v11381_v24 = vld [vmem:[#allocation11_spill] sm:$0xff] }
  0x6b   : > { %955 = vmatprep.subr.mxu0 %v11363_v53  ;;  %v11376_v53 = vld [vmem:[#allocation5_spill] sm:$0xff]  ;;  %v11251_v36 = vand.u32 4294901760, %v11381_v24 }
  0x6d   : > { %905 = vmatmul.mubr.f32.gmra.mrb[4].mxu0 %v11364_v27  ;;  %v11242_v27 = vand.u32 4294901760, %v11376_v53 }
  0x6e   : > { %910 = vmatprep.mubr.f32.mxu0 %v11340_v30  ;;  %959 = vmatpush1.msra.mxu0 %v11365_v55  ;;  %v11377_v55 = vld [vmem:[#allocation6_spill] sm:$0xff] }
  0x6f   : > { %8167 = vmatprep.subr.bf16.mxu0 %v9222_v45  ;;  %v1177_v45 = vld [vmem:[%s11206_s6 + $0xf8] sm:$0xff] }
  0x71   : > { %914 = vmatmul.mubr.f32.gmra.mrb[6].mxu0 %v11366_v56  ;;  %v11241_v56 = vand.u32 4294901760, %v11377_v55 }
  0x72   : > { %1014 = vmatprep.mubr.f32.mxu0 %v11340_v30 }
  0x75   : > { %1016 = vmatmul.mubr.f32.vlgmr.msra.gmra.mrb[0].mxu0 %v9180_v17 }
  0x76   : > { %8169 = vmatpush1.bf16.msra.mxu0 %v9235_v52  ;;  %1021 = vmatprep.mubr.f32.mxu0 %v11340_v30  ;;  %v1277_v52 = vand.u32 4294901760, %v1176_v38 }
  0x77   : > { %8171 = vmatprep.subr.bf16.mxu0 %v9239_v54  ;;  %v1280_v54 = vand.u32 4294901760, %v1177_v45 }
  0x78   : > { %v9656_v33 = vsub.f32 %v1176_v38, %v1277_v52 }
  0x79   : > { %1023 = vmatmul.mubr.f32.gmra.mrb[2].mxu0 %v9182_v18  ;;  %v9658_v34 = vsub.f32 %v1177_v45, %v1280_v54  ;;  %v9684_v45 = vpack.c.bf16 %v1355_v48, %v1348_v16  ;;  %v11382_v16 = vld [vmem:[#allocation12_spill] sm:$0xff] }
  0x7a   : > { %1028 = vmatprep.mubr.f32.mxu0 %v11340_v30  ;;  %8173 = vmatpush1.bf16.msra.mxu0 %v9256_v0  ;;  %v1161_v0 = vld [vmem:[%s11206_s6 + $0x78] sm:$0xff]  ;;  %11372 = vst [vmem:[#allocation36_spill] sm:$0xff] %v9656_v33  ;;  %v11253_v48 = vand.u32 4294901760, %v11382_v16 }
  0x7b   : > { %1060 = vmatprep.subr.mxu0 %v9248_v60  ;;  %v1160_v60 = vld [vmem:[%s11206_s6 + $0x70] sm:$0xff]  ;;  %v1232_v2 = vand.u32 4294901760, %v1161_v0  ;;  %11373 = vst [vmem:[#allocation37_spill] sm:$0xff] %v9658_v34 }
  0x7c   : > { %v1229_v1 = vand.u32 4294901760, %v1160_v60 }
  0x7d   : > { %1030 = vmatmul.mubr.f32.gmra.mrb[4].mxu0 %v9189_v22  ;;  %v9672_v47 = vsub.f32 %v1161_v0, %v1232_v2 }
  0x7e   : > { %1035 = vmatprep.mubr.f32.mxu0 %v11340_v30  ;;  %1062 = vmatpush1.msra.mxu0 %v9262_v3  ;;  %v9644_v3 = vpack.c.bf16 %v1280_v54, %v1277_v52  ;;  %v9646_v8 = vpack.c.bf16 %v1232_v2, %v1229_v1  ;;  %v9670_v46 = vsub.f32 %v1160_v60, %v1229_v1 }
  0x7f   : > { %8335 = vmatprep.subr.bf16.mxu0 %v9374_v13  ;;  %11375 = vst [vmem:[#allocation39_spill] sm:$0xff] %v9672_v47  ;;  %v1473_v52 = vsub.f32 %v11376_v53, %v11242_v27  ;;  %v1480_v54 = vsub.f32 %v11377_v55, %v11241_v56  ;;  %v11383_v56 = vld [vmem:[#allocation14_spill] sm:$0xff] }
  0x80   : > { %11368 = vst [vmem:[#allocation32_spill] sm:$0xff] %v9644_v3  ;;  %11369 = vst [vmem:[#allocation33_spill] sm:$0xff] %v9646_v8 }
  0x81   : > { %1037 = vmatmul.mubr.f32.gmra.mrb[6].mxu0 %v9206_v29  ;;  %11374 = vst [vmem:[#allocation38_spill] sm:$0xff] %v9670_v46  ;;  %v1474_v1 = vand.u32 4294901760, %v1473_v52  ;;  %v1481_v2 = vand.u32 4294901760, %v1480_v54  ;;  %v1494_v52 = vsub.f32 %v11381_v24, %v11251_v36 }
  0x82   : > { %1117 = vmatprep.mubr.f32.mxu0 %v11340_v30 }
  0x83   : > { %v9702_v27 = vpack.c.bf16 %v1481_v2, %v1474_v1  ;;  %v1495_v2 = vand.u32 4294901760, %v1494_v52 }
  0x85   : > { %1119 = vmatmul.mubr.f32.vlgmr.msra.gmra.mrb[0].mxu0 %v9180_v17  ;;  %v1158_v17 = vld [vmem:[%s11206_s6 + $0x60] sm:$0xff] }
  0x86   : > { %1124 = vmatprep.mubr.f32.mxu0 %v11340_v30  ;;  %8337 = vmatpush3.bf16.msra.mxu0 %v9393_v21 }
  0x87   : > { %8339 = vmatprep.subr.bf16.mxu0 %v9410_v31 }
  0x89   : > { %1126 = vmatmul.mubr.f32.gmra.mrb[2].mxu0 %v9182_v18  ;;  %v1159_v18 = vld [vmem:[%s11206_s6 + $0x68] sm:$0xff] }
  0x8a   : > { %1131 = vmatprep.mubr.f32.mxu0 %v11340_v30  ;;  %8341 = vmatpush3.bf16.msra.mxu0 %v9440_v59  ;;  %v1226_v28 = vand.u32 4294901760, %v1159_v18 }
  0x8b   : > { %8343 = vmatprep.subr.bf16.mxu0 %v9470_v43 }
  0x8c   : > { %v9654_v50 = vsub.f32 %v1159_v18, %v1226_v28  ;;  %v11378_v18 = vld [vmem:[#allocation7_spill] sm:$0xff] }
  0x8d   : > { %1133 = vmatmul.mubr.f32.gmra.mrb[4].mxu0 %v9189_v22  ;;  %v1223_v22 = vand.u32 4294901760, %v1158_v17 }
  0x8e   : > { %1138 = vmatprep.mubr.f32.mxu0 %v11340_v30  ;;  %8345 = vmatpush3.bf16.msra.mxu0 %v9488_v32  ;;  %11371 = vst [vmem:[#allocation35_spill] sm:$0xff] %v9654_v50  ;;  %v11386_v30 = vld [vmem:[#allocation17_spill] sm:$0xff] }
  0x8f   : > { %8347 = vmatprep.subr.bf16.mxu0 %v9496_v19  ;;  %v9652_v49 = vsub.f32 %v1158_v17, %v1223_v22  ;;  %v8206_v17 = vpack.c.bf16 %v1467_v40, %v1460_v26  ;;  %v11260_v36 = vand.u32 4294901760, %v11386_v30 }
  0x91   : > { %1140 = vmatmul.mubr.f32.gmra.mrb[6].mxu0 %v9206_v29  ;;  %v9628_v29 = vpack.c.bf16 %v1226_v28, %v1223_v22  ;;  %11370 = vst [vmem:[#allocation34_spill] sm:$0xff] %v9652_v49  ;;  %v11243_v22 = vand.u32 4294901760, %v11378_v18  ;;  %v11379_v28 = vld [vmem:[#allocation8_spill] sm:$0xff] }
  0x92   : > { %8349 = vmatpush3.bf16.msra.mxu0 %v9512_v7  ;;  %v11244_v38 = vand.u32 4294901760, %v11379_v28 }
  0x93   : > { %8351 = vmatprep.subr.bf16.mxu0 %v9522_v12  ;;  %11367 = vst [vmem:[#allocation31_spill] sm:$0xff] %v9628_v29  ;;  %8201 = vmatpush3.bf16.msra.mxu1 %v9628_v29  ;;  %v1361_v60 = vsub.f32 %v11378_v18, %v11243_v22  ;;  %v1487_v22 = vsub.f32 %v11380_v62, %v11247_v10  ;;  %v11259_v10 = vand.u32 4294901760, %v11385_v61 }
  0x94   : > { %8203 = vmatprep.subr.bf16.mxu1 %v9644_v3  ;;  %v1368_v0 = vsub.f32 %v11379_v28, %v11244_v38  ;;  %v11384_v38 = vld [vmem:[#allocation15_spill] sm:$0xff] }
  0x95   : > { %v1362_v26 = vand.u32 4294901760, %v1361_v60  ;;  %v1375_v60 = vsub.f32 %v11382_v16, %v11253_v48  ;;  %v1488_v1 = vand.u32 4294901760, %v1487_v22  ;;  %v11256_v41 = vand.u32 4294901760, %v11384_v38 }
  0x96   : > { %8353 = vmatpush3.bf16.msra.mxu0 %v9528_v44  ;;  %v1369_v40 = vand.u32 4294901760, %v1368_v0  ;;  %v1508_v22 = vsub.f32 %v11385_v61, %v11259_v10  ;;  %v11266_v10 = vand.u32 4294901760, %v9498_v37 }
  0x97   : > { %8355 = vmatprep.subr.bf16.mxu0 %v9531_v20  ;;  %8205 = vmatpush3.bf16.msra.mxu1 %v9646_v8  ;;  %v1376_v4 = vand.u32 4294901760, %v1375_v60  ;;  %v1501_v48 = vsub.f32 %v11384_v38, %v11256_v41  ;;  %v1389_v60 = vsub.f32 %v11386_v30, %v11260_v36  ;;  %v11265_v41 = vand.u32 4294901760, %v9491_v63 }
  0x98   : > { %8207 = vmatprep.subr.bf16.mxu1 %v8206_v17  ;;  %v11254_v17 = vand.u32 4294901760, %v11383_v56  ;;  %v9710_v54 = vpack.c.bf16 %v1369_v40, %v1362_v26  ;;  %v11387_v26 = vld [vmem:[#allocation19_spill] sm:$0xff] }
  0x99   : > { %v11261_v40 = vand.u32 4294901760, %v11387_v26 }
  0x9a   : > { %8357 = vmatpush3.bf16.msra.mxu0 %v9537_v15  ;;  %v1382_v0 = vsub.f32 %v11383_v56, %v11254_v17  ;;  %v11388_v17 = vld [vmem:[#allocation20_spill] sm:$0xff] }
  0x9b   : > { %8359 = vmatprep.subr.bf16.mxu0 %v9540_v5 }
  0x9c   : > { %v1383_v42 = vand.u32 4294901760, %v1382_v0  ;;  %v1396_v0 = vsub.f32 %v11387_v26, %v11261_v40  ;;  %v11268_v40 = vand.u32 4294901760, %v9502_v23 }
  0x9e   : > { %8361 = vmatpush3.bf16.msra.mxu0 %v9628_v29  ;;  %v9730_v52 = vpack.c.bf16 %v1383_v42, %v1376_v4  ;;  %v1390_v29 = vand.u32 4294901760, %v1389_v60  ;;  %v1397_v5 = vand.u32 4294901760, %v1396_v0  ;;  %v11267_v42 = vand.u32 4294901760, %v9500_v25 }
  0x9f   : > { %8363 = vmatprep.subr.bf16.mxu0 %v9644_v3  ;;  %v11262_v3 = vand.u32 4294901760, %v11388_v17  ;;  %v1403_v60 = vsub.f32 %v9498_v37, %v11266_v10  ;;  %v1529_v10 = vsub.f32 %v9502_v23, %v11268_v40  ;;  %v11277_v40 = vand.u32 4294901760, %v9519_v57 }
  0xa0   : > { %v1410_v0 = vsub.f32 %v9500_v25, %v11267_v42  ;;  %v11274_v42 = vand.u32 4294901760, %v9517_v11 }
  0xa1   : > { %v1515_v36 = vsub.f32 %v11388_v17, %v11262_v3  ;;  %v11271_v3 = vand.u32 4294901760, %v9506_v9  ;;  %v1404_v15 = vand.u32 4294901760, %v1403_v60 }
  0xa2   : > { %8365 = vmatpush3.bf16.msra.mxu0 %v9646_v8  ;;  %v9722_v8 = vpack.c.bf16 %v1495_v2, %v1488_v1  ;;  %v1502_v1 = vand.u32 4294901760, %v1501_v48  ;;  %v1509_v2 = vand.u32 4294901760, %v1508_v22  ;;  %v1522_v48 = vsub.f32 %v9491_v63, %v11265_v41 }
  0xa3   : > { %v9750_v22 = vpack.c.bf16 %v1397_v5, %v1390_v29  ;;  %v1411_v20 = vand.u32 4294901760, %v1410_v0  ;;  %v11272_v41 = vand.u32 4294901760, %v9508_v51  ;;  %v11273_v5 = vand.u32 4294901760, %v9515_v6 }
  0xa4   : > { %v9742_v4 = vpack.c.bf16 %v1509_v2, %v1502_v1  ;;  %v1516_v1 = vand.u32 4294901760, %v1515_v36  ;;  %v1523_v2 = vand.u32 4294901760, %v1522_v48  ;;  %v1536_v36 = vsub.f32 %v9506_v9, %v11271_v3 }
  0xa5   : > { %v9770_v48 = vpack.c.bf16 %v1411_v20, %v1404_v15  ;;  %v1417_v60 = vsub.f32 %v9508_v51, %v11272_v41  ;;  %v1424_v0 = vsub.f32 %v9515_v6, %v11273_v5  ;;  %v11278_v3 = vand.u32 4294901760, %v9652_v49 }
  0xa6   : > { %v9762_v29 = vpack.c.bf16 %v1523_v2, %v1516_v1  ;;  %v1530_v1 = vand.u32 4294901760, %v1529_v10  ;;  %v1537_v2 = vand.u32 4294901760, %v1536_v36  ;;  %v11279_v20 = vand.u32 4294901760, %v9654_v50 }
  0xa7   : > { %v1418_v44 = vand.u32 4294901760, %v1417_v60  ;;  %v1425_v12 = vand.u32 4294901760, %v1424_v0  ;;  %v1543_v41 = vsub.f32 %v9517_v11, %v11274_v42  ;;  %v1550_v10 = vsub.f32 %v9519_v57, %v11277_v40 }
  0xa8   : > { %v9782_v15 = vpack.c.bf16 %v1537_v2, %v1530_v1  ;;  %v1431_v60 = vsub.f32 %v9652_v49, %v11278_v3  ;;  %v1438_v0 = vsub.f32 %v9654_v50, %v11279_v20  ;;  %v11282_v5 = vand.u32 4294901760, %v9656_v33 }
  0xa9   : > { %v9790_v36 = vpack.c.bf16 %v1425_v12, %v1418_v44  ;;  %v1544_v1 = vand.u32 4294901760, %v1543_v41  ;;  %v1551_v2 = vand.u32 4294901760, %v1550_v10  ;;  %v11285_v42 = vand.u32 4294901760, %v9658_v34 }
  0xaa   : > { %v1432_v7 = vand.u32 4294901760, %v1431_v60  ;;  %v1439_v19 = vand.u32 4294901760, %v1438_v0  ;;  %v11283_v40 = vand.u32 4294901760, %v9670_v46  ;;  %v11284_v12 = vand.u32 4294901760, %v9672_v47 }
  0xab   : > { %v9802_v44 = vpack.c.bf16 %v1551_v2, %v1544_v1  ;;  %v1557_v3 = vsub.f32 %v9656_v33, %v11282_v5  ;;  %v1564_v41 = vsub.f32 %v9658_v34, %v11285_v42 }
  0xac   : > { %v9810_v10 = vpack.c.bf16 %v1439_v19, %v1432_v7  ;;  %v1445_v60 = vsub.f32 %v9670_v46, %v11283_v40  ;;  %v1452_v0 = vsub.f32 %v9672_v47, %v11284_v12  ;;  %v403_v7 = vpop.permute.xlu1 %402 }
  0xad   : > { %v1558_v1 = vand.u32 4294901760, %v1557_v3  ;;  %v1565_v2 = vand.u32 4294901760, %v1564_v41  ;;  %v393_v41 = vpop.permute.xlu0 %392 }
  0xae   : > { %v1446_v20 = vand.u32 4294901760, %v1445_v60  ;;  %v1453_v32 = vand.u32 4294901760, %v1452_v0 }
  0xaf   : > { %v9818_v43 = vpack.c.bf16 %v1565_v2, %v1558_v1 }
  0xb0   : > { %v9820_v5 = vpack.c.bf16 %v1453_v32, %v1446_v20 }
  0xb1   : > { %v398_v42 = vpop.permute.xlu0 %397 }
 0x158   : > { %v1120_v0 = vpop.f32.mrb[0].mxu0 }
 0x159   : > { %v9854_v3 = vadd.f32 %v1120_v0, %v393_v41  ;;  %v1122_v1 = vpop.f32.mrb[1].mxu0 }
 0x15a   : > { %v9856_v12 = vadd.f32 %v1122_v1, %v393_v41 }
 0x15b   : > { %11389 = vst [vmem:[#allocation5_spill] sm:$0xff] %v9854_v3  ;;  %v9859_v2 = vand.u32 4294901760, %v9854_v3 }
 0x15c   : > { %11390 = vst [vmem:[#allocation6_spill] sm:$0xff] %v9856_v12  ;;  %v9862_v40 = vand.u32 4294901760, %v9856_v12  ;;  %v1127_v32 = vpop.f32.mrb[2].mxu0 }
 0x15d   : > { %v9866_v20 = vsub.f32 %v9854_v3, %v9859_v2  ;;  %v9868_v60 = vadd.f32 %v1127_v32, %v398_v42  ;;  %v1129_v0 = vpop.f32.mrb[3].mxu0 }
 0x15e   : > { %v9870_v19 = vadd.f32 %v1129_v0, %v398_v42  ;;  %2188 = vmatprep.mubr.f32.mxu0 %v9862_v40  ;;  %v9875_v41 = vsub.f32 %v9856_v12, %v9862_v40  ;;  %v408_v42 = vpop.permute.xlu1 %407 }
 0x15f   : > { %11391 = vst [vmem:[#allocation7_spill] sm:$0xff] %v9866_v20  ;;  %11392 = vst [vmem:[#allocation8_spill] sm:$0xff] %v9868_v60  ;;  %v9878_v1 = vand.u32 4294901760, %v9868_v60  ;;  %2190 = vmatmul.mubr.f32.vlgmr.msra.gmra.mrb[8].mxu0 %v9859_v2  ;;  %v11297_v59 = vand.u32 4294901760, %v9866_v20 }
 0x160   : > { %11393 = vst [vmem:[#allocation10_spill] sm:$0xff] %v9870_v19  ;;  %v9883_v3 = vand.u32 4294901760, %v9870_v19  ;;  %v1134_v32 = vpop.f32.mrb[4].mxu0  ;;  %v11395_v47 = vand.u32 4294901760, %v9875_v41 }
 0x161   : > { %v9888_v0 = vsub.f32 %v9868_v60, %v9878_v1  ;;  %v9890_v31 = vadd.f32 %v1134_v32, %v403_v7  ;;  %v1136_v12 = vpop.f32.mrb[5].mxu0  ;;  %v1291_v21 = vsub.f32 %v9866_v20, %v11297_v59 }
 0x162   : > { %v9897_v13 = vsub.f32 %v9870_v19, %v9883_v3  ;;  %v9899_v46 = vadd.f32 %v1136_v12, %v403_v7  ;;  %2195 = vmatprep.mubr.f32.mxu0 %v9883_v3  ;;  %v1285_v60 = vsub.f32 %v9875_v41, %v11395_v47 }
 0x163   : > { %v9906_v32 = vand.u32 4294901760, %v9890_v31  ;;  %2197 = vmatmul.mubr.f32.gmra.mrb[10].mxu0 %v9878_v1  ;;  %v11313_v59 = vand.u32 4294901760, %v9888_v0  ;;  %v1292_v49 = vand.u32 4294901760, %v1291_v21 }
 0x164   : > { %11394 = vst [vmem:[#allocation11_spill] sm:$0xff] %v9899_v46  ;;  %v9911_v20 = vand.u32 4294901760, %v9899_v46  ;;  %v1141_v19 = vpop.f32.mrb[6].mxu0  ;;  %v1286_v12 = vand.u32 4294901760, %v1285_v60  ;;  %v11314_v7 = vand.u32 4294901760, %v9897_v13 }
 0x165   : > { %v9916_v33 = vsub.f32 %v9890_v31, %v9906_v32  ;;  %v9918_v34 = vadd.f32 %v1141_v19, %v408_v42  ;;  %v1143_v47 = vpop.f32.mrb[7].mxu0  ;;  %v1306_v50 = vsub.f32 %v9888_v0, %v11313_v59 }
 0x166   : > { %v9925_v11 = vsub.f32 %v9899_v46, %v9911_v20  ;;  %v9927_v57 = vadd.f32 %v1143_v47, %v408_v42  ;;  %1287 = vmatprep.mubr.f32.mxu1 %v1286_v12  ;;  %2202 = vmatprep.mubr.f32.mxu0 %v9911_v20  ;;  %v1300_v19 = vsub.f32 %v9897_v13, %v11314_v7 }
 0x167   : > { %v9934_v60 = vand.u32 4294901760, %v9918_v34  ;;  %1293 = vmatmul.mubr.f32.vlgmr.msra.gmra.mrb[0].mxu1 %v1292_v49  ;;  %2204 = vmatmul.mubr.f32.gmra.mrb[12].mxu0 %v9906_v32  ;;  %v11316_v21 = vand.u32 4294901760, %v9916_v33  ;;  %v1307_v7 = vand.u32 4294901760, %v1306_v50 }
 0x168   : > { %v9939_v59 = vand.u32 4294901760, %v9927_v57  ;;  %8209 = vmatpush3.bf16.msra.mxu1 %v9684_v45  ;;  %v1301_v42 = vand.u32 4294901760, %v1300_v19  ;;  %v11317_v12 = vand.u32 4294901760, %v9925_v11 }
 0x169   : > { %v9945_v47 = vsub.f32 %v9918_v34, %v9934_v60  ;;  %8211 = vmatprep.subr.bf16.mxu1 %v9702_v27  ;;  %v1321_v49 = vsub.f32 %v9916_v33, %v11316_v21 }
 0x16a   : > { %v9953_v46 = vsub.f32 %v9927_v57, %v9939_v59  ;;  %1302 = vmatprep.mubr.f32.mxu1 %v1301_v42  ;;  %2209 = vmatprep.mubr.f32.mxu0 %v9939_v59  ;;  %v1315_v45 = vsub.f32 %v9925_v11, %v11317_v12 }
 0x16b   : > { %1308 = vmatmul.mubr.f32.gmra.mrb[2].mxu1 %v1307_v7  ;;  %2211 = vmatmul.mubr.f32.gmra.mrb[14].mxu0 %v9934_v60  ;;  %v1335_v50 = vand.u32 4294901760, %v9945_v47  ;;  %v1322_v21 = vand.u32 4294901760, %v1321_v49 }
 0x16c   : > { %8213 = vmatpush3.bf16.msra.mxu1 %v9710_v54  ;;  %v1316_v27 = vand.u32 4294901760, %v1315_v45  ;;  %v1329_v19 = vand.u32 4294901760, %v9953_v46  ;;  %v11411_v45 = vld [vmem:[#allocation35_spill] sm:$0xff] }
 0x16d   : > { %8215 = vmatprep.subr.bf16.mxu1 %v9722_v8  ;;  %v1336_v42 = vsub.f32 %v9945_v47, %v1335_v50  ;;  %v11396_v8 = vpack.c.bf16 %v9360_v58, %v9353_v39 }
 0x16e   : > { %1317 = vmatprep.mubr.f32.mxu1 %v1316_v27  ;;  %v1330_v7 = vsub.f32 %v9953_v46, %v1329_v19  ;;  %v11412_v27 = vld [vmem:[#allocation34_spill] sm:$0xff] }
 0x16f   : > { %1323 = vmatmul.mubr.f32.gmra.mrb[4].mxu1 %v1322_v21  ;;  %v1337_v54 = vand.u32 4294901760, %v1336_v42  ;;  %v11408_v21 = vld [vmem:[#allocation25_spill] sm:$0xff]  ;;  %v11413_v42 = vpack.c.bf16 %v11411_v45, %v11412_v27 }
 0x170   : > { %8217 = vmatpush3.bf16.msra.mxu1 %v9730_v52  ;;  %v1331_v12 = vand.u32 4294901760, %v1330_v7  ;;  %v11397_v52 = vpack.c.bf16 %v9378_v35, %v9376_v14  ;;  %v11414_v7 = vld [vmem:[#allocation37_spill] sm:$0xff] }
 0x171   : > { %8219 = vmatprep.subr.bf16.mxu1 %v9742_v4  ;;  %v11398_v4 = vpack.c.bf16 %v11377_v55, %v11376_v53 }
 0x172   : > { %1332 = vmatprep.mubr.f32.mxu1 %v1331_v12  ;;  %v11409_v12 = vld [vmem:[#allocation24_spill] sm:$0xff] }
 0x173   : > { %1338 = vmatmul.mubr.f32.gmra.mrb[6].mxu1 %v1337_v54  ;;  %v11410_v49 = vpack.c.bf16 %v11408_v21, %v11409_v12  ;;  %v11415_v54 = vld [vmem:[#allocation36_spill] sm:$0xff] }
 0x174   : > { %8221 = vmatpush3.bf16.msra.mxu1 %v9750_v22  ;;  %1568 = vmatprep.mubr.f32.mxu1 %v9862_v40  ;;  %v11400_v22 = vpack.c.bf16 %v11381_v24, %v11380_v62 }
 0x175   : > { %8223 = vmatprep.subr.bf16.mxu1 %v9762_v29  ;;  %v11402_v29 = vpack.c.bf16 %v11385_v61, %v11384_v38 }
 0x178   : > { %8225 = vmatpush3.bf16.msra.mxu1 %v9770_v48  ;;  %v11403_v48 = vpack.c.bf16 %v11387_v26, %v11386_v30 }
 0x179   : > { %8227 = vmatprep.subr.bf16.mxu1 %v9782_v15  ;;  %v11404_v15 = vpack.c.bf16 %v9491_v63, %v11388_v17 }
 0x17c   : > { %8229 = vmatpush3.bf16.msra.mxu1 %v9790_v36  ;;  %v11405_v36 = vpack.c.bf16 %v9500_v25, %v9498_v37 }
 0x17d   : > { %8231 = vmatprep.subr.bf16.mxu1 %v9802_v44  ;;  %v11406_v44 = vpack.c.bf16 %v9506_v9, %v9502_v23 }
 0x180   : > { %8233 = vmatpush3.bf16.msra.mxu1 %v9810_v10  ;;  %v11407_v10 = vpack.c.bf16 %v9515_v6, %v9508_v51 }
 0x181   : > { %8235 = vmatprep.subr.bf16.mxu1 %v9818_v43  ;;  %v11399_v43 = vpack.c.bf16 %v11379_v28, %v11378_v18 }
 0x184   : > { %8237 = vmatpush3.bf16.msra.mxu1 %v9820_v5  ;;  %v11401_v5 = vpack.c.bf16 %v11383_v56, %v11382_v16 }
 0x185   : > { %8239 = vmatprep.subr.bf16.mxu1 %v11396_v8  ;;  %v11416_v8 = vpack.c.bf16 %v11414_v7, %v11415_v54 }
 0x187   : > { %1570 = vmatmul.mubr.f32.vlgmr.msra.gmra.mrb[8].mxu1 %v9859_v2 }
 0x188   : > { %1575 = vmatprep.mubr.f32.mxu1 %v9883_v3  ;;  %8241 = vmatpush3.bf16.msra.mxu1 %v11397_v52  ;;  %v11417_v52 = vld [vmem:[#allocation39_spill] sm:$0xff] }
 0x189   : > { %8243 = vmatprep.subr.bf16.mxu1 %v11398_v4  ;;  %v11418_v4 = vld [vmem:[#allocation38_spill] sm:$0xff] }
 0x18b   : > { %1577 = vmatmul.mubr.f32.gmra.mrb[10].mxu1 %v9878_v1 }
 0x18c   : > { %1582 = vmatprep.mubr.f32.mxu1 %v9911_v20  ;;  %8245 = vmatpush3.bf16.msra.mxu1 %v11399_v43  ;;  %v11419_v43 = vpack.c.bf16 %v11417_v52, %v11418_v4 }
 0x18d   : > { %8247 = vmatprep.subr.bf16.mxu1 %v11400_v22  ;;  %v11420_v22 = vld [vmem:[#allocation3_spill] sm:$0xff] }
 0x18f   : > { %1584 = vmatmul.mubr.f32.gmra.mrb[12].mxu1 %v9906_v32 }
 0x190   : > { %1589 = vmatprep.mubr.f32.mxu1 %v9939_v59  ;;  %8249 = vmatpush3.bf16.msra.mxu1 %v11401_v5  ;;  %v11421_v5 = vld [vmem:[#allocation7_spill] sm:$0xff] }
 0x191   : > { %8251 = vmatprep.subr.bf16.mxu1 %v11402_v29  ;;  %v11422_v29 = vld [vmem:[#allocation4_spill] sm:$0xff] }
 0x193   : > { %1591 = vmatmul.mubr.f32.gmra.mrb[14].mxu1 %v9934_v60 }
 0x194   : > { %8253 = vmatpush3.bf16.msra.mxu1 %v11403_v48  ;;  %1726 = vmatprep.mubr.f32.mxu1 %v9875_v41  ;;  %v11423_v48 = vld [vmem:[#allocation9_spill] sm:$0xff] }
 0x195   : > { %8255 = vmatprep.subr.bf16.mxu1 %v11404_v15  ;;  %v11424_v15 = vld [vmem:[#allocation13_spill] sm:$0xff] }
 0x198   : > { %8257 = vmatpush3.bf16.msra.mxu1 %v11405_v36  ;;  %v11425_v36 = vld [vmem:[#allocation18_spill] sm:$0xff] }
 0x199   : > { %8259 = vmatprep.subr.bf16.mxu1 %v11406_v44  ;;  %v11426_v44 = vld [vmem:[#allocation21_spill] sm:$0xff] }
 0x19c   : > { %8261 = vmatpush3.bf16.msra.mxu1 %v11407_v10  ;;  %v11427_v10 = vld [vmem:[#allocation22_spill] sm:$0xff] }
 0x19d   : > { %8263 = vmatprep.subr.bf16.mxu1 %v11410_v49  ;;  %v11428_v49 = vld [vmem:[#allocation23_spill] sm:$0xff] }
 0x1a0   : > { %8265 = vmatpush3.bf16.msra.mxu1 %v11413_v42  ;;  %v11429_v42 = vand.u32 4294901760, %v9875_v41 }
 0x1a1   : > { %8267 = vmatprep.subr.bf16.mxu1 %v11416_v8  ;;  %v11430_v8 = vld [vmem:[#allocation26_spill] sm:$0xff] }
 0x1a4   : > { %8269 = vmatpush3.bf16.msra.mxu1 %v11419_v43  ;;  %v11431_v43 = vld [vmem:[#allocation27_spill] sm:$0xff] }
 0x1a5   : > { %8271 = vmatprep.subr.bf16.mxu1 %v11420_v22  ;;  %v11432_v22 = vld [vmem:[#allocation28_spill] sm:$0xff] }
 0x1a7   : > { %1729 = vmatmul.mubr.f32.vlgmr.msra.gmra.mrb[16].mxu1 %v11421_v5 }
 0x1a8   : > { %1735 = vmatprep.mubr.f32.mxu1 %v9897_v13  ;;  %8273 = vmatpush3.bf16.msra.mxu1 %v11422_v29  ;;  %v11433_v29 = vld [vmem:[#allocation29_spill] sm:$0xff] }
 0x1a9   : > { %8275 = vmatprep.subr.bf16.mxu1 %v11423_v48  ;;  %v11434_v48 = vld [vmem:[#allocation30_spill] sm:$0xff] }
 0x1ab   : > { %1738 = vmatmul.mubr.f32.gmra.mrb[18].mxu1 %v9888_v0 }
 0x1ac   : > { %1744 = vmatprep.mubr.f32.mxu1 %v9925_v11  ;;  %8277 = vmatpush3.bf16.msra.mxu1 %v11424_v15  ;;  %v11435_v15 = vld [vmem:[#allocation31_spill] sm:$0xff] }
 0x1ad   : > { %8279 = vmatprep.subr.bf16.mxu1 %v11425_v36  ;;  %v11436_v36 = vld [vmem:[#allocation32_spill] sm:$0xff] }
 0x1af   : > { %1747 = vmatmul.mubr.f32.gmra.mrb[20].mxu1 %v9916_v33 }
 0x1b0   : > { %1753 = vmatprep.mubr.f32.mxu1 %v9953_v46  ;;  %8281 = vmatpush3.bf16.msra.mxu1 %v11426_v44  ;;  %v11437_v44 = vand.u32 4294901760, %v9353_v39  ;;  %v11445_v39 = vand.u32 4294901760, %v9897_v13  ;;  %v11452_v13 = vand.u32 4294901760, %v11382_v16  ;;  %v11458_v16 = vand.u32 4294901760, %v11387_v26 }
 0x1b1   : > { %8283 = vmatprep.subr.bf16.mxu1 %v11427_v10  ;;  %v11438_v10 = vand.u32 4294901760, %v9360_v58  ;;  %v11446_v58 = vand.u32 4294901760, %v11378_v18  ;;  %v11453_v18 = vand.u32 4294901760, %v11383_v56  ;;  %v11459_v56 = vand.u32 4294901760, %v11388_v17 }
 0x1b2   : > { %v11463_v46 = vand.u32 4294901760, %v9502_v23  ;;  %v11464_v26 = vand.u32 4294901760, %v9506_v9  ;;  %v11470_v23 = vand.u32 4294901760, %v11411_v45  ;;  %v11471_v9 = vand.u32 4294901760, %v11415_v54 }
 0x1b3   : > { %1756 = vmatmul.mubr.f32.gmra.mrb[22].mxu1 %v9945_v47  ;;  %v8302_v41 = vpack.c.bf16 %v11438_v10, %v11437_v44  ;;  %v8312_v10 = vpack.c.bf16 %v11453_v18, %v11452_v13  ;;  %v11466_v47 = vand.u32 4294901760, %v9515_v6  ;;  %v11473_v6 = vand.u32 4294901760, %v11418_v4 }
 0x1b4   : > { %8285 = vmatpush3.bf16.msra.mxu1 %v11428_v49  ;;  %1860 = vmatprep.mubr.f32.mxu1 %v11429_v42  ;;  %v11439_v49 = vld [vmem:[#allocation33_spill] sm:$0xff]  ;;  %v11440_v42 = vand.u32 4294901760, %v9376_v14  ;;  %v11447_v14 = vand.u32 4294901760, %v11379_v28  ;;  %v11454_v28 = vand.u32 4294901760, %v11384_v38  ;;  %v11460_v38 = vand.u32 4294901760, %v9491_v63 }
 0x1b5   : > { %8287 = vmatprep.subr.bf16.mxu1 %v11430_v8  ;;  %v11441_v8 = vand.u32 4294901760, %v9378_v35  ;;  %v11448_v35 = vand.u32 4294901760, %v11380_v62  ;;  %v11455_v62 = vand.u32 4294901760, %v11385_v61  ;;  %v11462_v61 = vand.u32 4294901760, %v9500_v25 }
 0x1b6   : > { %v8322_v17 = vpack.c.bf16 %v11464_v26, %v11463_v46  ;;  %v11465_v63 = vand.u32 4294901760, %v9508_v51  ;;  %v11469_v25 = vand.u32 4294901760, %v11412_v27  ;;  %v11472_v51 = vand.u32 4294901760, %v11414_v7 }
 0x1b8   : > { %8289 = vmatpush3.bf16.msra.mxu1 %v11431_v43  ;;  %v8304_v43 = vpack.c.bf16 %v11441_v8, %v11440_v42  ;;  %v8328_v42 = vpack.c.bf16 %v11470_v23, %v11469_v25  ;;  %v8330_v8 = vpack.c.bf16 %v11472_v51, %v11471_v9 }
 0x1b9   : > { %8291 = vmatprep.subr.bf16.mxu1 %v11432_v22  ;;  %v11442_v22 = vand.u32 4294901760, %v11376_v53  ;;  %v11449_v53 = vand.u32 4294901760, %v11381_v24  ;;  %v11456_v24 = vand.u32 4294901760, %v9916_v33  ;;  %v11461_v33 = vand.u32 4294901760, %v9498_v37 }
 0x1ba   : > { %v11468_v37 = vand.u32 4294901760, %v11408_v21 }
 0x1bb   : > { %v8310_v44 = vpack.c.bf16 %v11449_v53, %v11448_v35 }
 0x1bc   : > { %8293 = vmatpush3.bf16.msra.mxu1 %v11433_v29  ;;  %v11443_v29 = vand.u32 4294901760, %v11377_v55  ;;  %v11450_v55 = vand.u32 4294901760, %v9888_v0 }
 0x1bd   : > { %8295 = vmatprep.subr.bf16.mxu1 %v11434_v48 }
 0x1be   : > { %v8306_v48 = vpack.c.bf16 %v11443_v29, %v11442_v22 }
 0x1c0   : > { %8297 = vmatpush3.bf16.msra.mxu1 %v11435_v15  ;;  %v11444_v15 = vand.u32 4294901760, %v11421_v5  ;;  %v11451_v5 = vand.u32 4294901760, %v9925_v11  ;;  %v11457_v11 = vand.u32 4294901760, %v11386_v30  ;;  %v8320_v30 = vpack.c.bf16 %v11462_v61, %v11461_v33 }
 0x1c1   : > { %8299 = vmatprep.subr.bf16.mxu1 %v11436_v36  ;;  %v8308_v36 = vpack.c.bf16 %v11447_v14, %v11446_v58 }
 0x1c2   : > { %v8316_v0 = vpack.c.bf16 %v11458_v16, %v11457_v11 }
 0x1c4   : > { %8301 = vmatpush3.bf16.msra.mxu1 %v11439_v49  ;;  %v8318_v49 = vpack.c.bf16 %v11460_v38, %v11459_v56 }
 0x1c5   : > { %8303 = vmatprep.subr.bf16.mxu1 %v8302_v41  ;;  %v8314_v41 = vpack.c.bf16 %v11455_v62, %v11454_v28 }
 0x1c7   : > { %1864 = vmatmul.mubr.f32.vlgmr.msra.gmra.mrb[24].mxu1 %v11444_v15 }
 0x1c8   : > { %1871 = vmatprep.mubr.f32.mxu1 %v11445_v39  ;;  %8305 = vmatpush3.bf16.msra.mxu1 %v8304_v43 }
 0x1c9   : > { %8307 = vmatprep.subr.bf16.mxu1 %v8306_v48 }
 0x1cb   : > { %1875 = vmatmul.mubr.f32.gmra.mrb[26].mxu1 %v11450_v55 }
 0x1cc   : > { %1882 = vmatprep.mubr.f32.mxu1 %v11451_v5  ;;  %8309 = vmatpush3.bf16.msra.mxu1 %v8308_v36 }
 0x1cd   : > { %8311 = vmatprep.subr.bf16.mxu1 %v8310_v44  ;;  %v7170_v44 = vld [vmem:[%s11203_s3 + $0x20] sm:$0xff] }
 0x1ce   : > { %v2969_v55 = vsel %vm2235_vm2, %v7170_v44, 0 }
 0x1cf   : > { %1886 = vmatmul.mubr.f32.gmra.mrb[28].mxu1 %v11456_v24  ;;  %v10161_v5 = vand.u32 4294901760, %v2969_v55 }
 0x1d0   : > { %1893 = vmatprep.mubr.f32.mxu1 %v1329_v19  ;;  %8313 = vmatpush3.bf16.msra.mxu1 %v8312_v10 }
 0x1d1   : > { %8315 = vmatprep.subr.bf16.mxu1 %v8314_v41  ;;  %v10164_v13 = vsub.f32 %v2969_v55, %v10161_v5  ;;  %v7171_v55 = vld [vmem:[%s11203_s3 + $0x28] sm:$0xff] }
 0x1d3   : > { %1897 = vmatmul.mubr.f32.gmra.mrb[30].mxu1 %v1335_v50  ;;  %v8324_v50 = vpack.c.bf16 %v11466_v47, %v11465_v63  ;;  %v3053_v18 = vand.u32 4294901760, %v10164_v13 }
 0x1d4   : > { %8317 = vmatpush3.bf16.msra.mxu1 %v8316_v0  ;;  %2063 = vmatprep.mubr.f32.mxu1 %v9862_v40  ;;  %v11467_v40 = vand.u32 4294901760, %v11409_v12  ;;  %v11474_v12 = vand.u32 4294901760, %v11417_v52 }
 0x1d5   : > { %8319 = vmatprep.subr.bf16.mxu1 %v8318_v49  ;;  %v3054_v10 = vsub.f32 %v10164_v13, %v3053_v18 }
 0x1d6   : > { %v8326_v19 = vpack.c.bf16 %v11468_v37, %v11467_v40  ;;  %v8332_v43 = vpack.c.bf16 %v11474_v12, %v11473_v6 }
 0x1d7   : > { %v3055_v28 = vand.u32 4294901760, %v3054_v10 }
 0x1d8   : > { %8321 = vmatpush3.bf16.msra.mxu1 %v8320_v30 }
 0x1d9   : > { %8323 = vmatprep.subr.bf16.mxu1 %v8322_v17  ;;  %7798 = vmatprep.mubr.f32.mxu0 %v3055_v28 }
 0x1dc   : > { %8325 = vmatpush3.bf16.msra.mxu1 %v8324_v50 }
 0x1dd   : > { %8327 = vmatprep.subr.bf16.mxu1 %v8326_v19 }
 0x1e0   : > { %8329 = vmatpush3.bf16.msra.mxu1 %v8328_v42 }
 0x1e1   : > { %8331 = vmatprep.subr.bf16.mxu1 %v8330_v8 }
 0x1e4   : > { %8333 = vmatpush3.bf16.msra.mxu1 %v8332_v43 }
 0x1e7   : > { %2065 = vmatmul.mubr.f32.vlgmr.msra.gmra.mrb[32].mxu1 %v9859_v2 }
 0x1e8   : > { %2070 = vmatprep.mubr.f32.mxu1 %v9883_v3 }
 0x1eb   : > { %2072 = vmatmul.mubr.f32.gmra.mrb[34].mxu1 %v9878_v1 }
 0x1ec   : > { %2077 = vmatprep.mubr.f32.mxu1 %v9911_v20 }
 0x1ef   : > { %2079 = vmatmul.mubr.f32.gmra.mrb[36].mxu1 %v9906_v32 }
 0x1f0   : > { %2084 = vmatprep.mubr.f32.mxu1 %v9939_v59 }
 0x1f3   : > { %2086 = vmatmul.mubr.f32.gmra.mrb[38].mxu1 %v9934_v60 }
 0x232   : > { %v7454_v21 = vpop.f32.mrb[8].mxu0 }
 0x233   : > { %v7455_v45 = vpop.f32.mrb[9].mxu0 }
 0x234   : > { %v10149_v27 = vadd.f32 %v7455_v45, %v7454_v21 }
 0x236   : > { %v7457_v7 = vpop.f32.mrb[10].mxu0 }
 0x237   : > { %v7458_v54 = vpop.f32.mrb[11].mxu0 }
 0x238   : > { %v10151_v52 = vadd.f32 %v7458_v54, %v7457_v7 }
 0x23a   : > { %v7234_v2 = vpop.f32.mrb[0].mxu1  ;;  %v7460_v3 = vpop.f32.mrb[12].mxu0 }
 0x23b   : > { %v7235_v4 = vpop.f32.mrb[1].mxu1  ;;  %v7461_v1 = vpop.f32.mrb[13].mxu0 }
 0x23c   : > { %v7236_v22 = vadd.f32 %v7235_v4, %v7234_v2  ;;  %v10153_v20 = vadd.f32 %v7461_v1, %v7460_v3 }
 0x23e   : > { %v7237_v32 = vpop.f32.mrb[2].mxu1  ;;  %v7463_v29 = vpop.f32.mrb[14].mxu0 }
 0x23f   : > { %v7238_v59 = vpop.f32.mrb[3].mxu1  ;;  %v7464_v48 = vpop.f32.mrb[15].mxu0 }
 0x240   : > { %v7239_v60 = vadd.f32 %v7238_v59, %v7237_v32  ;;  %v10155_v15 = vadd.f32 %v7464_v48, %v7463_v29 }
 0x242   : > { %v7240_v39 = vpop.f32.mrb[4].mxu1 }
 0x243   : > { %v7241_v58 = vpop.f32.mrb[5].mxu1 }
 0x244   : > { %v7242_v14 = vadd.f32 %v7241_v58, %v7240_v39 }
 0x246   : > { %v7243_v36 = vpop.f32.mrb[6].mxu1 }
 0x247   : > { %v7244_v35 = vpop.f32.mrb[7].mxu1 }
 0x248   : > { %v7245_v53 = vadd.f32 %v7244_v35, %v7243_v36 }
 0x25a   : > { %v7278_v62 = vpop.f32.mrb[8].mxu1 }
 0x25b   : > { %v7279_v41 = vpop.f32.mrb[9].mxu1 }
 0x25c   : > { %v7280_v24 = vadd.f32 %v7279_v41, %v7278_v62  ;;  %v7172_v62 = vld [vmem:[%s11203_s3 + $0x30] sm:$0xff] }
 0x25e   : > { %v1572_v11 = vadd.f32 %v7280_v24, %v7236_v22  ;;  %v7281_v16 = vpop.f32.mrb[10].mxu1  ;;  %v2972_v24 = vsel %vm2235_vm2, %v7171_v55, 0 }
 0x25f   : > { %v7282_v0 = vpop.f32.mrb[11].mxu1 }
 0x260   : > { %v7283_v56 = vadd.f32 %v7282_v0, %v7281_v16  ;;  %v7173_v0 = vld [vmem:[%s11203_s3 + $0x38] sm:$0x7] }
 0x262   : > { %v1579_v38 = vadd.f32 %v7283_v56, %v7239_v60  ;;  %v7284_v49 = vpop.f32.mrb[12].mxu1  ;;  %v2975_v56 = vsel %vm2235_vm2, %v7172_v62, 0 }
 0x263   : > { %v7285_v33 = vpop.f32.mrb[13].mxu1 }
 0x264   : > { %v7286_v61 = vadd.f32 %v7285_v33, %v7284_v49 }
 0x266   : > { %v1586_v30 = vadd.f32 %v7286_v61, %v7242_v14  ;;  %v7287_v46 = vpop.f32.mrb[14].mxu1  ;;  %v10187_v61 = vand.u32 4294901760, %v2972_v24 }
 0x267   : > { %v7288_v26 = vpop.f32.mrb[15].mxu1 }
 0x268   : > { %v7289_v17 = vadd.f32 %v7288_v26, %v7287_v46 }
 0x26a   : > { %v1593_v63 = vadd.f32 %v7289_v17, %v7245_v53 }
 0x27a   : > { %v7322_v47 = vpop.f32.mrb[16].mxu1 }
 0x27b   : > { %v7323_v50 = vpop.f32.mrb[17].mxu1 }
 0x27c   : > { %v7324_v40 = vadd.f32 %v7323_v50, %v7322_v47 }
 0x27e   : > { %v1731_v37 = vadd.f32 %v7324_v40, %v1572_v11  ;;  %v7325_v19 = vpop.f32.mrb[18].mxu1 }
 0x27f   : > { %v7326_v25 = vpop.f32.mrb[19].mxu1 }
 0x280   : > { %v7327_v23 = vadd.f32 %v7326_v25, %v7325_v19 }
 0x282   : > { %v1740_v42 = vadd.f32 %v7327_v23, %v1579_v38  ;;  %v7328_v9 = vpop.f32.mrb[20].mxu1 }
 0x283   : > { %v7329_v51 = vpop.f32.mrb[21].mxu1 }
 0x284   : > { %v7330_v8 = vadd.f32 %v7329_v51, %v7328_v9 }
 0x286   : > { %v1749_v6 = vadd.f32 %v7330_v8, %v1586_v30  ;;  %v7331_v12 = vpop.f32.mrb[22].mxu1 }
 0x287   : > { %v7332_v43 = vpop.f32.mrb[23].mxu1 }
 0x288   : > { %v7333_v21 = vadd.f32 %v7332_v43, %v7331_v12 }
 0x28a   : > { %v1758_v45 = vadd.f32 %v7333_v21, %v1593_v63  ;;  %v10194_v63 = vand.u32 4294901760, %v2975_v56 }
 0x28c   : > { %v10210_v51 = vsub.f32 %v2975_v56, %v10194_v63 }
 0x29a   : > { %v7366_v7 = vpop.f32.mrb[24].mxu1 }
 0x29b   : > { %v7367_v54 = vpop.f32.mrb[25].mxu1 }
 0x29c   : > { %v7368_v2 = vadd.f32 %v7367_v54, %v7366_v7 }
 0x29e   : > { %v1866_v3 = vadd.f32 %v7368_v2, %v1731_v37  ;;  %v7369_v4 = vpop.f32.mrb[26].mxu1  ;;  %v10200_v37 = vsub.f32 %v2972_v24, %v10187_v61  ;;  %v3073_v2 = vand.u32 4294901760, %v10210_v51 }
 0x29f   : > { %v7370_v1 = vpop.f32.mrb[27].mxu1 }
 0x2a0   : > { %v7371_v22 = vadd.f32 %v7370_v1, %v7369_v4  ;;  %v3063_v43 = vand.u32 4294901760, %v10200_v37 }
 0x2a2   : > { %v1877_v32 = vadd.f32 %v7371_v22, %v1740_v42  ;;  %v7372_v29 = vpop.f32.mrb[28].mxu1 }
 0x2a3   : > { %v7373_v59 = vpop.f32.mrb[29].mxu1 }
 0x2a4   : > { %v7374_v48 = vadd.f32 %v7373_v59, %v7372_v29 }
 0x2a6   : > { %v1888_v60 = vadd.f32 %v7374_v48, %v1749_v6  ;;  %v7375_v39 = vpop.f32.mrb[30].mxu1 }
 0x2a7   : > { %v7376_v58 = vpop.f32.mrb[31].mxu1 }
 0x2a8   : > { %v7377_v14 = vadd.f32 %v7376_v58, %v7375_v39  ;;  %v2216_v39 = vld [vmem:[%s11202_s2] sm:$0xff]  ;;  %v3074_v58 = vsub.f32 %v10210_v51, %v3073_v2 }
 0x2aa   : > { %v1899_v36 = vadd.f32 %v7377_v14, %v1758_v45  ;;  %v2237_v14 = vsel %vm2235_vm2, %v2216_v39, 0 }
 0x2ba   : > { %v7410_v35 = vpop.f32.mrb[32].mxu1 }
 0x2bb   : > { %v7411_v53 = vpop.f32.mrb[33].mxu1 }
 0x2bc   : > { %v7412_v44 = vadd.f32 %v7411_v53, %v7410_v35 }
 0x2be   : > { %v2067_v10 = vadd.f32 %v7412_v44, %v1866_v3  ;;  %v7413_v28 = vpop.f32.mrb[34].mxu1  ;;  %v10244_v44 = vand.u32 4294901760, %v2237_v14 }
 0x2bf   : > { %v7414_v41 = vpop.f32.mrb[35].mxu1 }
 0x2c0   : > { %v10178_v11 = vadd.f32 %v10149_v27, %v2067_v10  ;;  %v7415_v16 = vadd.f32 %v7414_v41, %v7413_v28  ;;  %v2978_v27 = vsel %vm2235_vm2, %v7173_v0, 0  ;;  %v10255_v24 = vsub.f32 %v2237_v14, %v10244_v44 }
 0x2c1   : > { %v10202_v19 = vand.u32 4294901760, %v2978_v27 }
 0x2c2   : > { %v2983_v38 = vand.u32 4294901760, %v10178_v11  ;;  %v2074_v49 = vadd.f32 %v7415_v16, %v1877_v32  ;;  %v7416_v33 = vpop.f32.mrb[36].mxu1  ;;  %2925 = vrot.lane.b32.xlu0 %v10178_v11, %s9071_s19  ;;  %v3064_v32 = vsub.f32 %v10200_v37, %v3063_v43  ;;  %v3075_v16 = vand.u32 4294901760, %v3074_v58 }
 0x2c3   : > { %v7417_v30 = vpop.f32.mrb[37].mxu1 }
 0x2c4   : > { %v10191_v46 = vadd.f32 %v10151_v52, %v2074_v49  ;;  %v7418_v26 = vadd.f32 %v7417_v30, %v7416_v33  ;;  %v3093_v17 = vsub.f32 %v10178_v11, %v2983_v38  ;;  %v3065_v55 = vand.u32 4294901760, %v3064_v32 }
 0x2c6   : > { %v2986_v47 = vand.u32 4294901760, %v10191_v46  ;;  %v2081_v50 = vadd.f32 %v7418_v26, %v1888_v60  ;;  %v7419_v40 = vpop.f32.mrb[38].mxu1  ;;  %2927 = vrot.lane.b32.xlu1 %v10191_v46, %s9071_s19  ;;  %v3094_v52 = vand.u32 4294901760, %v3093_v17 }
 0x2c7   : > { %v7420_v25 = vpop.f32.mrb[39].mxu1 }
 0x2c8   : > { %v10205_v23 = vadd.f32 %v10153_v20, %v2081_v50  ;;  %v7421_v42 = vadd.f32 %v7420_v25, %v7419_v40  ;;  %v10207_v9 = vpack.c.bf16 %v2986_v47, %v2983_v38  ;;  %v3100_v8 = vsub.f32 %v10191_v46, %v2986_v47  ;;  %v10316_v25 = vld [vmem:[%s11205_s5 + $0x8] sm:$0xff] }
 0x2c9   : > { %v10219_v20 = vsub.f32 %v2978_v27, %v10202_v19  ;;  %v3095_v21 = vsub.f32 %v3093_v17, %v3094_v52  ;;  %v11321_v38 = vand.u32 4294901760, %v10255_v24 }
 0x2ca   : > { %v2989_v6 = vand.u32 4294901760, %v10205_v23  ;;  %v2088_v12 = vadd.f32 %v7421_v42, %v1899_v36  ;;  %2929 = vrot.lane.b32.xlu1 %v10205_v23, %s9071_s19  ;;  %8415 = vmatprep.subr.bf16.mxu0 %v10207_v9  ;;  %v3101_v45 = vand.u32 4294901760, %v3100_v8  ;;  %v8430_v7 = vpack.c.bf16 %v3100_v8, %v3093_v17 }
 0x2cb   : > { %8417 = vmatpush3.bf16.msra.mxu0 %v10207_v9  ;;  %v3096_v59 = vand.u32 4294901760, %v3095_v21  ;;  %v2323_v27 = vsub.f32 %v10255_v24, %v11321_v38 }
 0x2cc   : > { %v2213_v54 = vadd.f32 %v10155_v15, %v2088_v12  ;;  %v3107_v3 = vsub.f32 %v10205_v23, %v2989_v6  ;;  %v3102_v4 = vsub.f32 %v3100_v8, %v3101_v45  ;;  %v10225_v1 = vpack.c.bf16 %v3101_v45, %v3094_v52  ;;  %v10336_v52 = vld [vmem:[%s11205_s5 + $0x18] sm:$0x7]  ;;  %v10354_v45 = vld [vmem:[%s11205_s5 + $0x10] sm:$0xff] }
 0x2cd   : > { %v3083_v15 = vand.u32 4294901760, %v10219_v20  ;;  %v2324_v17 = vand.u32 4294901760, %v2323_v27 }
 0x2ce   : > { %v2980_v22 = vsel %vm2248_vm3, %v2213_v54, 0  ;;  %2944 = vrot.lane.b32.xlu1 %v10191_v46, %s9072_s20  ;;  %2931 = vrot.lane.b32.xlu0 %v2213_v54, %s9071_s19  ;;  %v3103_v48 = vand.u32 4294901760, %v3102_v4  ;;  %v3108_v60 = vand.u32 4294901760, %v3107_v3 }
 0x2cf   : > { %v2992_v29 = vand.u32 4294901760, %v2980_v22  ;;  %v3084_v10 = vsub.f32 %v10219_v20, %v3083_v15  ;;  %7714 = vmatprep.mubr.f32.mxu1 %v2324_v17 }
 0x2d0   : > { %v8422_v35 = vpack.c.bf16 %v3103_v48, %v3096_v59  ;;  %v3109_v28 = vsub.f32 %v3107_v3, %v3108_v60 }
 0x2d1   : > { %v10242_v36 = vpack.c.bf16 %v2992_v29, %v2989_v6  ;;  %v3114_v53 = vsub.f32 %v2980_v22, %v2992_v29  ;;  %v3085_v30 = vand.u32 4294901760, %v3084_v10 }
 0x2d2   : > { %2946 = vrot.lane.b32.xlu1 %v10205_v23, %s9072_s20  ;;  %2942 = vrot.lane.b32.xlu0 %v10178_v11, %s9072_s20  ;;  %v3110_v49 = vand.u32 4294901760, %v3109_v28 }
 0x2d3   : > { %8419 = vmatprep.subr.bf16.mxu0 %v10242_v36  ;;  %v3115_v62 = vand.u32 4294901760, %v3114_v53  ;;  %v8434_v41 = vpack.c.bf16 %v3114_v53, %v3107_v3 }
 0x2d4   : > { %8421 = vmatpush3.bf16.msra.mxu0 %v10242_v36 }
 0x2d5   : > { %8423 = vmatprep.subr.bf16.mxu0 %v8422_v35  ;;  %v3116_v0 = vsub.f32 %v3114_v53, %v3115_v62  ;;  %v8450_v56 = vpack.c.bf16 %v3115_v62, %v3108_v60  ;;  %v2217_v62 = vld [vmem:[%s11202_s2 + $0x8] sm:$0xff] }
 0x2d6   : > { %2226 = vrot.lane.b32.xlu1 %v10191_v46, %s9073_s23  ;;  %2948 = vrot.lane.b32.xlu0 %v2213_v54, %s9072_s20 }
 0x2d7   : > { %7799 = vmatmul.mubr.f32.vlgmr.msra.gmra.mrb[16].mxu0 %v3065_v55  ;;  %v3117_v33 = vand.u32 4294901760, %v3116_v0 }
 0x2d8   : > { %8425 = vmatpush3.bf16.msra.mxu0 %v8422_v35  ;;  %7801 = vmatprep.mubr.f32.mxu0 %v3075_v16 }
 0x2d9   : > { %v8426_v26 = vpack.c.bf16 %v3117_v33, %v3110_v49  ;;  %v2218_v33 = vld [vmem:[%s11202_s2 + $0x10] sm:$0xff] }
 0x2da   : > { %2228 = vrot.lane.b32.xlu1 %v10205_v23, %s9073_s23  ;;  %2224 = vrot.lane.b32.xlu0 %v10178_v11, %s9073_s23  ;;  %v2959_v11 = vld [vmem:[%s11203_s3] sm:$0xff] }
 0x2db   : > { %8427 = vmatprep.subr.bf16.mxu0 %v8426_v26  ;;  %7802 = vmatmul.mubr.f32.gmra.mrb[18].mxu0 %v3085_v30  ;;  %v3597_v46 = vsel %vm2235_vm2, %v2959_v11, 0  ;;  %v2240_v11 = vsel %vm2235_vm2, %v2217_v62, 0 }
 0x2dc   : > { %8429 = vmatpush3.bf16.msra.mxu0 %v8426_v26  ;;  %7812 = vmatprep.mubr.f32.mxu0 %v10161_v5  ;;  %v10290_v47 = vand.u32 4294901760, %v3597_v46 }
 0x2dd   : > { %8431 = vmatprep.subr.bf16.mxu0 %v8430_v7 }
 0x2de   : > { %2230 = vrot.lane.b32.xlu0 %v2213_v54, %s9073_s23 }
 0x2df   : > { %7813 = vmatmul.mubr.f32.vlgmr.msra.gmra.mrb[16].mxu0 %v10187_v61 }
 0x2e0   : > { %8433 = vmatpush3.bf16.msra.mxu0 %v8430_v7  ;;  %7815 = vmatprep.mubr.f32.mxu0 %v10194_v63 }
 0x2e1   : > { %8435 = vmatprep.subr.bf16.mxu0 %v8434_v41 }
 0x2e3   : > { %7816 = vmatmul.mubr.f32.gmra.mrb[18].mxu0 %v10202_v19 }
 0x2e4   : > { %8437 = vmatpush3.bf16.msra.mxu0 %v8434_v41  ;;  %7826 = vmatprep.mubr.f32.mxu0 %v10164_v13  ;;  %v10296_v13 = vsub.f32 %v3597_v46, %v10290_v47 }
 0x2e5   : > { %8439 = vmatprep.subr.bf16.mxu0 %v10207_v9 }
 0x2e7   : > { %7827 = vmatmul.mubr.f32.vlgmr.msra.gmra.mrb[16].mxu0 %v10200_v37  ;;  %v9074_v37 = vmov 3  }
 0x2e8   : > { %8441 = vmatpush3.bf16.msra.mxu0 %v10207_v9  ;;  %7829 = vmatprep.mubr.f32.mxu0 %v10210_v51 }
 0x2e9   : > { %8443 = vmatprep.subr.bf16.mxu0 %v10242_v36  ;;  %8932 = vset.pattern.permute.xlu1 %v9074_v37 }
 0x2ea   : > { %8931 = vset.pattern.permute.xlu0 %v9074_v37  ;;  %4868 = vperm.xlu1 %8932, %v10316_v25  }
 0x2eb   : > { %7830 = vmatmul.mubr.f32.gmra.mrb[18].mxu0 %v10219_v20 }
 0x2ec   : > { %8445 = vmatpush3.bf16.msra.mxu0 %v10242_v36  ;;  %7840 = vmatprep.mubr.f32.mxu0 %v3053_v18  ;;  %v3682_v18 = vand.u32 4294901760, %v10296_v13 }
 0x2ed   : > { %8447 = vmatprep.subr.bf16.mxu0 %v10225_v1 }
 0x2ee   : > { %v3683_v50 = vsub.f32 %v10296_v13, %v3682_v18 }
 0x2ef   : > { %7841 = vmatmul.mubr.f32.vlgmr.msra.gmra.mrb[16].mxu0 %v3063_v43 }
 0x2f0   : > { %8449 = vmatpush3.bf16.msra.mxu0 %v10225_v1  ;;  %7843 = vmatprep.mubr.f32.mxu0 %v3073_v2  ;;  %v3684_v40 = vand.u32 4294901760, %v3683_v50 }
 0x2f1   : > { %8451 = vmatprep.subr.bf16.mxu0 %v8450_v56 }
 0x2f3   : > { %7844 = vmatmul.mubr.f32.gmra.mrb[18].mxu0 %v3083_v15 }
 0x2f4   : > { %8453 = vmatpush3.bf16.msra.mxu0 %v8450_v56  ;;  %7854 = vmatprep.mubr.f32.mxu0 %v10161_v5 }
 0x2f5   : > { %8455 = vmatprep.subr.bf16.mxu0 %v10207_v9 }
 0x2f7   : > { %7855 = vmatmul.mubr.f32.vlgmr.msra.gmra.mrb[16].mxu0 %v10187_v61 }
 0x2f8   : > { %8457 = vmatpush3.bf16.msra.mxu0 %v10207_v9  ;;  %7857 = vmatprep.mubr.f32.mxu0 %v10194_v63  ;;  %v2962_v9 = vld [vmem:[%s11203_s3 + $0x18] sm:$0x7] }
 0x2f9   : > { %8459 = vmatprep.subr.bf16.mxu0 %v10242_v36  ;;  %v3606_v43 = vsel %vm2235_vm2, %v2962_v9, 0  ;;  %v10427_v9 = vand.u32 4294901760, %v2240_v11 }
 0x2fa   : > { %v10360_v3 = vand.u32 4294901760, %v3606_v43 }
 0x2fb   : > { %7858 = vmatmul.mubr.f32.gmra.mrb[18].mxu0 %v10202_v19 }
 0x2fc   : > { %8461 = vmatpush3.bf16.msra.mxu0 %v10242_v36  ;;  %7868 = vmatprep.mubr.f32.mxu0 %v10161_v5  ;;  %v10322_v5 = vld [vmem:[%s11205_s5] sm:$0xff]  ;;  %v10378_v39 = vsub.f32 %v3606_v43, %v10360_v3 }
 0x2fd   : > { %4864 = vperm.xlu0 %8931, %v10322_v5  }
 0x2fe   : > { %v3712_v16 = vand.u32 4294901760, %v10378_v39 }
 0x2ff   : > { %7869 = vmatmul.mubr.f32.vlgmr.msra.gmra.mrb[16].mxu0 %v10187_v61  ;;  %v9075_v61 = vmov 4  }
 0x300   : > { %7871 = vmatprep.mubr.f32.mxu0 %v10194_v63  ;;  %8933 = vset.pattern.permute.xlu1 %v9075_v61  ;;  %v2960_v63 = vld [vmem:[%s11203_s3 + $0x8] sm:$0xff] }
 0x301   : > { %8934 = vset.pattern.permute.xlu0 %v9075_v61  ;;  %4884 = vperm.xlu1 %8933, %v10322_v5   ;;  %v3600_v42 = vsel %vm2235_vm2, %v2960_v63, 0  ;;  %v2243_v63 = vsel %vm2235_vm2, %v2218_v33, 0 }
 0x302   : > { %4888 = vperm.xlu0 %8934, %v10316_v25   ;;  %v10346_v12 = vand.u32 4294901760, %v3600_v42 }
 0x303   : > { %7872 = vmatmul.mubr.f32.gmra.mrb[18].mxu0 %v10202_v19  ;;  %v2961_v19 = vld [vmem:[%s11203_s3 + $0x10] sm:$0xff] }
 0x304   : > { %7882 = vmatprep.mubr.f32.mxu0 %v3684_v40  ;;  %v3603_v8 = vsel %vm2235_vm2, %v2961_v19, 0  ;;  %v10363_v4 = vsub.f32 %v3600_v42, %v10346_v12 }
 0x305   : > { %8935 = vset.pattern.permute.xlu1 %v9074_v37  ;;  %v10349_v21 = vand.u32 4294901760, %v3603_v8  ;;  %v2219_v37 = vld [vmem:[%s11202_s2 + $0x18] sm:$0x7] }
 0x306   : > { %4896 = vperm.xlu0 %8934, %v10336_v52   ;;  %4876 = vperm.xlu1 %8935, %v10336_v52   ;;  %v3692_v58 = vand.u32 4294901760, %v10363_v4 }
 0x307   : > { %v10370_v15 = vsub.f32 %v3603_v8, %v10349_v21 }
 0x308   : > { %v3693_v49 = vsub.f32 %v10363_v4, %v3692_v58 }
 0x309   : > { %v3702_v55 = vand.u32 4294901760, %v10370_v15 }
 0x30a   : > { %4872 = vperm.xlu1 %8935, %v10354_v45   ;;  %v3694_v42 = vand.u32 4294901760, %v3693_v49 }
 0x30b   : > { %v3703_v17 = vsub.f32 %v10370_v15, %v3702_v55 }
 0x30d   : > { %v3704_v43 = vand.u32 4294901760, %v3703_v17 }
 0x30e   : > { %8936 = vset.pattern.permute.xlu1 %v9075_v61  ;;  %v3713_v61 = vsub.f32 %v10378_v39, %v3712_v16 }
 0x30f   : > { %4892 = vperm.xlu1 %8936, %v10354_v45  }
 0x334   : > { %v2926_v23 = vpop.permute.xlu0 %2925 }
 0x335   : > { %v2938_v51 = vsel %vm2937_vm4, 0.0, %v2926_v23 }
 0x336   : > { %v3612_v6 = vand.u32 4294901760, %v2938_v51 }
 0x338   : > { %v2928_v20 = vpop.permute.xlu1 %2927  ;;  %v10357_v7 = vsub.f32 %v2938_v51, %v3612_v6 }
 0x339   : > { %v2939_v54 = vsel %vm2937_vm4, 0.0, %v2928_v20  ;;  %v2246_v20 = vsel %vm2235_vm2, %v2219_v37, 0 }
 0x33a   : > { %v3615_v2 = vand.u32 4294901760, %v2939_v54  ;;  %v3723_v29 = vand.u32 4294901760, %v10357_v7 }
 0x33c   : > { %v10365_v1 = vpack.c.bf16 %v3615_v2, %v3612_v6  ;;  %v10367_v22 = vsub.f32 %v2939_v54, %v3615_v2  ;;  %v2930_v32 = vpop.permute.xlu1 %2929  ;;  %v3724_v10 = vsub.f32 %v10357_v7, %v3723_v29 }
 0x33d   : > { %v2940_v59 = vsel %vm2937_vm4, 0.0, %v2930_v32  ;;  %v10439_v32 = vand.u32 4294901760, %v2243_v63 }
 0x33e   : > { %v3730_v48 = vand.u32 4294901760, %v10367_v22  ;;  %v3618_v60 = vand.u32 4294901760, %v2940_v59  ;;  %8463 = vmatprep.subr.bf16.mxu0 %v10365_v1  ;;  %v3725_v40 = vand.u32 4294901760, %v3724_v10  ;;  %v10446_v10 = vand.u32 4294901760, %v2246_v20 }
 0x33f   : > { %8465 = vmatpush3.bf16.msra.mxu0 %v10365_v1 }
 0x340   : > { %v3731_v14 = vsub.f32 %v10367_v22, %v3730_v48  ;;  %v10385_v36 = vsub.f32 %v2940_v59, %v3618_v60  ;;  %v10387_v35 = vpop.permute.xlu1 %2944  ;;  %v2932_v53 = vpop.permute.xlu0 %2931  ;;  %v3714_v59 = vand.u32 4294901760, %v3713_v61  ;;  %v10456_v37 = vsub.f32 %v2246_v20, %v10446_v10 }
 0x341   : > { %v2941_v28 = vsel %vm2937_vm4, 0.0, %v2932_v53  ;;  %v10444_v53 = vsub.f32 %v2240_v11, %v10427_v9 }
 0x342   : > { %v3609_v41 = vsel %vm2248_vm3, %v2941_v28, 0  ;;  %v3732_v56 = vand.u32 4294901760, %v3731_v14  ;;  %v3737_v30 = vand.u32 4294901760, %v10385_v36 }
 0x343   : > { %v3621_v0 = vand.u32 4294901760, %v3609_v41  ;;  %v11318_v11 = vand.u32 4294901760, %v10444_v53 }
 0x344   : > { %v10406_v27 = vpop.permute.xlu1 %2946  ;;  %v10408_v26 = vpop.permute.xlu0 %2942  ;;  %v8470_v23 = vpack.c.bf16 %v3732_v56, %v3725_v40  ;;  %v3738_v51 = vsub.f32 %v10385_v36, %v3737_v30  ;;  %v10449_v56 = vsub.f32 %v2243_v63, %v10439_v32  ;;  %v8478_v63 = vpack.c.bf16 %v10367_v22, %v10357_v7 }
 0x345   : > { %v10414_v46 = vpack.c.bf16 %v3621_v0, %v3618_v60  ;;  %v10416_v50 = vsub.f32 %v3609_v41, %v3621_v0  ;;  %v2956_v22 = vsel %vm2954_vm5, %v10387_v35, 0.0 }
 0x346   : > { %v3739_v41 = vand.u32 4294901760, %v3738_v51 }
 0x347   : > { %v3744_v19 = vand.u32 4294901760, %v10416_v50  ;;  %8467 = vmatprep.subr.bf16.mxu0 %v10414_v46 }
 0x348   : > { %v2227_v8 = vpop.permute.xlu1 %2226  ;;  %v10432_v6 = vpop.permute.xlu0 %2948  ;;  %8469 = vmatpush3.bf16.msra.mxu0 %v10414_v46 }
 0x349   : > { %v2255_v54 = vand.u32 4294901760, %v2227_v8  ;;  %8471 = vmatprep.subr.bf16.mxu0 %v8470_v23  ;;  %v3745_v2 = vsub.f32 %v10416_v50, %v3744_v19  ;;  %v2958_v7 = vsel %vm2954_vm5, %v10432_v6, 0.0 }
 0x34a   : > { %v10552_v6 = vsel %vm2248_vm3, %v2958_v7, 0 }
 0x34b   : > { %v10441_v60 = vsub.f32 %v2227_v8, %v2255_v54  ;;  %7883 = vmatmul.mubr.f32.vlgmr.msra.gmra.mrb[16].mxu0 %v3694_v42  ;;  %v3746_v14 = vand.u32 4294901760, %v3745_v2  ;;  %v11319_v8 = vand.u32 4294901760, %v10449_v56 }
 0x34c   : > { %v2229_v28 = vpop.permute.xlu1 %2228  ;;  %v2225_v62 = vpop.permute.xlu0 %2224  ;;  %8473 = vmatpush3.bf16.msra.mxu0 %v8470_v23  ;;  %7885 = vmatprep.mubr.f32.mxu0 %v3704_v43 }
 0x34d   : > { %v2258_v0 = vand.u32 4294901760, %v2229_v28  ;;  %v2370_v49 = vand.u32 4294901760, %v10441_v60  ;;  %v2252_v33 = vand.u32 4294901760, %v2225_v62  ;;  %v8474_v17 = vpack.c.bf16 %v3746_v14, %v3739_v41 }
 0x34e   : > { %v11322_v14 = vand.u32 4294901760, %v10456_v37 }
 0x34f   : > { %v10452_v40 = vsub.f32 %v2229_v28, %v2258_v0  ;;  %7886 = vmatmul.mubr.f32.gmra.mrb[18].mxu0 %v3714_v59  ;;  %v10458_v61 = vpack.c.bf16 %v2255_v54, %v2252_v33  ;;  %v10460_v23 = vsub.f32 %v2225_v62, %v2252_v33  ;;  %8475 = vmatprep.subr.bf16.mxu0 %v8474_v17 }
 0x350   : > { %v2231_v42 = vpop.permute.xlu0 %2230  ;;  %7896 = vmatprep.mubr.f32.mxu0 %v10290_v47  ;;  %8477 = vmatpush3.bf16.msra.mxu0 %v8474_v17  ;;  %v2371_v43 = vsub.f32 %v10441_v60, %v2370_v49  ;;  %v2333_v59 = vsub.f32 %v10444_v53, %v11318_v11  ;;  %v8482_v33 = vpack.c.bf16 %v10416_v50, %v10385_v36  ;;  %v2957_v36 = vsel %vm2954_vm5, %v10406_v27, 0.0 }
 0x351   : > { %v2249_v51 = vsel %vm2248_vm3, %v2231_v42, 0  ;;  %v11320_v20 = vand.u32 4294901760, %v10452_v40  ;;  %v2363_v54 = vand.u32 4294901760, %v10460_v23  ;;  %8367 = vmatprep.subr.bf16.mxu1 %v10458_v61  ;;  %8479 = vmatprep.subr.bf16.mxu0 %v8478_v63  ;;  %v2343_v17 = vsub.f32 %v10449_v56, %v11319_v8 }
 0x352   : > { %v2261_v2 = vand.u32 4294901760, %v2249_v51  ;;  %8369 = vmatpush3.bf16.msra.mxu1 %v10458_v61  ;;  %v2353_v11 = vsub.f32 %v10456_v37, %v11322_v14  ;;  %v4252_v27 = vand.u32 4294901760, %v2957_v36 }
 0x353   : > { %v2364_v28 = vsub.f32 %v10460_v23, %v2363_v54  ;;  %7897 = vmatmul.mubr.f32.vlgmr.msra.gmra.mrb[16].mxu0 %v10346_v12  ;;  %v2378_v42 = vsub.f32 %v10452_v40, %v11320_v20  ;;  %v2344_v38 = vand.u32 4294901760, %v2343_v17  ;;  %v4255_v17 = vand.u32 4294901760, %v10552_v6 }
 0x354   : > { %v10481_v62 = vpack.c.bf16 %v2261_v2, %v2258_v0  ;;  %v10483_v41 = vsub.f32 %v2249_v51, %v2261_v2  ;;  %8481 = vmatpush3.bf16.msra.mxu0 %v8478_v63  ;;  %7899 = vmatprep.mubr.f32.mxu0 %v10349_v21  ;;  %v2372_v2 = vand.u32 4294901760, %v2371_v43  ;;  %v2334_v63 = vand.u32 4294901760, %v2333_v59 }
 0x355   : > { %8483 = vmatprep.subr.bf16.mxu0 %v8482_v33  ;;  %v2365_v51 = vand.u32 4294901760, %v2364_v28  ;;  %v2379_v43 = vand.u32 4294901760, %v2378_v42  ;;  %v2354_v28 = vand.u32 4294901760, %v2353_v11  ;;  %v8494_v11 = vpack.c.bf16 %v3730_v48, %v3723_v29 }
 0x356   : > { %v2384_v0 = vand.u32 4294901760, %v10483_v41  ;;  %8371 = vmatprep.subr.bf16.mxu1 %v10481_v62  ;;  %v8386_v29 = vpack.c.bf16 %v10483_v41, %v10452_v40 }
 0x357   : > { %8373 = vmatpush3.bf16.msra.mxu1 %v10481_v62  ;;  %7900 = vmatmul.mubr.f32.gmra.mrb[18].mxu0 %v10360_v3  ;;  %v8374_v20 = vpack.c.bf16 %v2372_v2, %v2365_v51  ;;  %v10592_v2 = vsub.f32 %v10552_v6, %v4255_v17 }
 0x358   : > { %v2385_v8 = vsub.f32 %v10483_v41, %v2384_v0  ;;  %8485 = vmatpush3.bf16.msra.mxu0 %v8482_v33  ;;  %7910 = vmatprep.mubr.f32.mxu0 %v10296_v13  ;;  %v8382_v33 = vpack.c.bf16 %v10441_v60, %v10460_v23 }
 0x359   : > { %8375 = vmatprep.subr.bf16.mxu1 %v8374_v20  ;;  %8487 = vmatprep.subr.bf16.mxu0 %v10365_v1 }
 0x35a   : > { %v2386_v59 = vand.u32 4294901760, %v2385_v8  ;;  %7715 = vmatmul.mubr.f32.vlgmr.msra.gmra.mrb[40].mxu1 %v2334_v63  ;;  %v7174_v8 = vld [vmem:[%s11203_s3 + $0x40] sm:$0xff] }
 0x35b   : > { %8377 = vmatpush3.bf16.msra.mxu1 %v8374_v20  ;;  %7911 = vmatmul.mubr.f32.vlgmr.msra.gmra.mrb[16].mxu0 %v10363_v4  ;;  %v7175_v20 = vld [vmem:[%s11203_s3 + $0x48] sm:$0xff]  ;;  %v4231_v35 = vsel %vm2235_vm2, %v7174_v8, 0  ;;  %v4249_v4 = vand.u32 4294901760, %v2956_v22 }
 0x35c   : > { %v8378_v14 = vpack.c.bf16 %v2386_v59, %v2379_v43  ;;  %8489 = vmatpush3.bf16.msra.mxu0 %v10365_v1  ;;  %7717 = vmatprep.mubr.f32.mxu1 %v2344_v38  ;;  %v10520_v38 = vsel %vm2954_vm5, %v10408_v26, 0.0  ;;  %v8498_v26 = vpack.c.bf16 %v3744_v19, %v3737_v30  ;;  %v4234_v13 = vsel %vm2235_vm2, %v7175_v20, 0 }
 0x35d   : > { %8491 = vmatprep.subr.bf16.mxu0 %v10414_v46  ;;  %7913 = vmatprep.mubr.f32.mxu0 %v10370_v15  ;;  %v4246_v48 = vand.u32 4294901760, %v10520_v38  ;;  %v10563_v30 = vand.u32 4294901760, %v4231_v35  ;;  %v10565_v50 = vand.u32 4294901760, %v4234_v13  ;;  %v10601_v59 = vsub.f32 %v2957_v36, %v4252_v27 }
 0x35e   : > { %8379 = vmatprep.subr.bf16.mxu1 %v8378_v14  ;;  %7718 = vmatmul.mubr.f32.gmra.mrb[42].mxu1 %v2354_v28  ;;  %v4378_v20 = vand.u32 4294901760, %v10592_v2 }
 0x35f   : > { %8381 = vmatpush3.bf16.msra.mxu1 %v8378_v14  ;;  %7914 = vmatmul.mubr.f32.gmra.mrb[18].mxu0 %v10378_v39  ;;  %v10569_v14 = vsub.f32 %v10520_v38, %v4246_v48  ;;  %v10585_v39 = vsub.f32 %v4231_v35, %v10563_v30  ;;  %v10616_v38 = vpack.c.bf16 %v4249_v4, %v4246_v48 }
 0x360   : > { %8383 = vmatprep.subr.bf16.mxu1 %v8382_v33  ;;  %8493 = vmatpush3.bf16.msra.mxu0 %v10414_v46 }
 0x361   : > { %8495 = vmatprep.subr.bf16.mxu0 %v8494_v11  ;;  %7728 = vmatprep.mubr.f32.mxu1 %v10244_v44  ;;  %v4357_v51 = vand.u32 4294901760, %v10569_v14 }
 0x362   : > { %7924 = vmatprep.mubr.f32.mxu0 %v3682_v18  ;;  %7729 = vmatmul.mubr.f32.vlgmr.msra.gmra.mrb[40].mxu1 %v10427_v9  ;;  %v7176_v18 = vld [vmem:[%s11203_s3 + $0x50] sm:$0xff] }
 0x363   : > { %8385 = vmatpush3.bf16.msra.mxu1 %v8382_v33  ;;  %7925 = vmatmul.mubr.f32.vlgmr.msra.gmra.mrb[16].mxu0 %v3692_v58  ;;  %v7177_v58 = vld [vmem:[%s11203_s3 + $0x58] sm:$0x7]  ;;  %v4237_v19 = vsel %vm2235_vm2, %v7176_v18, 0  ;;  %v4316_v33 = vand.u32 4294901760, %v10585_v39  ;;  %v4358_v8 = vsub.f32 %v10569_v14, %v4357_v51 }
 0x364   : > { %8387 = vmatprep.subr.bf16.mxu1 %v8386_v29  ;;  %8497 = vmatpush3.bf16.msra.mxu0 %v8494_v11  ;;  %v4240_v15 = vsel %vm2235_vm2, %v7177_v58, 0  ;;  %v10580_v42 = vand.u32 4294901760, %v4237_v19 }
 0x365   : > { %8499 = vmatprep.subr.bf16.mxu0 %v8498_v26  ;;  %7731 = vmatprep.mubr.f32.mxu1 %v10439_v32  ;;  %v10596_v63 = vand.u32 4294901760, %v4240_v15  ;;  %v4317_v48 = vsub.f32 %v10585_v39, %v4316_v33 }
 0x366   : > { %7927 = vmatprep.mubr.f32.mxu0 %v3702_v55  ;;  %7732 = vmatmul.mubr.f32.gmra.mrb[42].mxu1 %v10446_v10  ;;  %v10576_v55 = vsub.f32 %v2956_v22, %v4249_v4  ;;  %v10606_v28 = vsub.f32 %v4237_v19, %v10580_v42  ;;  %v11476_v22 = vand.u32 4294901760, %v10444_v53 }
 0x367   : > { %8389 = vmatpush3.bf16.msra.mxu1 %v8386_v29  ;;  %7928 = vmatmul.mubr.f32.gmra.mrb[18].mxu0 %v3712_v16  ;;  %v10588_v16 = vsub.f32 %v4234_v13, %v10565_v50  ;;  %v10625_v23 = vsub.f32 %v4240_v15, %v10596_v63  ;;  %v11479_v13 = vand.u32 4294901760, %v10456_v37  ;;  %v4318_v18 = vand.u32 4294901760, %v4317_v48 }
 0x368   : > { %8391 = vmatprep.subr.bf16.mxu1 %v10458_v61  ;;  %8501 = vmatpush3.bf16.msra.mxu0 %v8498_v26  ;;  %v4364_v43 = vand.u32 4294901760, %v10576_v55  ;;  %v4336_v7 = vand.u32 4294901760, %v10606_v28  ;;  %v10649_v26 = vpack.c.bf16 %v4255_v17, %v4252_v27  ;;  %v8526_v19 = vpack.c.bf16 %v10576_v55, %v10569_v14 }
 0x369   : > { %8503 = vmatprep.subr.bf16.mxu0 %v10365_v1  ;;  %7742 = vmatprep.mubr.f32.mxu1 %v10255_v24  ;;  %v4326_v11 = vand.u32 4294901760, %v10588_v16 }
 0x36a   : > { %7938 = vmatprep.mubr.f32.mxu0 %v10290_v47  ;;  %7743 = vmatmul.mubr.f32.vlgmr.msra.gmra.mrb[40].mxu1 %v10444_v53  ;;  %v4365_v60 = vsub.f32 %v10576_v55, %v4364_v43  ;;  %v4379_v53 = vsub.f32 %v10592_v2, %v4378_v20  ;;  %v4337_v35 = vsub.f32 %v10606_v28, %v4336_v7 }
 0x36b   : > { %8393 = vmatpush3.bf16.msra.mxu1 %v10458_v61  ;;  %7939 = vmatmul.mubr.f32.vlgmr.msra.gmra.mrb[16].mxu0 %v10346_v12 }
 0x36c   : > { %8395 = vmatprep.subr.bf16.mxu1 %v10481_v62  ;;  %8505 = vmatpush3.bf16.msra.mxu0 %v10365_v1  ;;  %v8398_v1 = vpack.c.bf16 %v2370_v49, %v2363_v54  ;;  %v4371_v49 = vand.u32 4294901760, %v10601_v59  ;;  %v11475_v54 = vand.u32 4294901760, %v10255_v24  ;;  %v4327_v24 = vsub.f32 %v10588_v16, %v4326_v11 }
 0x36d   : > { %8507 = vmatprep.subr.bf16.mxu0 %v10414_v46  ;;  %7745 = vmatprep.mubr.f32.mxu1 %v10449_v56  ;;  %v4380_v58 = vand.u32 4294901760, %v4379_v53 }
 0x36e   : > { %7941 = vmatprep.mubr.f32.mxu0 %v10349_v21  ;;  %7746 = vmatmul.mubr.f32.gmra.mrb[42].mxu1 %v10456_v37  ;;  %v4372_v41 = vsub.f32 %v10601_v59, %v4371_v49  ;;  %v4328_v4 = vand.u32 4294901760, %v4327_v24  ;;  %v4338_v37 = vand.u32 4294901760, %v4337_v35 }
 0x36f   : > { %8397 = vmatpush3.bf16.msra.mxu1 %v10481_v62  ;;  %7942 = vmatmul.mubr.f32.gmra.mrb[18].mxu0 %v10360_v3 }
 0x370   : > { %8399 = vmatprep.subr.bf16.mxu1 %v8398_v1  ;;  %8509 = vmatpush3.bf16.msra.mxu0 %v10414_v46  ;;  %v11477_v46 = vand.u32 4294901760, %v10452_v40  ;;  %v4346_v40 = vand.u32 4294901760, %v10625_v23 }
 0x371   : > { %8511 = vmatprep.subr.bf16.mxu0 %v10616_v38  ;;  %7756 = vmatprep.mubr.f32.mxu1 %v11475_v54 }
 0x372   : > { %7952 = vmatprep.mubr.f32.mxu0 %v10290_v47  ;;  %7757 = vmatmul.mubr.f32.vlgmr.msra.gmra.mrb[40].mxu1 %v11476_v22  ;;  %v8402_v29 = vpack.c.bf16 %v2384_v0, %v11477_v46  ;;  %v4359_v47 = vand.u32 4294901760, %v4358_v8  ;;  %v11478_v0 = vand.u32 4294901760, %v10449_v56  ;;  %v4347_v56 = vsub.f32 %v10625_v23, %v4346_v40 }
 0x373   : > { %8401 = vmatpush3.bf16.msra.mxu1 %v8398_v1  ;;  %7953 = vmatmul.mubr.f32.vlgmr.msra.gmra.mrb[16].mxu0 %v10346_v12  ;;  %v4366_v12 = vand.u32 4294901760, %v4365_v60 }
 0x374   : > { %8403 = vmatprep.subr.bf16.mxu1 %v8402_v29  ;;  %8513 = vmatpush3.bf16.msra.mxu0 %v10616_v38  ;;  %v4348_v36 = vand.u32 4294901760, %v4347_v56 }
 0x375   : > { %8515 = vmatprep.subr.bf16.mxu0 %v10649_v26  ;;  %7759 = vmatprep.mubr.f32.mxu1 %v11478_v0  ;;  %v8518_v6 = vpack.c.bf16 %v4366_v12, %v4359_v47  ;;  %v4933_v12 = vld [vmem:[%s11204_s4 + $0x10] sm:$0xff] }
 0x376   : > { %7955 = vmatprep.mubr.f32.mxu0 %v10349_v21  ;;  %7760 = vmatmul.mubr.f32.gmra.mrb[42].mxu1 %v11479_v13  ;;  %v4373_v21 = vand.u32 4294901760, %v4372_v41  ;;  %v4932_v41 = vld [vmem:[%s11204_s4 + $0x8] sm:$0xff] }
 0x377   : > { %8405 = vmatpush3.bf16.msra.mxu1 %v8402_v29  ;;  %7956 = vmatmul.mubr.f32.gmra.mrb[18].mxu0 %v10360_v3 }
 0x378   : > { %8407 = vmatprep.subr.bf16.mxu1 %v10458_v61  ;;  %8517 = vmatpush3.bf16.msra.mxu0 %v10649_v26  ;;  %v8522_v3 = vpack.c.bf16 %v4380_v58, %v4373_v21  ;;  %v4934_v58 = vld [vmem:[%s11204_s4 + $0x18] sm:$0x7] }
 0x379   : > { %8519 = vmatprep.subr.bf16.mxu0 %v8518_v6  ;;  %7770 = vmatprep.mubr.f32.mxu1 %v10244_v44 }
 0x37a   : > { %7966 = vmatprep.mubr.f32.mxu0 %v4318_v18  ;;  %7771 = vmatmul.mubr.f32.vlgmr.msra.gmra.mrb[40].mxu1 %v10427_v9  ;;  %v4939_v18 = vsel %vm2235_vm2, %v4932_v41, 0 }
 0x37b   : > { %8409 = vmatpush3.bf16.msra.mxu1 %v10458_v61  ;;  %7967 = vmatmul.mubr.f32.vlgmr.msra.gmra.mrb[16].mxu0 %v4328_v4  ;;  %v8530_v61 = vpack.c.bf16 %v10592_v2, %v10601_v59  ;;  %v4942_v4 = vsel %vm2235_vm2, %v4933_v12, 0  ;;  %v10785_v56 = vand.u32 4294901760, %v4939_v18 }
 0x37c   : > { %8411 = vmatprep.subr.bf16.mxu1 %v10481_v62  ;;  %8521 = vmatpush3.bf16.msra.mxu0 %v8518_v6  ;;  %v4865_v59 = vpop.permute.xlu0 %4864  ;;  %v10787_v21 = vand.u32 4294901760, %v4942_v4 }
 0x37d   : > { %8523 = vmatprep.subr.bf16.mxu0 %v8522_v3  ;;  %7969 = vmatprep.mubr.f32.mxu0 %v4338_v37  ;;  %v4945_v37 = vsel %vm2235_vm2, %v4934_v58, 0 }
 0x37e   : > { %7773 = vmatprep.mubr.f32.mxu1 %v10439_v32 }
 0x37f   : > { %8413 = vmatpush3.bf16.msra.mxu1 %v10481_v62  ;;  %7970 = vmatmul.mubr.f32.gmra.mrb[18].mxu0 %v4348_v36  ;;  %v9077_v62 = vmov 5  }
 0x380   : > { %8525 = vmatpush3.bf16.msra.mxu0 %v8522_v3  ;;  %7980 = vmatprep.mubr.f32.mxu0 %v10563_v30  ;;  %v10791_v3 = vsub.f32 %v4939_v18, %v10785_v56 }
 0x381   : > { %8527 = vmatprep.subr.bf16.mxu0 %v8526_v19  ;;  %7774 = vmatmul.mubr.f32.gmra.mrb[42].mxu1 %v10446_v10  ;;  %v4889_v1 = vpop.permute.xlu0 %4888 }
 0x382   : > { %7784 = vmatprep.mubr.f32.mxu1 %v10244_v44  ;;  %v8542_v44 = vpack.c.bf16 %v4364_v43, %v4357_v51  ;;  %8937 = vset.pattern.permute.xlu0 %v9077_v62 }
 0x383   : > { %7981 = vmatmul.mubr.f32.vlgmr.msra.gmra.mrb[16].mxu0 %v10565_v50  ;;  %5565 = vperm.xlu0 %8937, %v10322_v5  }
 0x384   : > { %8529 = vmatpush3.bf16.msra.mxu0 %v8526_v19  ;;  %7983 = vmatprep.mubr.f32.mxu0 %v10580_v42  ;;  %v10793_v19 = vand.u32 4294901760, %v4945_v37 }
 0x385   : > { %8531 = vmatprep.subr.bf16.mxu0 %v8530_v61  ;;  %7785 = vmatmul.mubr.f32.vlgmr.msra.gmra.mrb[40].mxu1 %v10427_v9  ;;  %v8546_v9 = vpack.c.bf16 %v4378_v20, %v4371_v49 }
 0x386   : > { %7787 = vmatprep.mubr.f32.mxu1 %v10439_v32  ;;  %v11480_v32 = vmov 0.0  }
 0x387   : > { %7984 = vmatmul.mubr.f32.gmra.mrb[18].mxu0 %v10596_v63 }
 0x388   : > { %8533 = vmatpush3.bf16.msra.mxu0 %v8530_v61  ;;  %7994 = vmatprep.mubr.f32.mxu0 %v10585_v39 }
 0x389   : > { %8535 = vmatprep.subr.bf16.mxu0 %v10616_v38  ;;  %7788 = vmatmul.mubr.f32.gmra.mrb[42].mxu1 %v10446_v10  ;;  %v9076_v10 = vmov 6  }
 0x38a   : > { %8938 = vset.pattern.permute.xlu1 %v9076_v10  ;;  %8940 = vset.pattern.permute.xlu0 %v9076_v10 }
 0x38b   : > { %7995 = vmatmul.mubr.f32.vlgmr.msra.gmra.mrb[16].mxu0 %v10588_v16  ;;  %5585 = vperm.xlu1 %8938, %v10322_v5  }
 0x38c   : > { %8537 = vmatpush3.bf16.msra.mxu0 %v10616_v38  ;;  %7997 = vmatprep.mubr.f32.mxu0 %v10606_v28 }
 0x38d   : > { %8539 = vmatprep.subr.bf16.mxu0 %v10649_v26  ;;  %5589 = vperm.xlu0 %8940, %v10316_v25  }
 0x38f   : > { %7998 = vmatmul.mubr.f32.gmra.mrb[18].mxu0 %v10625_v23  ;;  %8939 = vset.pattern.permute.xlu1 %v9077_v62 }
 0x390   : > { %8541 = vmatpush3.bf16.msra.mxu0 %v10649_v26  ;;  %8008 = vmatprep.mubr.f32.mxu0 %v4316_v33 }
 0x391   : > { %8543 = vmatprep.subr.bf16.mxu0 %v8542_v44  ;;  %5569 = vperm.xlu1 %8939, %v10316_v25  }
 0x392   : > { %8942 = vset.pattern.permute.xlu0 %v9077_v62 }
 0x393   : > { %8009 = vmatmul.mubr.f32.vlgmr.msra.gmra.mrb[16].mxu0 %v4326_v11  ;;  %5577 = vperm.xlu0 %8942, %v10336_v52  }
 0x394   : > { %8545 = vmatpush3.bf16.msra.mxu0 %v8542_v44  ;;  %8011 = vmatprep.mubr.f32.mxu0 %v4336_v7  ;;  %v4897_v7 = vpop.permute.xlu0 %4896 }
 0x395   : > { %8547 = vmatprep.subr.bf16.mxu0 %v8546_v9  ;;  %5573 = vperm.xlu1 %8939, %v10354_v45  }
 0x397   : > { %8012 = vmatmul.mubr.f32.gmra.mrb[18].mxu0 %v4346_v40  ;;  %2881 = vrot.lane.b32.xlu0 %v10322_v5, %s9078_s26 }
 0x398   : > { %8549 = vmatpush3.bf16.msra.mxu0 %v8546_v9  ;;  %8022 = vmatprep.mubr.f32.mxu0 %v10563_v30  ;;  %v10798_v9 = vsub.f32 %v4942_v4, %v10787_v21 }
 0x399   : > { %8551 = vmatprep.subr.bf16.mxu0 %v10616_v38  ;;  %8941 = vset.pattern.permute.xlu1 %v9076_v10 }
 0x39a   : > { %5593 = vperm.xlu1 %8941, %v10354_v45  }
 0x39b   : > { %8023 = vmatmul.mubr.f32.vlgmr.msra.gmra.mrb[16].mxu0 %v10565_v50  ;;  %2883 = vrot.lane.b32.xlu0 %v10316_v25, %s9078_s26 }
 0x39c   : > { %8553 = vmatpush3.bf16.msra.mxu0 %v10616_v38  ;;  %8025 = vmatprep.mubr.f32.mxu0 %v10580_v42 }
 0x39d   : > { %8555 = vmatprep.subr.bf16.mxu0 %v10649_v26 }
 0x39e   : > { %5597 = vperm.xlu1 %8941, %v10336_v52  }
 0x39f   : > { %8026 = vmatmul.mubr.f32.gmra.mrb[18].mxu0 %v10596_v63  ;;  %2885 = vrot.lane.b32.xlu0 %v10354_v45, %s9078_s26 }
 0x3a0   : > { %8557 = vmatpush3.bf16.msra.mxu0 %v10649_v26  ;;  %8036 = vmatprep.mubr.f32.mxu0 %v10563_v30  ;;  %v4931_v30 = vld [vmem:[%s11204_s4] sm:$0xff] }
 0x3a2   : > { %2865 = vrot.lane.b32.xlu1 %v10322_v5, %s9072_s20 }
 0x3a3   : > { %8037 = vmatmul.mubr.f32.vlgmr.msra.gmra.mrb[16].mxu0 %v10565_v50  ;;  %v4936_v50 = vsel %vm2235_vm2, %v4931_v30, 0  ;;  %2887 = vrot.lane.b32.xlu0 %v10336_v52, %s9078_s26  ;;  %v5031_v30 = vand.u32 4294901760, %v10791_v3 }
 0x3a4   : > { %8039 = vmatprep.mubr.f32.mxu0 %v10580_v42  ;;  %v10739_v14 = vand.u32 4294901760, %v4936_v50  ;;  %v11481_v42 = vmov 0  }
 0x3a5   : > { %8943 = vset.pattern.permute.xlu0 %v11481_v42  ;;  %8944 = vset.pattern.permute.xlu1 %v11481_v42 }
 0x3a6   : > { %v10743_v17 = vsub.f32 %v4936_v50, %v10739_v14  ;;  %2867 = vrot.lane.b32.xlu1 %v10316_v25, %s9072_s20 }
 0x3a7   : > { %8040 = vmatmul.mubr.f32.gmra.mrb[18].mxu0 %v10596_v63  ;;  %v4869_v63 = vpop.permute.xlu1 %4868 }
 0x3a8   : > { %6494 = vmatprep.mubr.f32.mxu0 %v11480_v32  ;;  %v5021_v15 = vand.u32 4294901760, %v10743_v17 }
 0x3aa   : > { %v5022_v55 = vsub.f32 %v10743_v17, %v5021_v15  ;;  %2869 = vrot.lane.b32.xlu1 %v10354_v45, %s9072_s20 }
 0x3ab   : > { %v4885_v43 = vpop.permute.xlu1 %4884 }
 0x3ac   : > { %v5023_v27 = vand.u32 4294901760, %v5022_v55 }
 0x3ae   : > { %8050 = vmatprep.mubr.f32.mxu1 %v5023_v27  ;;  %2871 = vrot.lane.b32.xlu1 %v10336_v52, %s9072_s20  ;;  %v10806_v27 = vsub.f32 %v4945_v37, %v10793_v19 }
 0x3af   : > { %v4877_v28 = vpop.permute.xlu1 %4876 }
 0x3b3   : > { %v4873_v33 = vpop.permute.xlu1 %4872 }
 0x3b7   : > { %v4893_v49 = vpop.permute.xlu1 %4892 }
 0x402   : > { %v5566_v37 = vpop.permute.xlu0 %5565 }
 0x458   : > { %v10766_v39 = vpop.f32.mrb[40].mxu1 }
 0x459   : > { %v10768_v16 = vpop.f32.mrb[41].mxu1 }
 0x45c   : > { %v10770_v51 = vpop.f32.mrb[42].mxu1 }
 0x45d   : > { %v10772_v2 = vpop.f32.mrb[43].mxu1 }
 0x476   : > { %v8038_v5 = vpop.f32.mrb[16].mxu0 }
 0x477   : > { %v4880_v25 = vmul.f32 %v8038_v5, %v4869_v63  ;;  %v4837_v11 = vpop.f32.mrb[17].mxu0 }
 0x478   : > { %v4879_v45 = vmul.f32 %v4865_v59, %v4837_v11  ;;  %v5041_v59 = vand.u32 4294901760, %v10798_v9 }
 0x479   : > { %v4900_v38 = vadd.f32 %v4889_v1, %v4880_v25  ;;  %v5032_v25 = vsub.f32 %v10791_v3, %v5031_v30 }
 0x47a   : > { %v4899_v52 = vadd.f32 %v4885_v43, %v4879_v45  ;;  %v8041_v8 = vpop.f32.mrb[18].mxu0 }
 0x47b   : > { %v7179_v20 = vmul.f32 -1.442695, %v4900_v38  ;;  %v4882_v23 = vmul.f32 %v8041_v8, %v4877_v28  ;;  %v4849_v60 = vpop.f32.mrb[19].mxu0  ;;  %v5051_v8 = vand.u32 4294901760, %v10806_v27 }
 0x47c   : > { %v7178_v54 = vmul.f32 -1.442695, %v4899_v52  ;;  %v4881_v22 = vmul.f32 %v4873_v33, %v4849_v60 }
 0x47d   : > { %8945 = vpow2.f32 %v7179_v20  ;;  %v4902_v46 = vadd.f32 %v4897_v7, %v4882_v23  ;;  %v5042_v23 = vsub.f32 %v10798_v9, %v5041_v59 }
 0x47e   : > { %8947 = vpow2.f32 %v7178_v54  ;;  %v4901_v29 = vadd.f32 %v4893_v49, %v4881_v22  ;;  %v5033_v22 = vand.u32 4294901760, %v5032_v25 }
 0x47f   : > { %v7181_v48 = vmul.f32 -1.442695, %v4902_v46 }
 0x480   : > { %v7180_v24 = vmul.f32 -1.442695, %v4901_v29 }
 0x481   : > { %8949 = vpow2.f32 %v7181_v48  ;;  %v5052_v48 = vsub.f32 %v10806_v27, %v5051_v8 }
 0x482   : > { %8951 = vpow2.f32 %v7180_v24 }
 0x487   : > { %v8946_v26 = vpop.eup %8945 }
 0x488   : > { %v8948_v47 = vpop.eup %8947  ;;  %v4916_v53 = vadd.f32 1.0, %v8946_v26 }
 0x489   : > { %v4915_v40 = vadd.f32 1.0, %v8948_v47  ;;  %v5043_v47 = vand.u32 4294901760, %v5042_v23 }
 0x48a   : > { %8953 = vrcp.f32 %v4916_v53 }
 0x48b   : > { %v8950_v0 = vpop.eup %8949  ;;  %8955 = vrcp.f32 %v4915_v40 }
 0x48c   : > { %v8952_v35 = vpop.eup %8951  ;;  %v4918_v13 = vadd.f32 1.0, %v8950_v0  ;;  %v5053_v0 = vand.u32 4294901760, %v5052_v48 }
 0x48d   : > { %v4917_v6 = vadd.f32 1.0, %v8952_v35 }
 0x48e   : > { %8957 = vrcp.f32 %v4918_v13 }
 0x48f   : > { %8959 = vrcp.f32 %v4917_v6 }
 0x494   : > { %v8954_v36 = vpop.eup %8953 }
 0x495   : > { %v8956_v61 = vpop.eup %8955  ;;  %v10795_v44 = vmul.f32 %v8954_v36, %v4900_v38  ;;  %v5590_v36 = vpop.permute.xlu0 %5589 }
 0x496   : > { %v10800_v10 = vmul.f32 %v8956_v61, %v4899_v52 }
 0x497   : > { %v4954_v62 = vand.u32 4294901760, %v10795_v44 }
 0x498   : > { %v8958_v50 = vpop.eup %8957  ;;  %v4951_v55 = vand.u32 4294901760, %v10800_v10 }
 0x499   : > { %v8960_v42 = vpop.eup %8959  ;;  %v5068_v63 = vsub.f32 %v10795_v44, %v4954_v62  ;;  %v10809_v43 = vmul.f32 %v8958_v50, %v4902_v46 }
 0x49a   : > { %v10812_v28 = vpack.c.bf16 %v4954_v62, %v4951_v55  ;;  %v5061_v1 = vsub.f32 %v10800_v10, %v4951_v55  ;;  %v10815_v5 = vmul.f32 %v8960_v42, %v4901_v29 }
 0x49b   : > { %v4948_v33 = vsel %vm2248_vm3, %v10809_v43, 0  ;;  %v5069_v11 = vand.u32 4294901760, %v5068_v63 }
 0x49c   : > { %v4960_v45 = vand.u32 4294901760, %v4948_v33  ;;  %v4957_v38 = vand.u32 4294901760, %v10815_v5  ;;  %8559 = vmatprep.subr.bf16.mxu1 %v10812_v28  ;;  %v5062_v52 = vand.u32 4294901760, %v5061_v1  ;;  %v8574_v18 = vpack.c.bf16 %v5068_v63, %v5061_v1 }
 0x49d   : > { %8561 = vmatpush3.bf16.msra.mxu1 %v10812_v28  ;;  %v5070_v20 = vsub.f32 %v5068_v63, %v5069_v11 }
 0x49e   : > { %v5082_v60 = vsub.f32 %v4948_v33, %v4960_v45  ;;  %v8562_v49 = vpack.c.bf16 %v4960_v45, %v4957_v38  ;;  %v5075_v54 = vsub.f32 %v10815_v5, %v4957_v38  ;;  %v5063_v7 = vsub.f32 %v5061_v1, %v5062_v52 }
 0x49f   : > { %v5071_v46 = vand.u32 4294901760, %v5070_v20  ;;  %v8590_v4 = vpack.c.bf16 %v5069_v11, %v5062_v52 }
 0x4a0   : > { %8563 = vmatprep.subr.bf16.mxu1 %v8562_v49  ;;  %v5064_v29 = vand.u32 4294901760, %v5063_v7  ;;  %v5076_v24 = vand.u32 4294901760, %v5075_v54  ;;  %v5083_v26 = vand.u32 4294901760, %v5082_v60  ;;  %v8578_v6 = vpack.c.bf16 %v5082_v60, %v5075_v54 }
 0x4a1   : > { %8565 = vmatpush3.bf16.msra.mxu1 %v8562_v49 }
 0x4a2   : > { %v8566_v53 = vpack.c.bf16 %v5071_v46, %v5064_v29  ;;  %v5077_v40 = vsub.f32 %v5075_v54, %v5076_v24  ;;  %v5084_v41 = vsub.f32 %v5082_v60, %v5083_v26  ;;  %v8594_v58 = vpack.c.bf16 %v5083_v26, %v5076_v24 }
 0x4a4   : > { %8051 = vmatmul.mubr.f32.vlgmr.msra.gmra.mrb[44].mxu1 %v5033_v22  ;;  %8567 = vmatprep.subr.bf16.mxu1 %v8566_v53  ;;  %v5078_v12 = vand.u32 4294901760, %v5077_v40  ;;  %v5085_v35 = vand.u32 4294901760, %v5084_v41 }
 0x4a5   : > { %8569 = vmatpush3.bf16.msra.mxu1 %v8566_v53  ;;  %8053 = vmatprep.mubr.f32.mxu1 %v5043_v47 }
 0x4a6   : > { %v8570_v13 = vpack.c.bf16 %v5085_v35, %v5078_v12 }
 0x4a8   : > { %8054 = vmatmul.mubr.f32.gmra.mrb[46].mxu1 %v5053_v0  ;;  %8571 = vmatprep.subr.bf16.mxu1 %v8570_v13 }
 0x4a9   : > { %8573 = vmatpush3.bf16.msra.mxu1 %v8570_v13  ;;  %8064 = vmatprep.mubr.f32.mxu1 %v10739_v14 }
 0x4aa   : > { %8575 = vmatprep.subr.bf16.mxu1 %v8574_v18 }
 0x4ac   : > { %8065 = vmatmul.mubr.f32.vlgmr.msra.gmra.mrb[44].mxu1 %v10785_v56 }
 0x4ad   : > { %8577 = vmatpush3.bf16.msra.mxu1 %v8574_v18  ;;  %8067 = vmatprep.mubr.f32.mxu1 %v10787_v21 }
 0x4ae   : > { %8579 = vmatprep.subr.bf16.mxu1 %v8578_v6 }
 0x4b0   : > { %8068 = vmatmul.mubr.f32.gmra.mrb[46].mxu1 %v10793_v19 }
 0x4b1   : > { %8581 = vmatpush3.bf16.msra.mxu1 %v8578_v6  ;;  %8078 = vmatprep.mubr.f32.mxu1 %v10743_v17  ;;  %v5586_v17 = vpop.permute.xlu1 %5585 }
 0x4b2   : > { %8583 = vmatprep.subr.bf16.mxu1 %v10812_v28 }
 0x4b4   : > { %8079 = vmatmul.mubr.f32.vlgmr.msra.gmra.mrb[44].mxu1 %v10791_v3 }
 0x4b5   : > { %8585 = vmatpush3.bf16.msra.mxu1 %v10812_v28  ;;  %8081 = vmatprep.mubr.f32.mxu1 %v10798_v9 }
 0x4b6   : > { %8587 = vmatprep.subr.bf16.mxu1 %v8562_v49 }
 0x4b8   : > { %8082 = vmatmul.mubr.f32.gmra.mrb[46].mxu1 %v10806_v27 }
 0x4b9   : > { %8589 = vmatpush3.bf16.msra.mxu1 %v8562_v49  ;;  %8092 = vmatprep.mubr.f32.mxu1 %v5021_v15  ;;  %v5570_v15 = vpop.permute.xlu1 %5569 }
 0x4ba   : > { %8591 = vmatprep.subr.bf16.mxu1 %v8590_v4 }
 0x4bc   : > { %8093 = vmatmul.mubr.f32.vlgmr.msra.gmra.mrb[44].mxu1 %v5031_v30 }
 0x4bd   : > { %8593 = vmatpush3.bf16.msra.mxu1 %v8590_v4  ;;  %8095 = vmatprep.mubr.f32.mxu1 %v5041_v59  ;;  %v5574_v3 = vpop.permute.xlu1 %5573 }
 0x4be   : > { %8595 = vmatprep.subr.bf16.mxu1 %v8594_v58 }
 0x4c0   : > { %8096 = vmatmul.mubr.f32.gmra.mrb[46].mxu1 %v5051_v8 }
 0x4c1   : > { %8597 = vmatpush3.bf16.msra.mxu1 %v8594_v58  ;;  %8106 = vmatprep.mubr.f32.mxu1 %v10739_v14  ;;  %v5594_v61 = vpop.permute.xlu1 %5593 }
 0x4c2   : > { %8599 = vmatprep.subr.bf16.mxu1 %v10812_v28 }
 0x4c4   : > { %8107 = vmatmul.mubr.f32.vlgmr.msra.gmra.mrb[44].mxu1 %v10785_v56 }
 0x4c5   : > { %8601 = vmatpush3.bf16.msra.mxu1 %v10812_v28  ;;  %8109 = vmatprep.mubr.f32.mxu1 %v10787_v21 }
 0x4c6   : > { %8603 = vmatprep.subr.bf16.mxu1 %v8562_v49 }
 0x4c8   : > { %8110 = vmatmul.mubr.f32.gmra.mrb[46].mxu1 %v10793_v19 }
 0x4c9   : > { %8605 = vmatpush3.bf16.msra.mxu1 %v8562_v49  ;;  %8120 = vmatprep.mubr.f32.mxu1 %v10739_v14  ;;  %v5578_v14 = vpop.permute.xlu0 %5577 }
 0x4cc   : > { %8121 = vmatmul.mubr.f32.vlgmr.msra.gmra.mrb[44].mxu1 %v10785_v56 }
 0x4cd   : > { %8123 = vmatprep.mubr.f32.mxu1 %v10787_v21 }
 0x4d0   : > { %8124 = vmatmul.mubr.f32.gmra.mrb[46].mxu1 %v10793_v19  ;;  %v5598_v19 = vpop.permute.xlu1 %5597 }
 0x4d1   : > { %5836 = vmatprep.mubr.f32.mxu1 %v11480_v32 }
 0x59f   : > { %v8122_v9 = vpop.f32.mrb[44].mxu1 }
 0x5a0   : > { %v5581_v62 = vmul.f32 %v8122_v9, %v5570_v15  ;;  %v5542_v30 = vpop.f32.mrb[45].mxu1 }
 0x5a1   : > { %v5580_v50 = vmul.f32 %v5566_v37, %v5542_v30  ;;  %v2866_v30 = vpop.permute.xlu1 %2865 }
 0x5a2   : > { %v5601_v55 = vadd.f32 %v5590_v36, %v5581_v62 }
 0x5a3   : > { %v5600_v27 = vadd.f32 %v5586_v17, %v5580_v50  ;;  %v8125_v56 = vpop.f32.mrb[46].mxu1  ;;  %v2882_v50 = vpop.permute.xlu0 %2881 }
 0x5a4   : > { %v7183_v42 = vmul.f32 -1.442695, %v5601_v55  ;;  %v5583_v21 = vmul.f32 %v8125_v56, %v5578_v14  ;;  %v5554_v63 = vpop.f32.mrb[47].mxu1 }
 0x5a5   : > { %v7182_v59 = vmul.f32 -1.442695, %v5600_v27  ;;  %v5582_v28 = vmul.f32 %v5574_v3, %v5554_v63 }
 0x5a6   : > { %8961 = vpow2.f32 %v7183_v42  ;;  %v5603_v1 = vadd.f32 %v5598_v19, %v5583_v21  ;;  %v2877_v21 = vmul.f32 %v2866_v30, %v10768_v16 }
 0x5a7   : > { %8963 = vpow2.f32 %v7182_v59  ;;  %v5602_v33 = vadd.f32 %v5594_v61, %v5582_v28  ;;  %v2884_v14 = vpop.permute.xlu0 %2883 }
 0x5a8   : > { %v7185_v25 = vmul.f32 -1.442695, %v5603_v1  ;;  %v2893_v28 = vadd.f32 %v2882_v50, %v2877_v21 }
 0x5a9   : > { %v7184_v11 = vmul.f32 -1.442695, %v5602_v33 }
 0x5aa   : > { %8965 = vpow2.f32 %v7185_v25 }
 0x5ab   : > { %8967 = vpow2.f32 %v7184_v11  ;;  %v2886_v56 = vpop.permute.xlu0 %2885 }
 0x5b0   : > { %v8962_v45 = vpop.eup %8961 }
 0x5b1   : > { %v8964_v38 = vpop.eup %8963  ;;  %v5617_v52 = vadd.f32 1.0, %v8962_v45  ;;  %v7166_v45 = vmul.f32 -1.442695, %v2893_v28 }
 0x5b2   : > { %v5616_v8 = vadd.f32 1.0, %v8964_v38 }
 0x5b3   : > { %8969 = vrcp.f32 %v5617_v52 }
 0x5b4   : > { %v8966_v20 = vpop.eup %8965  ;;  %8971 = vrcp.f32 %v5616_v8 }
 0x5b5   : > { %v8968_v23 = vpop.eup %8967  ;;  %v5619_v60 = vadd.f32 1.0, %v8966_v20 }
 0x5b6   : > { %v5618_v49 = vadd.f32 1.0, %v8968_v23 }
 0x5b7   : > { %8973 = vrcp.f32 %v5619_v60 }
 0x5b8   : > { %8975 = vrcp.f32 %v5618_v49 }
 0x5bd   : > { %v8970_v54 = vpop.eup %8969 }
 0x5be   : > { %v8972_v7 = vpop.eup %8971  ;;  %v5629_v22 = vmul.f32 %v8970_v54, %v5601_v55  ;;  %v2868_v55 = vpop.permute.xlu1 %2867 }
 0x5bf   : > { %v5628_v46 = vmul.f32 %v8972_v7, %v5600_v27  ;;  %v2878_v42 = vmul.f32 %v10766_v39, %v2868_v55 }
 0x5c0   : > { %v7187_v29 = vmul.f32 -1.442695, %v5629_v22 }
 0x5c1   : > { %v8974_v48 = vpop.eup %8973  ;;  %v7186_v24 = vmul.f32 -1.442695, %v5628_v46  ;;  %v2894_v19 = vadd.f32 %v2884_v14, %v2878_v42 }
 0x5c2   : > { %v8976_v26 = vpop.eup %8975  ;;  %8977 = vpow2.f32 %v7187_v29  ;;  %v5631_v47 = vmul.f32 %v8974_v48, %v5603_v1  ;;  %v2870_v27 = vpop.permute.xlu1 %2869 }
 0x5c3   : > { %8979 = vpow2.f32 %v7186_v24  ;;  %v5630_v53 = vmul.f32 %v8976_v26, %v5602_v33  ;;  %v2879_v1 = vmul.f32 %v2870_v27, %v10772_v2  ;;  %v2888_v33 = vpop.permute.xlu0 %2887  ;;  %v7167_v25 = vmul.f32 -1.442695, %v2894_v19 }
 0x5c4   : > { %v7189_v40 = vmul.f32 -1.442695, %v5631_v47 }
 0x5c5   : > { %v7188_v41 = vmul.f32 -1.442695, %v5630_v53  ;;  %v2895_v38 = vadd.f32 %v2886_v56, %v2879_v1 }
 0x5c6   : > { %8981 = vpow2.f32 %v7189_v40  ;;  %v2872_v63 = vpop.permute.xlu1 %2871 }
 0x5c7   : > { %8983 = vpow2.f32 %v7188_v41  ;;  %v2880_v59 = vmul.f32 %v10770_v51, %v2872_v63  ;;  %v7168_v8 = vmul.f32 -1.442695, %v2895_v38 }
 0x5c9   : > { %v2896_v11 = vadd.f32 %v2888_v33, %v2880_v59 }
 0x5cb   : > { %v7169_v52 = vmul.f32 -1.442695, %v2896_v11 }
 0x5cc   : > { %v8978_v0 = vpop.eup %8977 }
 0x5cd   : > { %v8980_v12 = vpop.eup %8979  ;;  %v5645_v35 = vadd.f32 1.0, %v8978_v0 }
 0x5ce   : > { %v5644_v13 = vadd.f32 1.0, %v8980_v12 }
 0x5cf   : > { %8985 = vrcp.f32 %v5645_v35 }
 0x5d0   : > { %v8982_v18 = vpop.eup %8981  ;;  %8987 = vrcp.f32 %v5644_v13 }
 0x5d1   : > { %v8984_v6 = vpop.eup %8983  ;;  %v5647_v4 = vadd.f32 1.0, %v8982_v18 }
 0x5d2   : > { %v5646_v58 = vadd.f32 1.0, %v8984_v6 }
 0x5d3   : > { %8989 = vrcp.f32 %v5647_v4 }
 0x5d4   : > { %8991 = vrcp.f32 %v5646_v58 }
 0x5d5   : > { %8993 = vpow2.f32 %v7167_v25 }
 0x5d6   : > { %8995 = vpow2.f32 %v7166_v45  ;;  %v1179_v45 = vld [vmem:[%s11207_s7 + $0x8] sm:$0xff] }
 0x5d7   : > { %8997 = vpow2.f32 %v7169_v52 }
 0x5d8   : > { %8999 = vpow2.f32 %v7168_v8 }
 0x5d9   : > { %v10858_v17 = vpop.eup %8985 }
 0x5da   : > { %v10860_v15 = vpop.eup %8987  ;;  %v5664_v37 = vsel %vm5660_vm6, %v10858_v17, 0.0  ;;  %v5657_v50 = vmul.f32 %v10858_v17, %v10795_v44 }
 0x5db   : > { %5665 = vadd.xlane.f32.xlu0 %v5664_v37  ;;  %v5661_v3 = vsel %vm5660_vm6, %v10860_v15, 0.0 }
 0x5dc   : > { %5662 = vadd.xlane.f32.xlu1 %v5661_v3  ;;  %v7191_v14 = vmul.f32 -1.442695, %v5657_v50 }
 0x5dd   : > { %v10864_v36 = vpop.eup %8989 }
 0x5de   : > { %v10866_v61 = vpop.eup %8991  ;;  %v5671_v9 = vsel %vm5670_vm7, %v10864_v36, 0.0 }
 0x5df   : > { %v5667_v62 = vsel %vm5660_vm6, %v10866_v61, 0.0  ;;  %v8994_v39 = vpop.eup %8993  ;;  %v5658_v56 = vmul.f32 %v10866_v61, %v10815_v5 }
 0x5e0   : > { %5672 = vadd.xlane.f32.xlu1 %v5671_v9  ;;  %5668 = vadd.xlane.f32.xlu0 %v5667_v62  ;;  %v8996_v16 = vpop.eup %8995  ;;  %v2910_v20 = vadd.f32 1.0, %v8994_v39  ;;  %v5656_v9 = vmul.f32 %v10860_v15, %v10800_v10  ;;  %v5659_v10 = vmul.f32 %v10864_v36, %v10809_v43  ;;  %v5768_v39 = vand.u32 4294901760, %v1179_v45 }
 0x5e1   : > { %v8998_v23 = vpop.eup %8997  ;;  %v2909_v60 = vadd.f32 1.0, %v8996_v16  ;;  %v7192_v15 = vmul.f32 -1.442695, %v5658_v56 }
 0x5e2   : > { %v9000_v51 = vpop.eup %8999  ;;  %9001 = vrcp.f32 %v2910_v20  ;;  %v2912_v49 = vadd.f32 1.0, %v8998_v23  ;;  %v7190_v55 = vmul.f32 -1.442695, %v5656_v9  ;;  %v1178_v20 = vld [vmem:[%s11207_s7] sm:$0xff]  ;;  %v1180_v23 = vld [vmem:[%s11207_s7 + $0x10] sm:$0xff] }
 0x5e3   : > { %9003 = vrcp.f32 %v2909_v60  ;;  %v2911_v2 = vadd.f32 1.0, %v9000_v51  ;;  %v5770_v60 = vand.u32 4294901760, %v1178_v20  ;;  %v5774_v51 = vand.u32 4294901760, %v1180_v23 }
 0x5e4   : > { %9005 = vrcp.f32 %v2912_v49 }
 0x5e5   : > { %9007 = vrcp.f32 %v2911_v2 }
 0x5ec   : > { %v9002_v54 = vpop.eup %9001 }
 0x5ed   : > { %v9004_v7 = vpop.eup %9003  ;;  %v2922_v46 = vmul.f32 %v9002_v54, %v2894_v19  ;;  %v7193_v19 = vmul.f32 -1.442695, %v5659_v10 }
 0x5ee   : > { %v9006_v24 = vpop.eup %9005  ;;  %v2921_v26 = vmul.f32 %v9004_v7, %v2893_v28  ;;  %v10896_v7 = vpack.c.bf16 %v5774_v51, %v5770_v60 }
 0x5ef   : > { %v9008_v53 = vpop.eup %9007  ;;  %v2924_v0 = vmul.f32 %v9006_v24, %v2896_v11  ;;  %v10910_v24 = vsub.f32 %v1180_v23, %v5774_v51 }
 0x5f0   : > { %v2923_v4 = vmul.f32 %v9008_v53, %v2895_v38  ;;  %v1181_v38 = vld [vmem:[%s11207_s7 + $0x18] sm:$0xff] }
 0x5f1   : > { %v5772_v16 = vand.u32 4294901760, %v1181_v38 }
 0x5f3   : > { %v10894_v2 = vpack.c.bf16 %v5772_v16, %v5768_v39 }
 0x5f5   : > { %8607 = vmatprep.subr.bf16.mxu1 %v10894_v2 }
 0x5f6   : > { %8609 = vmatpush1.bf16.msra.mxu1 %v10896_v7 }
 0x668   : > { %v5666_v22 = vpop.xlane.xlu0 %5665 }
 0x669   : > { %v5676_v29 = vmul.f32 0.03125, %v5666_v22  ;;  %v5663_v48 = vpop.xlane.xlu1 %5662 }
 0x66a   : > { %v5675_v47 = vmul.f32 0.03125, %v5663_v48  ;;  %v10908_v48 = vsub.f32 %v1178_v20, %v5770_v60 }
 0x66b   : > { %v5680_v40 = vmul.f32 %v5676_v29, %v2922_v46  ;;  %v10904_v46 = vsub.f32 %v1179_v45, %v5768_v39  ;;  %v10906_v29 = vsub.f32 %v1181_v38, %v5772_v16 }
 0x66c   : > { %v5679_v41 = vmul.f32 %v5675_v47, %v2921_v26  ;;  %v1183_v26 = vld [vmem:[%s11208_s8 + $0x8] sm:$0xff]  ;;  %v1185_v47 = vld [vmem:[%s11208_s8 + $0x18] sm:$0xff]  ;;  %v8616_v16 = vpack.c.bf16 %v10910_v24, %v10908_v48 }
 0x66d   : > { %v7195_v12 = vmul.f32 -1.442695, %v5680_v40  ;;  %v5673_v35 = vpop.xlane.xlu1 %5672  ;;  %v5669_v13 = vpop.xlane.xlu0 %5668  ;;  %v6426_v40 = vand.u32 4294901760, %v1183_v26  ;;  %v8614_v38 = vpack.c.bf16 %v10906_v29, %v10904_v46 }
 0x66e   : > { %v7194_v18 = vmul.f32 -1.442695, %v5679_v41  ;;  %v5678_v6 = vmul.f32 0.03125, %v5673_v35  ;;  %v5677_v58 = vmul.f32 0.03125, %v5669_v13  ;;  %v6430_v41 = vand.u32 4294901760, %v1185_v47 }
 0x66f   : > { %9009 = vpow2.f32 %v7195_v12  ;;  %v1184_v12 = vld [vmem:[%s11208_s8 + $0x10] sm:$0xff] }
 0x670   : > { %9011 = vpow2.f32 %v7194_v18  ;;  %v5682_v37 = vmul.f32 %v5678_v6, %v2924_v0  ;;  %v5681_v3 = vmul.f32 %v5677_v58, %v2923_v4  ;;  %v1182_v0 = vld [vmem:[%s11208_s8] sm:$0xff]  ;;  %v6432_v13 = vand.u32 4294901760, %v1184_v12 }
 0x671   : > { %v6428_v35 = vand.u32 4294901760, %v1182_v0  ;;  %v5883_v18 = vand.u32 4294901760, %v10904_v46  ;;  %v5895_v6 = vand.u32 4294901760, %v10906_v29  ;;  %v10927_v4 = vpack.c.bf16 %v6430_v41, %v6426_v40 }
 0x672   : > { %v7197_v62 = vmul.f32 -1.442695, %v5682_v37  ;;  %v7196_v30 = vmul.f32 -1.442695, %v5681_v3  ;;  %v5889_v58 = vand.u32 4294901760, %v10908_v48  ;;  %v5901_v37 = vand.u32 4294901760, %v10910_v24 }
 0x673   : > { %v10931_v3 = vpack.c.bf16 %v6432_v13, %v6428_v35  ;;  %8631 = vmatprep.subr.bf16.mxu0 %v10927_v4  ;;  %v10940_v56 = vsub.f32 %v1182_v0, %v6428_v35  ;;  %v10967_v60 = vpack.c.bf16 %v5895_v6, %v5883_v18 }
 0x674   : > { %9013 = vpow2.f32 %v7197_v62  ;;  %v5884_v62 = vsub.f32 %v10904_v46, %v5883_v18  ;;  %v5890_v50 = vsub.f32 %v10908_v48, %v5889_v58  ;;  %v10969_v51 = vpack.c.bf16 %v5901_v37, %v5889_v58 }
 0x675   : > { %9015 = vpow2.f32 %v7196_v30  ;;  %v5896_v30 = vsub.f32 %v10906_v29, %v5895_v6  ;;  %8633 = vmatpush1.bf16.msra.mxu0 %v10931_v3 }
 0x676   : > { %9017 = vpow2.f32 %v7190_v55  ;;  %v5902_v55 = vsub.f32 %v10910_v24, %v5901_v37 }
 0x677   : > { %9019 = vpow2.f32 %v7191_v14  ;;  %v5885_v14 = vand.u32 4294901760, %v5884_v62 }
 0x678   : > { %v5903_v10 = vand.u32 4294901760, %v5902_v55 }
 0x679   : > { %v9010_v27 = vpop.eup %9009 }
 0x67a   : > { %v9012_v42 = vpop.eup %9011  ;;  %v5720_v21 = vadd.f32 1.0, %v9010_v27  ;;  %v5897_v27 = vand.u32 4294901760, %v5896_v30 }
 0x67b   : > { %v5719_v63 = vadd.f32 1.0, %v9012_v42  ;;  %v10942_v42 = vsub.f32 %v1184_v12, %v6432_v13 }
 0x67c   : > { %9021 = vrcp.f32 %v5720_v21 }
 0x67d   : > { %9023 = vrcp.f32 %v5719_v63  ;;  %v5891_v63 = vand.u32 4294901760, %v5890_v50  ;;  %v8640_v23 = vpack.c.bf16 %v10942_v42, %v10940_v56 }
 0x67e   : > { %v9014_v44 = vpop.eup %9013  ;;  %9025 = vpow2.f32 %v7192_v15  ;;  %v10944_v15 = vsub.f32 %v1183_v26, %v6426_v40 }
 0x67f   : > { %v9016_v17 = vpop.eup %9015  ;;  %v5722_v28 = vadd.f32 1.0, %v9014_v44  ;;  %v10946_v44 = vsub.f32 %v1185_v47, %v6430_v41 }
 0x680   : > { %v5721_v59 = vadd.f32 1.0, %v9016_v17  ;;  %v9018_v1 = vpop.eup %9017  ;;  %v8610_v17 = vpack.c.bf16 %v5897_v27, %v5885_v14 }
 0x681   : > { %v9020_v5 = vpop.eup %9019  ;;  %v5695_v33 = vadd.f32 1.0, %v9018_v1  ;;  %v6547_v1 = vand.u32 4294901760, %v10940_v56  ;;  %v8638_v20 = vpack.c.bf16 %v10946_v44, %v10944_v15 }
 0x682   : > { %9027 = vrcp.f32 %v5721_v59  ;;  %v5696_v43 = vadd.f32 1.0, %v9020_v5  ;;  %v6541_v59 = vand.u32 4294901760, %v10944_v15  ;;  %8611 = vmatprep.subr.bf16.mxu1 %v8610_v17  ;;  %v6559_v5 = vand.u32 4294901760, %v10942_v42 }
 0x683   : > { %9029 = vpow2.f32 %v7193_v19  ;;  %v8612_v19 = vpack.c.bf16 %v5903_v10, %v5891_v63 }
 0x684   : > { %9031 = vrcp.f32 %v5722_v28  ;;  %v6553_v28 = vand.u32 4294901760, %v10946_v44 }
 0x685   : > { %9033 = vrcp.f32 %v5695_v33 }
 0x686   : > { %v9022_v61 = vpop.eup %9021  ;;  %9035 = vrcp.f32 %v5696_v43  ;;  %v6554_v33 = vsub.f32 %v10946_v44, %v6553_v28  ;;  %v6560_v43 = vsub.f32 %v10942_v42, %v6559_v5 }
 0x687   : > { %v9024_v25 = vpop.eup %9023  ;;  %5738 = vperm.xlu1 %8944, %v9022_v61   ;;  %v6542_v61 = vsub.f32 %v10944_v15, %v6541_v59 }
 0x688   : > { %5733 = vperm.xlu0 %8943, %v9024_v25   ;;  %v9026_v36 = vpop.eup %9025  ;;  %v6548_v25 = vsub.f32 %v10940_v56, %v6547_v1 }
 0x689   : > { %v5697_v8 = vadd.f32 1.0, %v9026_v36  ;;  %v6543_v36 = vand.u32 4294901760, %v6542_v61 }
 0x68a   : > { %v6549_v45 = vand.u32 4294901760, %v6548_v25 }
 0x68b   : > { %9037 = vrcp.f32 %v5697_v8 }
 0x68c   : > { %v9028_v11 = vpop.eup %9027 }
 0x68d   : > { %5743 = vperm.xlu1 %8944, %v9028_v11   ;;  %v9030_v52 = vpop.eup %9029  ;;  %v6555_v11 = vand.u32 4294901760, %v6554_v33 }
 0x68e   : > { %v9032_v49 = vpop.eup %9031  ;;  %v5698_v54 = vadd.f32 1.0, %v9030_v52  ;;  %v6561_v52 = vand.u32 4294901760, %v6560_v43 }
 0x68f   : > { %v10900_v22 = vpop.eup %9033  ;;  %v8634_v8 = vpack.c.bf16 %v6555_v11, %v6543_v36 }
 0x690   : > { %9039 = vrcp.f32 %v5698_v54  ;;  %v9036_v53 = vpop.eup %9035  ;;  %v10959_v39 = vpack.c.bf16 %v6561_v52, %v6549_v45  ;;  %v10973_v54 = vpack.c.bf16 %v6559_v5, %v6547_v1 }
 0x691   : > { %5748 = vperm.xlu1 %8944, %v9032_v49   ;;  %8635 = vmatprep.subr.bf16.mxu0 %v8634_v8  ;;  %v10971_v49 = vpack.c.bf16 %v6553_v28, %v6541_v59 }
 0x695   : > { %6410 = vrot.lane.b32.xlu1 %v10900_v22, %s9079_s25  ;;  %v9038_v9 = vpop.eup %9037 }
 0x699   : > { %6412 = vrot.lane.b32.xlu1 %v9036_v53, %s9079_s25 }
 0x69a   : > { %v9040_v21 = vpop.eup %9039 }
 0x69d   : > { %6414 = vrot.lane.b32.xlu1 %v9038_v9, %s9079_s25 }
 0x6a1   : > { %6416 = vrot.lane.b32.xlu1 %v9040_v21, %s9079_s25 }
 0x706   : > { %v5739_v46 = vpop.permute.xlu1 %5738 }
 0x707   : > { %v5752_v29 = vmul.f32 %v9036_v53, %v5739_v46  ;;  %v5734_v26 = vpop.permute.xlu0 %5733 }
 0x708   : > { %v5751_v47 = vmul.f32 %v10900_v22, %v5734_v26 }
 0x709   : > { %v5760_v40 = vsel %vm5755_vm8, %v5752_v29, 0 }
 0x70a   : > { %v10977_v41 = vand.u32 4294901760, %v5760_v40  ;;  %v5757_v0 = vsel %vm5755_vm8, %v5751_v47, 0 }
 0x70b   : > { %v10980_v12 = vand.u32 4294901760, %v5757_v0 }
 0x70c   : > { %v10983_v35 = vsub.f32 %v5760_v40, %v10977_v41  ;;  %v5744_v13 = vpop.permute.xlu1 %5743 }
 0x70d   : > { %v10986_v18 = vsub.f32 %v5757_v0, %v10980_v12  ;;  %v5753_v6 = vmul.f32 %v9038_v9, %v5744_v13 }
 0x70e   : > { %v5850_v58 = vand.u32 4294901760, %v10983_v35 }
 0x70f   : > { %v5839_v53 = vand.u32 4294901760, %v10986_v18  ;;  %v5763_v22 = vsel %vm5755_vm8, %v5753_v6, 0 }
 0x710   : > { %v10991_v37 = vand.u32 4294901760, %v5763_v22  ;;  %v5749_v62 = vpop.permute.xlu1 %5748  ;;  %v5851_v27 = vsub.f32 %v10983_v35, %v5850_v58 }
 0x711   : > { %v5840_v30 = vsub.f32 %v10986_v18, %v5839_v53  ;;  %v5754_v50 = vmul.f32 %v9040_v21, %v5749_v62 }
 0x712   : > { %v10997_v55 = vsub.f32 %v5763_v22, %v10991_v37  ;;  %v5852_v1 = vand.u32 4294901760, %v5851_v27 }
 0x713   : > { %v5841_v14 = vand.u32 4294901760, %v5840_v30  ;;  %v5766_v9 = vsel %vm5755_vm8, %v5754_v50, 0  ;;  %v11483_v30 = vld [vmem:[#allocation6_spill] sm:$0xff] }
 0x714   : > { %v11003_v63 = vand.u32 4294901760, %v5766_v9  ;;  %v6411_v10 = vpop.permute.xlu1 %6410  ;;  %v5861_v17 = vand.u32 4294901760, %v10997_v55 }
 0x715   : > { %v6418_v59 = vsel %vm5755_vm8, %v6411_v10, 0  ;;  %5842 = vmatmul.mubr.f32.vlgmr.msra.gmra.mrb[48].mxu1 %v5841_v14  ;;  %v11484_v10 = vld [vmem:[#allocation8_spill] sm:$0xff] }
 0x716   : > { %v11008_v21 = vsub.f32 %v5766_v9, %v11003_v63  ;;  %v11010_v28 = vand.u32 4294901760, %v6418_v59  ;;  %5847 = vmatprep.mubr.f32.mxu1 %v11480_v32  ;;  %8613 = vmatpush1.bf16.msra.mxu1 %v8612_v19  ;;  %v5862_v5 = vsub.f32 %v10997_v55, %v5861_v17 }
 0x717   : > { %8615 = vmatprep.subr.bf16.mxu1 %v8614_v38 }
 0x718   : > { %v11017_v61 = vsub.f32 %v6418_v59, %v11010_v28  ;;  %v6413_v33 = vpop.permute.xlu1 %6412  ;;  %v5872_v25 = vand.u32 4294901760, %v11008_v21  ;;  %v5863_v19 = vand.u32 4294901760, %v5862_v5 }
 0x719   : > { %v6420_v43 = vsel %vm5755_vm8, %v6413_v33, 0  ;;  %5853 = vmatmul.mubr.f32.gmra.mrb[50].mxu1 %v5852_v1  ;;  %v11485_v1 = vld [vmem:[#allocation10_spill] sm:$0xff] }
 0x71a   : > { %v6497_v36 = vand.u32 4294901760, %v11017_v61  ;;  %v11022_v11 = vand.u32 4294901760, %v6420_v43  ;;  %5858 = vmatprep.mubr.f32.mxu1 %v11480_v32  ;;  %v5873_v45 = vsub.f32 %v11008_v21, %v5872_v25 }
 0x71c   : > { %v6498_v38 = vsub.f32 %v11017_v61, %v6497_v36  ;;  %v11032_v52 = vsub.f32 %v6420_v43, %v11022_v11  ;;  %v6415_v8 = vpop.permute.xlu1 %6414  ;;  %v5874_v40 = vand.u32 4294901760, %v5873_v45 }
 0x71d   : > { %v6422_v46 = vsel %vm5755_vm8, %v6415_v8, 0  ;;  %5864 = vmatmul.mubr.f32.gmra.mrb[52].mxu1 %v5863_v19 }
 0x71e   : > { %v6499_v29 = vand.u32 4294901760, %v6498_v38  ;;  %v6508_v26 = vand.u32 4294901760, %v11032_v52  ;;  %v11036_v47 = vand.u32 4294901760, %v6422_v46  ;;  %5869 = vmatprep.mubr.f32.mxu1 %v11480_v32  ;;  %v11486_v38 = vld [vmem:[#allocation11_spill] sm:$0xff] }
 0x720   : > { %v11040_v0 = vsub.f32 %v6422_v46, %v11036_v47  ;;  %6500 = vmatmul.mubr.f32.vlgmr.msra.gmra.mrb[20].mxu0 %v6499_v29  ;;  %v6509_v13 = vsub.f32 %v11032_v52, %v6508_v26  ;;  %v6417_v48 = vpop.permute.xlu1 %6416 }
 0x721   : > { %8637 = vmatpush1.bf16.msra.mxu0 %v10959_v39  ;;  %5875 = vmatmul.mubr.f32.gmra.mrb[54].mxu1 %v5874_v40  ;;  %v6424_v24 = vsel %vm5755_vm8, %v6417_v48, 0 }
 0x722   : > { %v6519_v6 = vand.u32 4294901760, %v11040_v0  ;;  %6505 = vmatprep.mubr.f32.mxu0 %v11480_v32  ;;  %v6510_v22 = vand.u32 4294901760, %v6509_v13  ;;  %5965 = vmatprep.mubr.f32.mxu1 %v11480_v32  ;;  %v11081_v56 = vand.u32 4294901760, %v6424_v24 }
 0x723   : > { %8639 = vmatprep.subr.bf16.mxu0 %v8638_v20 }
 0x724   : > { %6511 = vmatmul.mubr.f32.gmra.mrb[22].mxu0 %v6510_v22  ;;  %v6520_v62 = vsub.f32 %v11040_v0, %v6519_v6  ;;  %v6529_v42 = vsub.f32 %v6424_v24, %v11081_v56 }
 0x725   : > { %5967 = vmatmul.mubr.f32.vlgmr.msra.gmra.mrb[48].mxu1 %v10980_v12  ;;  %6516 = vmatprep.mubr.f32.mxu0 %v11480_v32 }
 0x726   : > { %v6521_v39 = vand.u32 4294901760, %v6520_v62  ;;  %5972 = vmatprep.mubr.f32.mxu1 %v11480_v32  ;;  %8617 = vmatpush1.bf16.msra.mxu1 %v8616_v16 }
 0x727   : > { %8619 = vmatprep.subr.bf16.mxu1 %v10894_v2 }
 0x728   : > { %6522 = vmatmul.mubr.f32.gmra.mrb[24].mxu0 %v6521_v39 }
 0x729   : > { %5974 = vmatmul.mubr.f32.gmra.mrb[50].mxu1 %v10977_v41  ;;  %6623 = vmatprep.mubr.f32.mxu0 %v11480_v32 }
 0x72a   : > { %5979 = vmatprep.mubr.f32.mxu1 %v11480_v32 }
 0x72c   : > { %6625 = vmatmul.mubr.f32.vlgmr.msra.gmra.mrb[20].mxu0 %v11010_v28 }
 0x72d   : > { %8641 = vmatpush1.bf16.msra.mxu0 %v8640_v23  ;;  %5981 = vmatmul.mubr.f32.gmra.mrb[52].mxu1 %v10991_v37 }
 0x72e   : > { %6630 = vmatprep.mubr.f32.mxu0 %v11480_v32  ;;  %5986 = vmatprep.mubr.f32.mxu1 %v11480_v32 }
 0x72f   : > { %8643 = vmatprep.subr.bf16.mxu0 %v10927_v4 }
 0x730   : > { %6632 = vmatmul.mubr.f32.gmra.mrb[22].mxu0 %v11022_v11 }
 0x731   : > { %5988 = vmatmul.mubr.f32.gmra.mrb[54].mxu1 %v11003_v63  ;;  %6637 = vmatprep.mubr.f32.mxu0 %v11480_v32 }
 0x732   : > { %6066 = vmatprep.mubr.f32.mxu1 %v11480_v32 }
 0x734   : > { %6639 = vmatmul.mubr.f32.gmra.mrb[24].mxu0 %v11036_v47 }
 0x735   : > { %6069 = vmatmul.mubr.f32.vlgmr.msra.gmra.mrb[48].mxu1 %v10986_v18  ;;  %6644 = vmatprep.mubr.f32.mxu0 %v11480_v32 }
 0x736   : > { %6074 = vmatprep.mubr.f32.mxu1 %v11480_v32  ;;  %8621 = vmatpush1.bf16.msra.mxu1 %v10896_v7 }
 0x737   : > { %8623 = vmatprep.subr.bf16.mxu1 %v10967_v60 }
 0x738   : > { %6646 = vmatmul.mubr.f32.gmra.mrb[26].mxu0 %v11081_v56 }
 0x739   : > { %6077 = vmatmul.mubr.f32.gmra.mrb[50].mxu1 %v10983_v35  ;;  %6724 = vmatprep.mubr.f32.mxu0 %v11480_v32  ;;  %v11482_v35 = vld [vmem:[#allocation5_spill] sm:$0xff] }
 0x73a   : > { %6082 = vmatprep.mubr.f32.mxu1 %v11480_v32 }
 0x73c   : > { %6727 = vmatmul.mubr.f32.vlgmr.msra.gmra.mrb[20].mxu0 %v11017_v61 }
 0x73d   : > { %8645 = vmatpush1.bf16.msra.mxu0 %v10931_v3  ;;  %6085 = vmatmul.mubr.f32.gmra.mrb[52].mxu1 %v10997_v55 }
 0x73e   : > { %6732 = vmatprep.mubr.f32.mxu0 %v11480_v32  ;;  %6090 = vmatprep.mubr.f32.mxu1 %v11480_v32 }
 0x73f   : > { %8647 = vmatprep.subr.bf16.mxu0 %v10971_v49 }
 0x740   : > { %6735 = vmatmul.mubr.f32.gmra.mrb[22].mxu0 %v11032_v52 }
 0x741   : > { %6093 = vmatmul.mubr.f32.gmra.mrb[54].mxu1 %v11008_v21  ;;  %6740 = vmatprep.mubr.f32.mxu0 %v11480_v32 }
 0x742   : > { %6167 = vmatprep.mubr.f32.mxu1 %v11480_v32 }
 0x744   : > { %6743 = vmatmul.mubr.f32.gmra.mrb[24].mxu0 %v11040_v0 }
 0x745   : > { %6171 = vmatmul.mubr.f32.vlgmr.msra.gmra.mrb[48].mxu1 %v5839_v53  ;;  %6748 = vmatprep.mubr.f32.mxu0 %v11480_v32 }
 0x746   : > { %6176 = vmatprep.mubr.f32.mxu1 %v11480_v32  ;;  %8625 = vmatpush1.bf16.msra.mxu1 %v10969_v51 }
 0x747   : > { %8627 = vmatprep.subr.bf16.mxu1 %v10894_v2  ;;  %v6530_v2 = vand.u32 4294901760, %v6529_v42 }
 0x748   : > { %6751 = vmatmul.mubr.f32.gmra.mrb[26].mxu0 %v6529_v42 }
 0x749   : > { %6180 = vmatmul.mubr.f32.gmra.mrb[50].mxu1 %v5850_v58  ;;  %6825 = vmatprep.mubr.f32.mxu0 %v11480_v32 }
 0x74a   : > { %6185 = vmatprep.mubr.f32.mxu1 %v11480_v32 }
 0x74c   : > { %6829 = vmatmul.mubr.f32.vlgmr.msra.gmra.mrb[20].mxu0 %v6497_v36 }
 0x74d   : > { %8649 = vmatpush1.bf16.msra.mxu0 %v10973_v54  ;;  %6189 = vmatmul.mubr.f32.gmra.mrb[52].mxu1 %v5861_v17 }
 0x74e   : > { %6834 = vmatprep.mubr.f32.mxu0 %v11480_v32  ;;  %6194 = vmatprep.mubr.f32.mxu1 %v11480_v32 }
 0x74f   : > { %8651 = vmatprep.subr.bf16.mxu0 %v10927_v4 }
 0x750   : > { %6838 = vmatmul.mubr.f32.gmra.mrb[22].mxu0 %v6508_v26 }
 0x751   : > { %6198 = vmatmul.mubr.f32.gmra.mrb[54].mxu1 %v5872_v25  ;;  %6843 = vmatprep.mubr.f32.mxu0 %v11480_v32 }
 0x752   : > { %6280 = vmatprep.mubr.f32.mxu1 %v11480_v32 }
 0x754   : > { %6847 = vmatmul.mubr.f32.gmra.mrb[24].mxu0 %v6519_v6 }
 0x755   : > { %6282 = vmatmul.mubr.f32.vlgmr.msra.gmra.mrb[48].mxu1 %v10980_v12  ;;  %6852 = vmatprep.mubr.f32.mxu0 %v11480_v32 }
 0x756   : > { %6287 = vmatprep.mubr.f32.mxu1 %v11480_v32  ;;  %8629 = vmatpush1.bf16.msra.mxu1 %v10896_v7  ;;  %v6531_v7 = vsub.f32 %v6529_v42, %v6530_v2 }
 0x757   : > { %8654 = vmatprep.subr.bf16.mxu1 %v10927_v4 }
 0x758   : > { %6856 = vmatmul.mubr.f32.gmra.mrb[26].mxu0 %v6530_v2  ;;  %v6532_v4 = vand.u32 4294901760, %v6531_v7 }
 0x759   : > { %6289 = vmatmul.mubr.f32.gmra.mrb[50].mxu1 %v10977_v41  ;;  %6938 = vmatprep.mubr.f32.mxu0 %v11480_v32 }
 0x75a   : > { %6294 = vmatprep.mubr.f32.mxu1 %v11480_v32 }
 0x75c   : > { %6940 = vmatmul.mubr.f32.vlgmr.msra.gmra.mrb[20].mxu0 %v11010_v28 }
 0x75d   : > { %8653 = vmatpush1.bf16.msra.mxu0 %v10931_v3  ;;  %6296 = vmatmul.mubr.f32.gmra.mrb[52].mxu1 %v10991_v37 }
 0x75e   : > { %6945 = vmatprep.mubr.f32.mxu0 %v11480_v32  ;;  %6301 = vmatprep.mubr.f32.mxu1 %v11480_v32 }
 0x760   : > { %6947 = vmatmul.mubr.f32.gmra.mrb[22].mxu0 %v11022_v11 }
 0x761   : > { %6303 = vmatmul.mubr.f32.gmra.mrb[54].mxu1 %v11003_v63  ;;  %6952 = vmatprep.mubr.f32.mxu0 %v11480_v32 }
 0x762   : > { %6377 = vmatprep.mubr.f32.mxu1 %v11480_v32 }
 0x764   : > { %6954 = vmatmul.mubr.f32.gmra.mrb[24].mxu0 %v11036_v47 }
 0x765   : > { %6379 = vmatmul.mubr.f32.vlgmr.msra.gmra.mrb[48].mxu1 %v10980_v12  ;;  %6959 = vmatprep.mubr.f32.mxu0 %v11480_v32 }
 0x766   : > { %6384 = vmatprep.mubr.f32.mxu1 %v11480_v32  ;;  %8655 = vmatpush1.bf16.msra.mxu1 %v10931_v3 }
 0x768   : > { %6961 = vmatmul.mubr.f32.gmra.mrb[26].mxu0 %v11081_v56 }
 0x769   : > { %6386 = vmatmul.mubr.f32.gmra.mrb[50].mxu1 %v10977_v41  ;;  %7035 = vmatprep.mubr.f32.mxu0 %v11480_v32 }
 0x76a   : > { %6391 = vmatprep.mubr.f32.mxu1 %v11480_v32 }
 0x76c   : > { %7037 = vmatmul.mubr.f32.vlgmr.msra.gmra.mrb[20].mxu0 %v11010_v28 }
 0x76d   : > { %6393 = vmatmul.mubr.f32.gmra.mrb[52].mxu1 %v10991_v37  ;;  %7042 = vmatprep.mubr.f32.mxu0 %v11480_v32 }
 0x76e   : > { %6398 = vmatprep.mubr.f32.mxu1 %v11480_v32 }
 0x770   : > { %7044 = vmatmul.mubr.f32.gmra.mrb[22].mxu0 %v11022_v11 }
 0x771   : > { %6400 = vmatmul.mubr.f32.gmra.mrb[54].mxu1 %v11003_v63  ;;  %7049 = vmatprep.mubr.f32.mxu0 %v11480_v32 }
 0x772   : > { %6527 = vmatprep.mubr.f32.mxu1 %v11480_v32 }
 0x774   : > { %7051 = vmatmul.mubr.f32.gmra.mrb[24].mxu0 %v11036_v47 }
 0x775   : > { %6533 = vmatmul.mubr.f32.vlgmr.msra.gmra.mrb[56].mxu1 %v6532_v4  ;;  %7056 = vmatprep.mubr.f32.mxu0 %v11480_v32 }
 0x778   : > { %7058 = vmatmul.mubr.f32.gmra.mrb[26].mxu0 %v11081_v56 }
 0x838   : > { %v6380_v3 = vpop.f32.mrb[48].mxu1 }
 0x839   : > { %v6382_v15 = vpop.f32.mrb[49].mxu1 }
 0x83c   : > { %v6387_v44 = vpop.f32.mrb[50].mxu1 }
 0x83d   : > { %v6389_v16 = vpop.f32.mrb[51].mxu1 }
 0x83f   : > { %v7038_v20 = vpop.f32.mrb[20].mxu0 }
 0x840   : > { %v7064_v23 = vmul.f32 %v7038_v20, %v6380_v3  ;;  %v7040_v60 = vpop.f32.mrb[21].mxu0  ;;  %v6394_v51 = vpop.f32.mrb[52].mxu1 }
 0x841   : > { %v7065_v49 = vmul.f32 %v7040_v60, %v6382_v15  ;;  %v6396_v54 = vpop.f32.mrb[53].mxu1 }
 0x842   : > { %v7072_v41 = vadd.f32 1.0, %v7064_v23 }
 0x843   : > { %v7073_v32 = vadd.f32 1.0, %v7065_v49  ;;  %v7045_v12 = vpop.f32.mrb[22].mxu0 }
 0x844   : > { %v7080_v18 = vmul.f32 %v11482_v35, %v7072_v41  ;;  %v7066_v53 = vmul.f32 %v7045_v12, %v6387_v44  ;;  %v7047_v58 = vpop.f32.mrb[23].mxu0  ;;  %v6401_v37 = vpop.f32.mrb[54].mxu1 }
 0x845   : > { %v7081_v50 = vmul.f32 %v11483_v30, %v7073_v32  ;;  %v7067_v55 = vmul.f32 %v7047_v58, %v6389_v16  ;;  %v6403_v14 = vpop.f32.mrb[55].mxu1 }
 0x846   : > { %7088 = vst [vmem:[%s11172_s21] sm:$0xff] %v7080_v18  ;;  %v7074_v9 = vadd.f32 1.0, %v7066_v53 }
 0x847   : > { %7089 = vst [vmem:[%s11172_s21 + $0x8] sm:$0xff] %v7081_v50  ;;  %v7075_v27 = vadd.f32 1.0, %v7067_v55  ;;  %v7052_v63 = vpop.f32.mrb[24].mxu0 }
 0x848   : > { %v7082_v17 = vmul.f32 %v11484_v10, %v7074_v9  ;;  %v7068_v59 = vmul.f32 %v7052_v63, %v6394_v51  ;;  %v7054_v21 = vpop.f32.mrb[25].mxu0  ;;  %v6534_v28 = vpop.f32.mrb[56].mxu1 }
 0x849   : > { %v7083_v5 = vmul.f32 %v11485_v1, %v7075_v27  ;;  %v7069_v61 = vmul.f32 %v7054_v21, %v6396_v54  ;;  %v6536_v33 = vpop.f32.mrb[57].mxu1 }
 0x84a   : > { %7090 = vst [vmem:[%s11172_s21 + $0x10] sm:$0xff] %v7082_v17  ;;  %v7076_v25 = vadd.f32 1.0, %v7068_v59 }
 0x84b   : > { %7091 = vst [vmem:[%s11172_s21 + $0x18] sm:$0xff] %v7083_v5  ;;  %v7077_v43 = vadd.f32 1.0, %v7069_v61  ;;  %v7059_v36 = vpop.f32.mrb[26].mxu0 }
 0x84c   : > { %v7084_v11 = vmul.f32 %v9890_v31, %v7076_v25  ;;  %v8664_v19 = vadd.f32 %v7059_v36, %v6534_v28  ;;  %v7061_v45 = vpop.f32.mrb[27].mxu0 }
 0x84d   : > { %v7085_v52 = vmul.f32 %v11486_v38, %v7077_v43  ;;  %v8665_v8 = vadd.f32 %v7061_v45, %v6536_v33 }
 0x84e   : > { %7092 = vst [vmem:[%s11172_s21 + $0x20] sm:$0xff] %v7084_v11  ;;  %v7070_v46 = vmul.f32 %v8664_v19, %v6401_v37 }
 0x84f   : > { %7093 = vst [vmem:[%s11172_s21 + $0x28] sm:$0xff] %v7085_v52  ;;  %v7071_v29 = vmul.f32 %v8665_v8, %v6403_v14 }
 0x850   : > { %v7078_v26 = vadd.f32 1.0, %v7070_v46 }
 0x851   : > { %v7079_v47 = vadd.f32 1.0, %v7071_v29 }
 0x852   : > { %v7086_v40 = vmul.f32 %v9918_v34, %v7078_v26 }
 0x853   : > { %v7087_v0 = vmul.f32 %v9927_v57, %v7079_v47 }
 0x854   : > { %7094 = vst [vmem:[%s11172_s21 + $0x30] sm:$0x7] %v7086_v40 }
 0x855   : > { %7095 = vst [vmem:[%s11172_s21 + $0x38] sm:$0x7] %v7087_v0 }
 0x856 PF: > { %p16_p9 = scmp.ge.s32.totalorder %s9147_s13, 4   ;;  %s11487_s30 = smov %s9063_s10 }
 0x857   : > { %s11488_s10 = smov %s9156_s16  ;;  %s11489_s11 = smov %s9147_s13 }
 0x858   :  { %18 = sbr.rel (!%p16_p9) target bundleno = 2 (0x2), region = 116 }

</bundles_post_ra>
